<compile_context>
chip_gen: v7x
topology: tpu7x:2x2x1
jax: 0.10.0
libtpu: 0.0.40
codegen_flags: <defaults>
</compile_context>

<pallas_src>
import functools
import math

import jax
import jax.numpy as jnp
from jax.experimental import pallas as pl
from jax.experimental.pallas import tpu as pltpu

_VMEM_LIMIT = 32 * 1024 * 1024  # safe on v5e/v6e (128 MiB) and v7x (64 MiB)


def _round_up(x, m):
    return ((x + m - 1) // m) * m


def _pad2(x, rows, cols, value=0.0):
    """Pad a 2-D array up to (rows, cols); no-op (no copy) if already there."""
    pr, pc = rows - x.shape[0], cols - x.shape[1]
    if pr == 0 and pc == 0:
        return x
    return jnp.pad(x, ((0, pr), (0, pc)), constant_values=value)


# --------------------------------------------------------------------------
# Pallas kernels
# --------------------------------------------------------------------------
def _mm_kernel(a_ref, b_ref, s_ref, t_ref, o_ref, acc_ref, *, relu):
    """bf16 x bf16 -> fp32 accumulate; epilogue y = acc*scale + shift (+relu)."""
    @pl.when(pl.program_id(2) == 0)
    def _():
        acc_ref[...] = jnp.zeros_like(acc_ref)

    acc_ref[...] += jnp.dot(a_ref[...], b_ref[...],
                            preferred_element_type=jnp.float32)

    @pl.when(pl.program_id(2) == pl.num_programs(2) - 1)
    def _():
        y = acc_ref[...] * s_ref[...] + t_ref[...]
        if relu:
            y = jnp.maximum(y, 0.0)
        o_ref[...] = y.astype(o_ref.dtype)


def pallas_matmul(a, b, out_scale=None, out_shift=None, relu=False,
                  out_dtype=jnp.bfloat16):
    """a: (M, K), b: (K, N); fused per-column epilogue. Returns (M, N)."""
    M, K = a.shape
    K2, N = b.shape
    assert K == K2
    if out_scale is None:
        out_scale = jnp.ones((N,), jnp.float32)
    if out_shift is None:
        out_shift = jnp.zeros((N,), jnp.float32)

    Kp = _round_up(K, 128)
    Np = _round_up(N, 128)
    tm = min(512, _round_up(M, 8))
    Mp = _round_up(M, tm)
    tk = next(t for t in (512, 256, 128) if Kp % t == 0)
    tn = next(t for t in (512, 256, 128) if Np % t == 0)

    a_p = _pad2(a.astype(jnp.bfloat16), Mp, Kp)
    b_p = _pad2(b.astype(jnp.bfloat16), Kp, Np)
    s_p = _pad2(out_scale.reshape(1, N).astype(jnp.float32), 1, Np, value=1.0)
    t_p = _pad2(out_shift.reshape(1, N).astype(jnp.float32), 1, Np)

    cost = pl.CostEstimate(
        flops=2 * Mp * Np * Kp,
        transcendentals=0,
        bytes_accessed=2 * (Mp * Kp + Kp * Np + Mp * Np))

    out = pl.pallas_call(
        functools.partial(_mm_kernel, relu=relu),
        out_shape=jax.ShapeDtypeStruct((Mp, Np), out_dtype),
        grid=(Mp // tm, Np // tn, Kp // tk),
        in_specs=[
            pl.BlockSpec((tm, tk), lambda i, j, k: (i, k)),
            pl.BlockSpec((tk, tn), lambda i, j, k: (k, j)),
            pl.BlockSpec((1, tn), lambda i, j, k: (0, j)),
            pl.BlockSpec((1, tn), lambda i, j, k: (0, j)),
        ],
        out_specs=pl.BlockSpec((tm, tn), lambda i, j, k: (i, j)),
        scratch_shapes=[pltpu.VMEM((tm, tn), jnp.float32)],
        compiler_params=pltpu.CompilerParams(
            dimension_semantics=("parallel", "parallel", "arbitrary"),
            vmem_limit_bytes=_VMEM_LIMIT),
        cost_estimate=cost,
    )(a_p, b_p, s_p, t_p)
    return out[:M, :N]


def _bn_relu_kernel(x_ref, s_ref, t_ref, o_ref):
    x = x_ref[...].astype(jnp.float32)
    o_ref[...] = jnp.maximum(x * s_ref[...] + t_ref[...], 0.0).astype(o_ref.dtype)


def pallas_bn_relu(x2d, scale, shift):
    """x2d: (M, C) bf16; fused eval-BN + ReLU, large row tiles."""
    M, C = x2d.shape
    tm = min(1024, _round_up(M, 8))
    Mp = _round_up(M, tm)
    x_p = _pad2(x2d.astype(jnp.bfloat16), Mp, C)
    out = pl.pallas_call(
        _bn_relu_kernel,
        out_shape=jax.ShapeDtypeStruct((Mp, C), jnp.bfloat16),
        grid=(Mp // tm,),
        in_specs=[
            pl.BlockSpec((tm, C), lambda i: (i, 0)),
            pl.BlockSpec((1, C), lambda i: (0, 0)),
            pl.BlockSpec((1, C), lambda i: (0, 0)),
        ],
        out_specs=pl.BlockSpec((tm, C), lambda i: (i, 0)),
        compiler_params=pltpu.CompilerParams(
            dimension_semantics=("parallel",),
            vmem_limit_bytes=_VMEM_LIMIT),
    )(x_p, scale.reshape(1, C).astype(jnp.float32),
      shift.reshape(1, C).astype(jnp.float32))
    return out[:M]


def _pool_kernel(x_ref, s_ref, t_ref, o_ref, *, op, affine):
    x = x_ref[...].astype(jnp.float32)                     # (KK, tm, C)
    if affine:  # fused BN + ReLU before the window reduction
        x = jnp.maximum(x * s_ref[...][None] + t_ref[...][None], 0.0)
    if op == "max":
        r = jnp.max(x, axis=0)
    else:
        r = jnp.mean(x, axis=0)
    o_ref[...] = r.astype(o_ref.dtype)


def pallas_reduce_windows(stack, op, scale=None, shift=None):
    """stack: (KK, M, C) -> reduce over KK (max/mean), tiled over M, optional
    fused per-channel BN+ReLU applied element-wise before the reduction."""
    KK, M, C = stack.shape
    affine = scale is not None
    if scale is None:
        scale = jnp.ones((C,), jnp.float32)
        shift = jnp.zeros((C,), jnp.float32)
    tm = min(512, _round_up(M, 8))
    Mp = _round_up(M, tm)
    if Mp != M:
        stack = jnp.pad(stack.astype(jnp.bfloat16), ((0, 0), (0, Mp - M), (0, 0)))
    else:
        stack = stack.astype(jnp.bfloat16)
    out = pl.pallas_call(
        functools.partial(_pool_kernel, op=op, affine=affine),
        out_shape=jax.ShapeDtypeStruct((Mp, C), jnp.bfloat16),
        grid=(Mp // tm,),
        in_specs=[
            pl.BlockSpec((KK, tm, C), lambda i: (0, i, 0)),
            pl.BlockSpec((1, C), lambda i: (0, 0)),
            pl.BlockSpec((1, C), lambda i: (0, 0)),
        ],
        out_specs=pl.BlockSpec((tm, C), lambda i: (i, 0)),
        compiler_params=pltpu.CompilerParams(
            dimension_semantics=("parallel",),
            vmem_limit_bytes=_VMEM_LIMIT),
    )(stack, scale.reshape(1, C).astype(jnp.float32),
      shift.reshape(1, C).astype(jnp.float32))
    return out[:M]


# --------------------------------------------------------------------------
# Glue (layout / patch extraction / BN folding)
# --------------------------------------------------------------------------
def _im2col(x, kh, kw, stride, padding):
    N, H, W, C = x.shape
    xp = jnp.pad(x, ((0, 0), (padding, padding), (padding, padding), (0, 0)))
    Ho = (H + 2 * padding - kh) // stride + 1
    Wo = (W + 2 * padding - kw) // stride + 1
    cols = []
    for i in range(kh):
        for j in range(kw):
            cols.append(xp[:, i:i + stride * (Ho - 1) + 1:stride,
                           j:j + stride * (Wo - 1) + 1:stride, :])
    patches = jnp.concatenate(cols, axis=-1)               # bf16 (N,Ho,Wo,kh*kw*C)
    return patches.reshape(N * Ho * Wo, kh * kw * C), (N, Ho, Wo)


def conv2d(x, w, stride=1, padding=0, out_scale=None, out_shift=None, relu=False):
    """x: NHWC (bf16), w: (kh, kw, Cin, Cout), no bias; optional fused epilogue."""
    kh, kw, cin, cout = w.shape
    patches, (N, Ho, Wo) = _im2col(x.astype(jnp.bfloat16), kh, kw, stride, padding)
    out = pallas_matmul(patches, w.reshape(kh * kw * cin, cout),
                        out_scale=out_scale, out_shift=out_shift, relu=relu)
    return out.reshape(N, Ho, Wo, cout)


def _bn_scale_shift(bn, eps=1e-5):
    scale = bn["gamma"] * jax.lax.rsqrt(bn["var"] + eps)
    shift = bn["beta"] - bn["mean"] * scale
    return scale, shift


def bn_relu(x, bn):
    N, H, W, C = x.shape
    s, t = _bn_scale_shift(bn)
    return pallas_bn_relu(x.reshape(-1, C), s, t).reshape(N, H, W, C)


def pool2d(x, k, stride, padding, op, scale=None, shift=None):
    """Window pooling via shifted strided views + tiled Pallas reduction.
    For 2x2/s2 the views are a permutation (no byte amplification)."""
    N, H, W, C = x.shape
    pad_value = float(jnp.finfo(x.dtype).min) if op == "max" else 0.0
    xp = jnp.pad(x, ((0, 0), (padding, padding), (padding, padding), (0, 0)),
                 constant_values=pad_value)
    Ho = (H + 2 * padding - k) // stride + 1
    Wo = (W + 2 * padding - k) // stride + 1
    views = []
    for i in range(k):
        for j in range(k):
            v = xp[:, i:i + stride * (Ho - 1) + 1:stride,
                   j:j + stride * (Wo - 1) + 1:stride, :]
            views.append(v.reshape(N * Ho * Wo, C))
    stack = jnp.stack(views, axis=0)                        # (k*k, N*Ho*Wo, C)
    out = pallas_reduce_windows(stack, op, scale=scale, shift=shift)
    return out.reshape(N, Ho, Wo, C)


# --------------------------------------------------------------------------
# Parameters (deterministic in-script init, mirrors _initialize_weights)
# --------------------------------------------------------------------------
def _bn_params(c):
    return dict(gamma=jnp.ones((c,), jnp.float32),
                beta=jnp.zeros((c,), jnp.float32),
                mean=jnp.zeros((c,), jnp.float32),
                var=jnp.ones((c,), jnp.float32))


def _kaiming_conv(key, kh, kw, cin, cout):
    fan_out = kh * kw * cout
    std = math.sqrt(2.0 / fan_out)
    return std * jax.random.normal(key, (kh, kw, cin, cout), jnp.float32)


def init_params(key, growth=32, num_blocks=(1, 1, 1, 1), reduction=0.5,
                num_classes=10):
    keys = iter(jax.random.split(key, 32))
    p = {}
    c = 2 * growth
    p["conv1_w"] = _kaiming_conv(next(keys), 7, 7, 3, c)
    p["bn1"] = _bn_params(c)
    p["dense"], p["trans"] = [], []
    for bi, nb in enumerate(num_blocks):
        layers = []
        for _ in range(nb):
            layers.append(dict(bn=_bn_params(c),
                               conv_w=_kaiming_conv(next(keys), 3, 3, c, growth)))
            c += growth
        p["dense"].append(layers)
        if bi < 3:
            cout = int(c * reduction)
            p["trans"].append(dict(bn=_bn_params(c),
                                   conv_w=_kaiming_conv(next(keys), 1, 1, c, cout)))
            c = cout
    p["bn_final"] = _bn_params(c)
    p["fc_w"] = 0.01 * jax.random.normal(next(keys), (c, num_classes), jnp.float32)
    p["fc_b"] = jnp.zeros((num_classes,), jnp.float32)
    return p


# --------------------------------------------------------------------------
# Forward pass
# --------------------------------------------------------------------------
def dense_block(x, layers):
    # TODO(synk): write each layer's growth-channel output into a preallocated
    #             channel slab (out_specs offset / input_output_aliases) to
    #             avoid the O(L^2) concat copies for deep blocks.
    for lp in layers:
        a = bn_relu(x, lp["bn"])                            # BN->ReLU
        f = conv2d(a, lp["conv_w"], stride=1, padding=1)    # 3x3 conv(growth)
        x = jnp.concatenate([x, f], axis=-1)
    return x


def transition(x, tp):
    # BN+ReLU fused into the 2x2 avg-pool kernel; the 1x1 conv is applied AFTER
    # the pool (exact: a 1x1 conv commutes with average pooling), so the matmul
    # runs on 4x fewer rows than the reference op order.
    s, t = _bn_scale_shift(tp["bn"])
    h = pool2d(x, 2, 2, 0, "mean", scale=s, shift=t)
    return conv2d(h, tp["conv_w"], stride=1, padding=0)


def densenet_forward(x_nchw, p):
    x = jnp.transpose(x_nchw, (0, 2, 3, 1)).astype(jnp.bfloat16)  # NCHW -> NHWC
    # stem: conv7x7(s2,p3) with BN1+ReLU fused as the matmul epilogue
    s1, t1 = _bn_scale_shift(p["bn1"])
    h = conv2d(x, p["conv1_w"], stride=2, padding=3,
               out_scale=s1, out_shift=t1, relu=True)
    h = pool2d(h, 3, 2, 1, "max")                           # maxpool 3x3 s2 p1
    for bi in range(4):
        h = dense_block(h, p["dense"][bi])
        if bi < 3:
            h = transition(h, p["trans"][bi])
    # AdaptiveAvgPool2d((1,1)) with the final BN+ReLU fused into the reduction
    sF, tF = _bn_scale_shift(p["bn_final"])
    N, H, W, C = h.shape
    stack = h.reshape(N, H * W, C).transpose(1, 0, 2)       # (H*W, N, C)
    pooled = pallas_reduce_windows(stack, "mean", scale=sF, shift=tF)  # (N, C)
    # FC: bias fused as the matmul epilogue shift
    return pallas_matmul(pooled, p["fc_w"], out_shift=p["fc_b"],
                         out_dtype=jnp.float32)


# --------------------------------------------------------------------------
if __name__ == "__main__":
    key = jax.random.PRNGKey(0)
    pkey, xkey = jax.random.split(key)
    params = init_params(pkey, growth=32, num_blocks=(1, 1, 1, 1),
                         reduction=0.5, num_classes=10)
    x = jax.random.normal(xkey, (2, 3, 32, 32), jnp.float32)  # NCHW like PyTorch
    fwd = jax.jit(densenet_forward)
    out = jax.block_until_ready(fwd(x, params))
    assert out.shape == (2, 10), out.shape
    assert bool(jnp.all(jnp.isfinite(out)))
    print("KERNEL_OK")
</pallas_src>

<mosaic_0001>
module attributes {stable_mosaic.version = 11 : i64} {
  func.func @_mm_kernel(%arg0: i32, %arg1: i32, %arg2: i32, %arg3: memref<512x256xbf16, #tpu.memory_space<vmem>>, %arg4: memref<256x128xbf16, #tpu.memory_space<vmem>>, %arg5: memref<1x128xf32, #tpu.memory_space<vmem>>, %arg6: memref<1x128xf32, #tpu.memory_space<vmem>>, %arg7: memref<512x128xbf16, #tpu.memory_space<vmem>>, %arg8: memref<512x128xf32, #tpu.memory_space<vmem>>) attributes {dimension_semantics = [#tpu.dimension_semantics<parallel>, #tpu.dimension_semantics<parallel>, #tpu.dimension_semantics<arbitrary>], iteration_bounds = array<i64: 1, 1, 1>, scalar_prefetch = 0 : i64, scratch_operands = 1 : i64, tpu.core_type = #tpu.core_type<tc>, window_params = [{transform_indices = @transform_0, window_bounds = array<i64: 512, 256>}, {transform_indices = @transform_1, window_bounds = array<i64: 256, 128>}, {transform_indices = @transform_2, window_bounds = array<i64: 1, 128>}, {transform_indices = @transform_3, window_bounds = array<i64: 1, 128>}, {transform_indices = @transform_4, window_bounds = array<i64: 512, 128>}]} {
    %c0_i32 = arith.constant 0 : i32
    %0 = arith.cmpi eq, %arg2, %c0_i32 : i32
    %1 = arith.extui %0 : i1 to i32
    %c0_i32_0 = arith.constant 0 : i32
    %2 = arith.cmpi ne, %1, %c0_i32_0 : i32
    scf.if %2 {
      %cst_10 = arith.constant 0.000000e+00 : f32
      %12 = vector.broadcast %cst_10 : f32 to vector<512x128xf32>
      %c0_11 = arith.constant 0 : index
      %c0_12 = arith.constant 0 : index
      %13 = vector.load %arg8[%c0_11, %c0_12] : memref<512x128xf32, #tpu.memory_space<vmem>>, vector<512x128xf32>
      tpu.vector_store %arg8[%c0_11, %c0_12], %12 {strides = array<i32>} : memref<512x128xf32, #tpu.memory_space<vmem>>, vector<512x128xf32>,
    } else {
    }
    %c0 = arith.constant 0 : index
    %c0_1 = arith.constant 0 : index
    %3 = vector.load %arg8[%c0, %c0_1] : memref<512x128xf32, #tpu.memory_space<vmem>>, vector<512x128xf32>
    %c0_2 = arith.constant 0 : index
    %c0_3 = arith.constant 0 : index
    %4 = vector.load %arg3[%c0_2, %c0_3] : memref<512x256xbf16, #tpu.memory_space<vmem>>, vector<512x256xbf16>
    %c0_4 = arith.constant 0 : index
    %c0_5 = arith.constant 0 : index
    %5 = vector.load %arg4[%c0_4, %c0_5] : memref<256x128xbf16, #tpu.memory_space<vmem>>, vector<256x128xbf16>
    %cst = arith.constant dense<0.000000e+00> : vector<512x128xf32>
    %6 = tpu.matmul %4, %5, %cst {dimension_numbers = #tpu.dot_dimension_numbers<[1], [0], [0], [1], [0, 0, 1, 1], [], []>} : vector<512x256xbf16>, vector<256x128xbf16>, vector<512x128xf32> -> vector<512x128xf32>
    %7 = arith.addf %3, %6 : vector<512x128xf32>
    %c0_6 = arith.constant 0 : index
    %c0_7 = arith.constant 0 : index
    %8 = vector.load %arg8[%c0_6, %c0_7] : memref<512x128xf32, #tpu.memory_space<vmem>>, vector<512x128xf32>
    tpu.vector_store %arg8[%c0_6, %c0_7], %7 {strides = array<i32>} : memref<512x128xf32, #tpu.memory_space<vmem>>, vector<512x128xf32>,
    %c0_i32_8 = arith.constant 0 : i32
    %9 = arith.cmpi eq, %arg2, %c0_i32_8 : i32
    %10 = arith.extui %9 : i1 to i32
    %c0_i32_9 = arith.constant 0 : i32
    %11 = arith.cmpi ne, %10, %c0_i32_9 : i32
    scf.if %11 {
      %c0_10 = arith.constant 0 : index
      %c0_11 = arith.constant 0 : index
      %12 = vector.load %arg8[%c0_10, %c0_11] : memref<512x128xf32, #tpu.memory_space<vmem>>, vector<512x128xf32>
      %c0_12 = arith.constant 0 : index
      %c0_13 = arith.constant 0 : index
      %13 = vector.load %arg5[%c0_12, %c0_13] : memref<1x128xf32, #tpu.memory_space<vmem>>, vector<1x128xf32>
      %14 = vector.broadcast %13 : vector<1x128xf32> to vector<512x128xf32>
      %15 = arith.mulf %12, %14 : vector<512x128xf32>
      %c0_14 = arith.constant 0 : index
      %c0_15 = arith.constant 0 : index
      %16 = vector.load %arg6[%c0_14, %c0_15] : memref<1x128xf32, #tpu.memory_space<vmem>>, vector<1x128xf32>
      %17 = vector.broadcast %16 : vector<1x128xf32> to vector<512x128xf32>
      %18 = arith.addf %15, %17 : vector<512x128xf32>
      %cst_16 = arith.constant 0.000000e+00 : f32
      %19 = vector.broadcast %cst_16 : f32 to vector<512x128xf32>
      %20 = arith.maximumf %18, %19 : vector<512x128xf32>
      %21 = arith.truncf %20 : vector<512x128xf32> to vector<512x128xbf16>
      %c0_17 = arith.constant 0 : index
      %c0_18 = arith.constant 0 : index
      %22 = vector.load %arg7[%c0_17, %c0_18] : memref<512x128xbf16, #tpu.memory_space<vmem>>, vector<512x128xbf16>
      tpu.vector_store %arg7[%c0_17, %c0_18], %21 {strides = array<i32>} : memref<512x128xbf16, #tpu.memory_space<vmem>>, vector<512x128xbf16>,
    } else {
    }
    return
  }
  func.func @transform_0(%arg0: i32, %arg1: i32, %arg2: i32) -> (i32, i32) {
    %c0_i32 = arith.constant 0 : i32
    return %arg0, %arg2 : i32, i32
  }
  func.func @transform_1(%arg0: i32, %arg1: i32, %arg2: i32) -> (i32, i32) {
    %c0_i32 = arith.constant 0 : i32
    return %arg2, %arg1 : i32, i32
  }
  func.func @transform_2(%arg0: i32, %arg1: i32, %arg2: i32) -> (i32, i32) {
    %c0_i32 = arith.constant 0 : i32
    %c0_i32_0 = arith.constant 0 : i32
    return %c0_i32, %arg1 : i32, i32
  }
  func.func @transform_3(%arg0: i32, %arg1: i32, %arg2: i32) -> (i32, i32) {
    %c0_i32 = arith.constant 0 : i32
    %c0_i32_0 = arith.constant 0 : i32
    return %c0_i32, %arg1 : i32, i32
  }
  func.func @transform_4(%arg0: i32, %arg1: i32, %arg2: i32) -> (i32, i32) {
    %c0_i32 = arith.constant 0 : i32
    return %arg0, %arg1 : i32, i32
  }
}

module attributes {stable_mosaic.version = 11 : i64} {
  func.func @_bn_relu_kernel(%arg0: i32, %arg1: memref<128x64xbf16, #tpu.memory_space<vmem>>, %arg2: memref<1x64xf32, #tpu.memory_space<vmem>>, %arg3: memref<1x64xf32, #tpu.memory_space<vmem>>, %arg4: memref<128x64xbf16, #tpu.memory_space<vmem>>) attributes {dimension_semantics = [#tpu.dimension_semantics<parallel>], iteration_bounds = array<i64: 1>, scalar_prefetch = 0 : i64, scratch_operands = 0 : i64, tpu.core_type = #tpu.core_type<tc>, window_params = [{transform_indices = @transform_0, window_bounds = array<i64: 128, 64>}, {pipeline_mode = #tpu.pipeline_mode<synchronous>, transform_indices = @transform_1, window_bounds = array<i64: 1, 64>}, {pipeline_mode = #tpu.pipeline_mode<synchronous>, transform_indices = @transform_2, window_bounds = array<i64: 1, 64>}, {transform_indices = @transform_3, window_bounds = array<i64: 128, 64>}]} {
    %c0 = arith.constant 0 : index
    %c0_0 = arith.constant 0 : index
    %0 = vector.load %arg1[%c0, %c0_0] : memref<128x64xbf16, #tpu.memory_space<vmem>>, vector<128x64xbf16>
    %1 = arith.extf %0 : vector<128x64xbf16> to vector<128x64xf32>
    %c0_1 = arith.constant 0 : index
    %c0_2 = arith.constant 0 : index
    %2 = vector.load %arg2[%c0_1, %c0_2] : memref<1x64xf32, #tpu.memory_space<vmem>>, vector<1x64xf32>
    %3 = vector.broadcast %2 : vector<1x64xf32> to vector<128x64xf32>
    %4 = arith.mulf %1, %3 : vector<128x64xf32>
    %c0_3 = arith.constant 0 : index
    %c0_4 = arith.constant 0 : index
    %5 = vector.load %arg3[%c0_3, %c0_4] : memref<1x64xf32, #tpu.memory_space<vmem>>, vector<1x64xf32>
    %6 = vector.broadcast %5 : vector<1x64xf32> to vector<128x64xf32>
    %7 = arith.addf %4, %6 : vector<128x64xf32>
    %cst = arith.constant 0.000000e+00 : f32
    %8 = vector.broadcast %cst : f32 to vector<128x64xf32>
    %9 = arith.maximumf %7, %8 : vector<128x64xf32>
    %10 = arith.truncf %9 : vector<128x64xf32> to vector<128x64xbf16>
    %c0_5 = arith.constant 0 : index
    %c0_6 = arith.constant 0 : index
    %11 = vector.load %arg4[%c0_5, %c0_6] : memref<128x64xbf16, #tpu.memory_space<vmem>>, vector<128x64xbf16>
    tpu.vector_store %arg4[%c0_5, %c0_6], %10 {strides = array<i32>} : memref<128x64xbf16, #tpu.memory_space<vmem>>, vector<128x64xbf16>,
    return
  }
  func.func @transform_0(%arg0: i32) -> (i32, i32) {
    %c0_i32 = arith.constant 0 : i32
    %c0_i32_0 = arith.constant 0 : i32
    return %arg0, %c0_i32 : i32, i32
  }
  func.func @transform_1(%arg0: i32) -> (i32, i32) {
    %c0_i32 = arith.constant 0 : i32
    %c0_i32_0 = arith.constant 0 : i32
    %c0_i32_1 = arith.constant 0 : i32
    return %c0_i32, %c0_i32_0 : i32, i32
  }
  func.func @transform_2(%arg0: i32) -> (i32, i32) {
    %c0_i32 = arith.constant 0 : i32
    %c0_i32_0 = arith.constant 0 : i32
    %c0_i32_1 = arith.constant 0 : i32
    return %c0_i32, %c0_i32_0 : i32, i32
  }
  func.func @transform_3(%arg0: i32) -> (i32, i32) {
    %c0_i32 = arith.constant 0 : i32
    %c0_i32_0 = arith.constant 0 : i32
    return %arg0, %c0_i32 : i32, i32
  }
}

module attributes {stable_mosaic.version = 11 : i64} {
  func.func @_pool_kernel(%arg0: i32, %arg1: memref<9x128x64xbf16, #tpu.memory_space<vmem>>, %arg2: memref<1x64xf32, #tpu.memory_space<vmem>>, %arg3: memref<1x64xf32, #tpu.memory_space<vmem>>, %arg4: memref<128x64xbf16, #tpu.memory_space<vmem>>) attributes {dimension_semantics = [#tpu.dimension_semantics<parallel>], iteration_bounds = array<i64: 1>, scalar_prefetch = 0 : i64, scratch_operands = 0 : i64, tpu.core_type = #tpu.core_type<tc>, window_params = [{transform_indices = @transform_0, window_bounds = array<i64: 9, 128, 64>}, {pipeline_mode = #tpu.pipeline_mode<synchronous>, transform_indices = @transform_1, window_bounds = array<i64: 1, 64>}, {pipeline_mode = #tpu.pipeline_mode<synchronous>, transform_indices = @transform_2, window_bounds = array<i64: 1, 64>}, {transform_indices = @transform_3, window_bounds = array<i64: 128, 64>}]} {
    %c0 = arith.constant 0 : index
    %c0_0 = arith.constant 0 : index
    %c0_1 = arith.constant 0 : index
    %0 = vector.load %arg1[%c0, %c0_0, %c0_1] : memref<9x128x64xbf16, #tpu.memory_space<vmem>>, vector<9x128x64xbf16>
    %1 = arith.extf %0 : vector<9x128x64xbf16> to vector<9x128x64xf32>
    %cst = arith.constant dense<0xFF800000> : vector<128x64xf32>
    %2 = vector.multi_reduction <maximumf>, %1, %cst [0] : vector<9x128x64xf32> to vector<128x64xf32>
    %3 = arith.truncf %2 : vector<128x64xf32> to vector<128x64xbf16>
    %c0_2 = arith.constant 0 : index
    %c0_3 = arith.constant 0 : index
    %4 = vector.load %arg4[%c0_2, %c0_3] : memref<128x64xbf16, #tpu.memory_space<vmem>>, vector<128x64xbf16>
    tpu.vector_store %arg4[%c0_2, %c0_3], %3 {strides = array<i32>} : memref<128x64xbf16, #tpu.memory_space<vmem>>, vector<128x64xbf16>,
    return
  }
  func.func @transform_0(%arg0: i32) -> (i32, i32, i32) {
    %c0_i32 = arith.constant 0 : i32
    %c0_i32_0 = arith.constant 0 : i32
    %c0_i32_1 = arith.constant 0 : i32
    return %c0_i32, %arg0, %c0_i32_0 : i32, i32, i32
  }
  func.func @transform_1(%arg0: i32) -> (i32, i32) {
    %c0_i32 = arith.constant 0 : i32
    %c0_i32_0 = arith.constant 0 : i32
    %c0_i32_1 = arith.constant 0 : i32
    return %c0_i32, %c0_i32_0 : i32, i32
  }
  func.func @transform_2(%arg0: i32) -> (i32, i32) {
    %c0_i32 = arith.constant 0 : i32
    %c0_i32_0 = arith.constant 0 : i32
    %c0_i32_1 = arith.constant 0 : i32
    return %c0_i32, %c0_i32_0 : i32, i32
  }
  func.func @transform_3(%arg0: i32) -> (i32, i32) {
    %c0_i32 = arith.constant 0 : i32
    %c0_i32_0 = arith.constant 0 : i32
    return %arg0, %c0_i32 : i32, i32
  }
}

module attributes {stable_mosaic.version = 11 : i64} {
  func.func @_mm_kernel(%arg0: i32, %arg1: i32, %arg2: i32, %arg3: memref<128x128xbf16, #tpu.memory_space<vmem>>, %arg4: memref<128x128xbf16, #tpu.memory_space<vmem>>, %arg5: memref<1x128xf32, #tpu.memory_space<vmem>>, %arg6: memref<1x128xf32, #tpu.memory_space<vmem>>, %arg7: memref<128x128xbf16, #tpu.memory_space<vmem>>, %arg8: memref<128x128xf32, #tpu.memory_space<vmem>>) attributes {dimension_semantics = [#tpu.dimension_semantics<parallel>, #tpu.dimension_semantics<parallel>, #tpu.dimension_semantics<arbitrary>], iteration_bounds = array<i64: 1, 1, 5>, scalar_prefetch = 0 : i64, scratch_operands = 1 : i64, tpu.core_type = #tpu.core_type<tc>, window_params = [{transform_indices = @transform_0, window_bounds = array<i64: 128, 128>}, {transform_indices = @transform_1, window_bounds = array<i64: 128, 128>}, {transform_indices = @transform_2, window_bounds = array<i64: 1, 128>}, {transform_indices = @transform_3, window_bounds = array<i64: 1, 128>}, {transform_indices = @transform_4, window_bounds = array<i64: 128, 128>}]} {
    %c0_i32 = arith.constant 0 : i32
    %0 = arith.cmpi eq, %arg2, %c0_i32 : i32
    %1 = arith.extui %0 : i1 to i32
    %c0_i32_0 = arith.constant 0 : i32
    %2 = arith.cmpi ne, %1, %c0_i32_0 : i32
    scf.if %2 {
      %cst_9 = arith.constant 0.000000e+00 : f32
      %12 = vector.broadcast %cst_9 : f32 to vector<128x128xf32>
      %c0_10 = arith.constant 0 : index
      %c0_11 = arith.constant 0 : index
      %13 = vector.load %arg8[%c0_10, %c0_11] : memref<128x128xf32, #tpu.memory_space<vmem>>, vector<128x128xf32>
      tpu.vector_store %arg8[%c0_10, %c0_11], %12 {strides = array<i32>} : memref<128x128xf32, #tpu.memory_space<vmem>>, vector<128x128xf32>,
    } else {
    }
    %c0 = arith.constant 0 : index
    %c0_1 = arith.constant 0 : index
    %3 = vector.load %arg8[%c0, %c0_1] : memref<128x128xf32, #tpu.memory_space<vmem>>, vector<128x128xf32>
    %c0_2 = arith.constant 0 : index
    %c0_3 = arith.constant 0 : index
    %4 = vector.load %arg3[%c0_2, %c0_3] : memref<128x128xbf16, #tpu.memory_space<vmem>>, vector<128x128xbf16>
    %c0_4 = arith.constant 0 : index
    %c0_5 = arith.constant 0 : index
    %5 = vector.load %arg4[%c0_4, %c0_5] : memref<128x128xbf16, #tpu.memory_space<vmem>>, vector<128x128xbf16>
    %cst = arith.constant dense<0.000000e+00> : vector<128x128xf32>
    %6 = tpu.matmul %4, %5, %cst {dimension_numbers = #tpu.dot_dimension_numbers<[1], [0], [0], [1], [0, 0, 1, 1], [], []>} : vector<128x128xbf16>, vector<128x128xbf16>, vector<128x128xf32> -> vector<128x128xf32>
    %7 = arith.addf %3, %6 : vector<128x128xf32>
    %c0_6 = arith.constant 0 : index
    %c0_7 = arith.constant 0 : index
    %8 = vector.load %arg8[%c0_6, %c0_7] : memref<128x128xf32, #tpu.memory_space<vmem>>, vector<128x128xf32>
    tpu.vector_store %arg8[%c0_6, %c0_7], %7 {strides = array<i32>} : memref<128x128xf32, #tpu.memory_space<vmem>>, vector<128x128xf32>,
    %c4_i32 = arith.constant 4 : i32
    %9 = arith.cmpi eq, %arg2, %c4_i32 : i32
    %10 = arith.extui %9 : i1 to i32
    %c0_i32_8 = arith.constant 0 : i32
    %11 = arith.cmpi ne, %10, %c0_i32_8 : i32
    scf.if %11 {
      %c0_9 = arith.constant 0 : index
      %c0_10 = arith.constant 0 : index
      %12 = vector.load %arg8[%c0_9, %c0_10] : memref<128x128xf32, #tpu.memory_space<vmem>>, vector<128x128xf32>
      %c0_11 = arith.constant 0 : index
      %c0_12 = arith.constant 0 : index
      %13 = vector.load %arg5[%c0_11, %c0_12] : memref<1x128xf32, #tpu.memory_space<vmem>>, vector<1x128xf32>
      %14 = vector.broadcast %13 : vector<1x128xf32> to vector<128x128xf32>
      %15 = arith.mulf %12, %14 : vector<128x128xf32>
      %c0_13 = arith.constant 0 : index
      %c0_14 = arith.constant 0 : index
      %16 = vector.load %arg6[%c0_13, %c0_14] : memref<1x128xf32, #tpu.memory_space<vmem>>, vector<1x128xf32>
      %17 = vector.broadcast %16 : vector<1x128xf32> to vector<128x128xf32>
      %18 = arith.addf %15, %17 : vector<128x128xf32>
      %19 = arith.truncf %18 : vector<128x128xf32> to vector<128x128xbf16>
      %c0_15 = arith.constant 0 : index
      %c0_16 = arith.constant 0 : index
      %20 = vector.load %arg7[%c0_15, %c0_16] : memref<128x128xbf16, #tpu.memory_space<vmem>>, vector<128x128xbf16>
      tpu.vector_store %arg7[%c0_15, %c0_16], %19 {strides = array<i32>} : memref<128x128xbf16, #tpu.memory_space<vmem>>, vector<128x128xbf16>,
    } else {
    }
    return
  }
  func.func @transform_0(%arg0: i32, %arg1: i32, %arg2: i32) -> (i32, i32) {
    %c0_i32 = arith.constant 0 : i32
    return %arg0, %arg2 : i32, i32
  }
  func.func @transform_1(%arg0: i32, %arg1: i32, %arg2: i32) -> (i32, i32) {
    %c0_i32 = arith.constant 0 : i32
    return %arg2, %arg1 : i32, i32
  }
  func.func @transform_2(%arg0: i32, %arg1: i32, %arg2: i32) -> (i32, i32) {
    %c0_i32 = arith.constant 0 : i32
    %c0_i32_0 = arith.constant 0 : i32
    return %c0_i32, %arg1 : i32, i32
  }
  func.func @transform_3(%arg0: i32, %arg1: i32, %arg2: i32) -> (i32, i32) {
    %c0_i32 = arith.constant 0 : i32
    %c0_i32_0 = arith.constant 0 : i32
    return %c0_i32, %arg1 : i32, i32
  }
  func.func @transform_4(%arg0: i32, %arg1: i32, %arg2: i32) -> (i32, i32) {
    %c0_i32 = arith.constant 0 : i32
    return %arg0, %arg1 : i32, i32
  }
}

module attributes {stable_mosaic.version = 11 : i64} {
  func.func @_pool_kernel(%arg0: i32, %arg1: memref<4x32x96xbf16, #tpu.memory_space<vmem>>, %arg2: memref<1x96xf32, #tpu.memory_space<vmem>>, %arg3: memref<1x96xf32, #tpu.memory_space<vmem>>, %arg4: memref<32x96xbf16, #tpu.memory_space<vmem>>) attributes {dimension_semantics = [#tpu.dimension_semantics<parallel>], iteration_bounds = array<i64: 1>, scalar_prefetch = 0 : i64, scratch_operands = 0 : i64, tpu.core_type = #tpu.core_type<tc>, window_params = [{transform_indices = @transform_0, window_bounds = array<i64: 4, 32, 96>}, {pipeline_mode = #tpu.pipeline_mode<synchronous>, transform_indices = @transform_1, window_bounds = array<i64: 1, 96>}, {pipeline_mode = #tpu.pipeline_mode<synchronous>, transform_indices = @transform_2, window_bounds = array<i64: 1, 96>}, {transform_indices = @transform_3, window_bounds = array<i64: 32, 96>}]} {
    %c0 = arith.constant 0 : index
    %c0_0 = arith.constant 0 : index
    %c0_1 = arith.constant 0 : index
    %0 = vector.load %arg1[%c0, %c0_0, %c0_1] : memref<4x32x96xbf16, #tpu.memory_space<vmem>>, vector<4x32x96xbf16>
    %1 = arith.extf %0 : vector<4x32x96xbf16> to vector<4x32x96xf32>
    %c0_2 = arith.constant 0 : index
    %c0_3 = arith.constant 0 : index
    %2 = vector.load %arg2[%c0_2, %c0_3] : memref<1x96xf32, #tpu.memory_space<vmem>>, vector<1x96xf32>
    %3 = vector.shape_cast %2 : vector<1x96xf32> to vector<1x1x96xf32>
    %4 = vector.broadcast %3 : vector<1x1x96xf32> to vector<4x32x96xf32>
    %5 = arith.mulf %1, %4 : vector<4x32x96xf32>
    %c0_4 = arith.constant 0 : index
    %c0_5 = arith.constant 0 : index
    %6 = vector.load %arg3[%c0_4, %c0_5] : memref<1x96xf32, #tpu.memory_space<vmem>>, vector<1x96xf32>
    %7 = vector.shape_cast %6 : vector<1x96xf32> to vector<1x1x96xf32>
    %8 = vector.broadcast %7 : vector<1x1x96xf32> to vector<4x32x96xf32>
    %9 = arith.addf %5, %8 : vector<4x32x96xf32>
    %cst = arith.constant 0.000000e+00 : f32
    %10 = vector.broadcast %cst : f32 to vector<4x32x96xf32>
    %11 = arith.maximumf %9, %10 : vector<4x32x96xf32>
    %cst_6 = arith.constant dense<0.000000e+00> : vector<32x96xf32>
    %12 = vector.multi_reduction <add>, %11, %cst_6 [0] : vector<4x32x96xf32> to vector<32x96xf32>
    %cst_7 = arith.constant 4.000000e+00 : f32
    %13 = vector.broadcast %cst_7 : f32 to vector<32x96xf32>
    %14 = arith.divf %12, %13 : vector<32x96xf32>
    %15 = arith.truncf %14 : vector<32x96xf32> to vector<32x96xbf16>
    %c0_8 = arith.constant 0 : index
    %c0_9 = arith.constant 0 : index
    %16 = vector.load %arg4[%c0_8, %c0_9] : memref<32x96xbf16, #tpu.memory_space<vmem>>, vector<32x96xbf16>
    tpu.vector_store %arg4[%c0_8, %c0_9], %15 {strides = array<i32>} : memref<32x96xbf16, #tpu.memory_space<vmem>>, vector<32x96xbf16>,
    return
  }
  func.func @transform_0(%arg0: i32) -> (i32, i32, i32) {
    %c0_i32 = arith.constant 0 : i32
    %c0_i32_0 = arith.constant 0 : i32
    %c0_i32_1 = arith.constant 0 : i32
    return %c0_i32, %arg0, %c0_i32_0 : i32, i32, i32
  }
  func.func @transform_1(%arg0: i32) -> (i32, i32) {
    %c0_i32 = arith.constant 0 : i32
    %c0_i32_0 = arith.constant 0 : i32
    %c0_i32_1 = arith.constant 0 : i32
    return %c0_i32, %c0_i32_0 : i32, i32
  }
  func.func @transform_2(%arg0: i32) -> (i32, i32) {
    %c0_i32 = arith.constant 0 : i32
    %c0_i32_0 = arith.constant 0 : i32
    %c0_i32_1 = arith.constant 0 : i32
    return %c0_i32, %c0_i32_0 : i32, i32
  }
  func.func @transform_3(%arg0: i32) -> (i32, i32) {
    %c0_i32 = arith.constant 0 : i32
    %c0_i32_0 = arith.constant 0 : i32
    return %arg0, %c0_i32 : i32, i32
  }
}

module attributes {stable_mosaic.version = 11 : i64} {
  func.func @_bn_relu_kernel(%arg0: i32, %arg1: memref<32x48xbf16, #tpu.memory_space<vmem>>, %arg2: memref<1x48xf32, #tpu.memory_space<vmem>>, %arg3: memref<1x48xf32, #tpu.memory_space<vmem>>, %arg4: memref<32x48xbf16, #tpu.memory_space<vmem>>) attributes {dimension_semantics = [#tpu.dimension_semantics<parallel>], iteration_bounds = array<i64: 1>, scalar_prefetch = 0 : i64, scratch_operands = 0 : i64, tpu.core_type = #tpu.core_type<tc>, window_params = [{transform_indices = @transform_0, window_bounds = array<i64: 32, 48>}, {pipeline_mode = #tpu.pipeline_mode<synchronous>, transform_indices = @transform_1, window_bounds = array<i64: 1, 48>}, {pipeline_mode = #tpu.pipeline_mode<synchronous>, transform_indices = @transform_2, window_bounds = array<i64: 1, 48>}, {transform_indices = @transform_3, window_bounds = array<i64: 32, 48>}]} {
    %c0 = arith.constant 0 : index
    %c0_0 = arith.constant 0 : index
    %0 = vector.load %arg1[%c0, %c0_0] : memref<32x48xbf16, #tpu.memory_space<vmem>>, vector<32x48xbf16>
    %1 = arith.extf %0 : vector<32x48xbf16> to vector<32x48xf32>
    %c0_1 = arith.constant 0 : index
    %c0_2 = arith.constant 0 : index
    %2 = vector.load %arg2[%c0_1, %c0_2] : memref<1x48xf32, #tpu.memory_space<vmem>>, vector<1x48xf32>
    %3 = vector.broadcast %2 : vector<1x48xf32> to vector<32x48xf32>
    %4 = arith.mulf %1, %3 : vector<32x48xf32>
    %c0_3 = arith.constant 0 : index
    %c0_4 = arith.constant 0 : index
    %5 = vector.load %arg3[%c0_3, %c0_4] : memref<1x48xf32, #tpu.memory_space<vmem>>, vector<1x48xf32>
    %6 = vector.broadcast %5 : vector<1x48xf32> to vector<32x48xf32>
    %7 = arith.addf %4, %6 : vector<32x48xf32>
    %cst = arith.constant 0.000000e+00 : f32
    %8 = vector.broadcast %cst : f32 to vector<32x48xf32>
    %9 = arith.maximumf %7, %8 : vector<32x48xf32>
    %10 = arith.truncf %9 : vector<32x48xf32> to vector<32x48xbf16>
    %c0_5 = arith.constant 0 : index
    %c0_6 = arith.constant 0 : index
    %11 = vector.load %arg4[%c0_5, %c0_6] : memref<32x48xbf16, #tpu.memory_space<vmem>>, vector<32x48xbf16>
    tpu.vector_store %arg4[%c0_5, %c0_6], %10 {strides = array<i32>} : memref<32x48xbf16, #tpu.memory_space<vmem>>, vector<32x48xbf16>,
    return
  }
  func.func @transform_0(%arg0: i32) -> (i32, i32) {
    %c0_i32 = arith.constant 0 : i32
    %c0_i32_0 = arith.constant 0 : i32
    return %arg0, %c0_i32 : i32, i32
  }
  func.func @transform_1(%arg0: i32) -> (i32, i32) {
    %c0_i32 = arith.constant 0 : i32
    %c0_i32_0 = arith.constant 0 : i32
    %c0_i32_1 = arith.constant 0 : i32
    return %c0_i32, %c0_i32_0 : i32, i32
  }
  func.func @transform_2(%arg0: i32) -> (i32, i32) {
    %c0_i32 = arith.constant 0 : i32
    %c0_i32_0 = arith.constant 0 : i32
    %c0_i32_1 = arith.constant 0 : i32
    return %c0_i32, %c0_i32_0 : i32, i32
  }
  func.func @transform_3(%arg0: i32) -> (i32, i32) {
    %c0_i32 = arith.constant 0 : i32
    %c0_i32_0 = arith.constant 0 : i32
    return %arg0, %c0_i32 : i32, i32
  }
}

module attributes {stable_mosaic.version = 11 : i64} {
  func.func @_mm_kernel(%arg0: i32, %arg1: i32, %arg2: i32, %arg3: memref<32x128xbf16, #tpu.memory_space<vmem>>, %arg4: memref<128x128xbf16, #tpu.memory_space<vmem>>, %arg5: memref<1x128xf32, #tpu.memory_space<vmem>>, %arg6: memref<1x128xf32, #tpu.memory_space<vmem>>, %arg7: memref<32x128xbf16, #tpu.memory_space<vmem>>, %arg8: memref<32x128xf32, #tpu.memory_space<vmem>>) attributes {dimension_semantics = [#tpu.dimension_semantics<parallel>, #tpu.dimension_semantics<parallel>, #tpu.dimension_semantics<arbitrary>], iteration_bounds = array<i64: 1, 1, 1>, scalar_prefetch = 0 : i64, scratch_operands = 1 : i64, tpu.core_type = #tpu.core_type<tc>, window_params = [{transform_indices = @transform_0, window_bounds = array<i64: 32, 128>}, {transform_indices = @transform_1, window_bounds = array<i64: 128, 128>}, {transform_indices = @transform_2, window_bounds = array<i64: 1, 128>}, {transform_indices = @transform_3, window_bounds = array<i64: 1, 128>}, {transform_indices = @transform_4, window_bounds = array<i64: 32, 128>}]} {
    %c0_i32 = arith.constant 0 : i32
    %0 = arith.cmpi eq, %arg2, %c0_i32 : i32
    %1 = arith.extui %0 : i1 to i32
    %c0_i32_0 = arith.constant 0 : i32
    %2 = arith.cmpi ne, %1, %c0_i32_0 : i32
    scf.if %2 {
      %cst_10 = arith.constant 0.000000e+00 : f32
      %12 = vector.broadcast %cst_10 : f32 to vector<32x128xf32>
      %c0_11 = arith.constant 0 : index
      %c0_12 = arith.constant 0 : index
      %13 = vector.load %arg8[%c0_11, %c0_12] : memref<32x128xf32, #tpu.memory_space<vmem>>, vector<32x128xf32>
      tpu.vector_store %arg8[%c0_11, %c0_12], %12 {strides = array<i32>} : memref<32x128xf32, #tpu.memory_space<vmem>>, vector<32x128xf32>,
    } else {
    }
    %c0 = arith.constant 0 : index
    %c0_1 = arith.constant 0 : index
    %3 = vector.load %arg8[%c0, %c0_1] : memref<32x128xf32, #tpu.memory_space<vmem>>, vector<32x128xf32>
    %c0_2 = arith.constant 0 : index
    %c0_3 = arith.constant 0 : index
    %4 = vector.load %arg3[%c0_2, %c0_3] : memref<32x128xbf16, #tpu.memory_space<vmem>>, vector<32x128xbf16>
    %c0_4 = arith.constant 0 : index
    %c0_5 = arith.constant 0 : index
    %5 = vector.load %arg4[%c0_4, %c0_5] : memref<128x128xbf16, #tpu.memory_space<vmem>>, vector<128x128xbf16>
    %cst = arith.constant dense<0.000000e+00> : vector<32x128xf32>
    %6 = tpu.matmul %4, %5, %cst {dimension_numbers = #tpu.dot_dimension_numbers<[1], [0], [0], [1], [0, 0, 1, 1], [], []>} : vector<32x128xbf16>, vector<128x128xbf16>, vector<32x128xf32> -> vector<32x128xf32>
    %7 = arith.addf %3, %6 : vector<32x128xf32>
    %c0_6 = arith.constant 0 : index
    %c0_7 = arith.constant 0 : index
    %8 = vector.load %arg8[%c0_6, %c0_7] : memref<32x128xf32, #tpu.memory_space<vmem>>, vector<32x128xf32>
    tpu.vector_store %arg8[%c0_6, %c0_7], %7 {strides = array<i32>} : memref<32x128xf32, #tpu.memory_space<vmem>>, vector<32x128xf32>,
    %c0_i32_8 = arith.constant 0 : i32
    %9 = arith.cmpi eq, %arg2, %c0_i32_8 : i32
    %10 = arith.extui %9 : i1 to i32
    %c0_i32_9 = arith.constant 0 : i32
    %11 = arith.cmpi ne, %10, %c0_i32_9 : i32
    scf.if %11 {
      %c0_10 = arith.constant 0 : index
      %c0_11 = arith.constant 0 : index
      %12 = vector.load %arg8[%c0_10, %c0_11] : memref<32x128xf32, #tpu.memory_space<vmem>>, vector<32x128xf32>
      %c0_12 = arith.constant 0 : index
      %c0_13 = arith.constant 0 : index
      %13 = vector.load %arg5[%c0_12, %c0_13] : memref<1x128xf32, #tpu.memory_space<vmem>>, vector<1x128xf32>
      %14 = vector.broadcast %13 : vector<1x128xf32> to vector<32x128xf32>
      %15 = arith.mulf %12, %14 : vector<32x128xf32>
      %c0_14 = arith.constant 0 : index
      %c0_15 = arith.constant 0 : index
      %16 = vector.load %arg6[%c0_14, %c0_15] : memref<1x128xf32, #tpu.memory_space<vmem>>, vector<1x128xf32>
      %17 = vector.broadcast %16 : vector<1x128xf32> to vector<32x128xf32>
      %18 = arith.addf %15, %17 : vector<32x128xf32>
      %19 = arith.truncf %18 : vector<32x128xf32> to vector<32x128xbf16>
      %c0_16 = arith.constant 0 : index
      %c0_17 = arith.constant 0 : index
      %20 = vector.load %arg7[%c0_16, %c0_17] : memref<32x128xbf16, #tpu.memory_space<vmem>>, vector<32x128xbf16>
      tpu.vector_store %arg7[%c0_16, %c0_17], %19 {strides = array<i32>} : memref<32x128xbf16, #tpu.memory_space<vmem>>, vector<32x128xbf16>,
    } else {
    }
    return
  }
  func.func @transform_0(%arg0: i32, %arg1: i32, %arg2: i32) -> (i32, i32) {
    %c0_i32 = arith.constant 0 : i32
    return %arg0, %arg2 : i32, i32
  }
  func.func @transform_1(%arg0: i32, %arg1: i32, %arg2: i32) -> (i32, i32) {
    %c0_i32 = arith.constant 0 : i32
    return %arg2, %arg1 : i32, i32
  }
  func.func @transform_2(%arg0: i32, %arg1: i32, %arg2: i32) -> (i32, i32) {
    %c0_i32 = arith.constant 0 : i32
    %c0_i32_0 = arith.constant 0 : i32
    return %c0_i32, %arg1 : i32, i32
  }
  func.func @transform_3(%arg0: i32, %arg1: i32, %arg2: i32) -> (i32, i32) {
    %c0_i32 = arith.constant 0 : i32
    %c0_i32_0 = arith.constant 0 : i32
    return %c0_i32, %arg1 : i32, i32
  }
  func.func @transform_4(%arg0: i32, %arg1: i32, %arg2: i32) -> (i32, i32) {
    %c0_i32 = arith.constant 0 : i32
    return %arg0, %arg1 : i32, i32
  }
}

module attributes {stable_mosaic.version = 11 : i64} {
  func.func @_mm_kernel(%arg0: i32, %arg1: i32, %arg2: i32, %arg3: memref<32x512xbf16, #tpu.memory_space<vmem>>, %arg4: memref<512x128xbf16, #tpu.memory_space<vmem>>, %arg5: memref<1x128xf32, #tpu.memory_space<vmem>>, %arg6: memref<1x128xf32, #tpu.memory_space<vmem>>, %arg7: memref<32x128xbf16, #tpu.memory_space<vmem>>, %arg8: memref<32x128xf32, #tpu.memory_space<vmem>>) attributes {dimension_semantics = [#tpu.dimension_semantics<parallel>, #tpu.dimension_semantics<parallel>, #tpu.dimension_semantics<arbitrary>], iteration_bounds = array<i64: 1, 1, 1>, scalar_prefetch = 0 : i64, scratch_operands = 1 : i64, tpu.core_type = #tpu.core_type<tc>, window_params = [{transform_indices = @transform_0, window_bounds = array<i64: 32, 512>}, {transform_indices = @transform_1, window_bounds = array<i64: 512, 128>}, {transform_indices = @transform_2, window_bounds = array<i64: 1, 128>}, {transform_indices = @transform_3, window_bounds = array<i64: 1, 128>}, {transform_indices = @transform_4, window_bounds = array<i64: 32, 128>}]} {
    %c0_i32 = arith.constant 0 : i32
    %0 = arith.cmpi eq, %arg2, %c0_i32 : i32
    %1 = arith.extui %0 : i1 to i32
    %c0_i32_0 = arith.constant 0 : i32
    %2 = arith.cmpi ne, %1, %c0_i32_0 : i32
    scf.if %2 {
      %cst_10 = arith.constant 0.000000e+00 : f32
      %12 = vector.broadcast %cst_10 : f32 to vector<32x128xf32>
      %c0_11 = arith.constant 0 : index
      %c0_12 = arith.constant 0 : index
      %13 = vector.load %arg8[%c0_11, %c0_12] : memref<32x128xf32, #tpu.memory_space<vmem>>, vector<32x128xf32>
      tpu.vector_store %arg8[%c0_11, %c0_12], %12 {strides = array<i32>} : memref<32x128xf32, #tpu.memory_space<vmem>>, vector<32x128xf32>,
    } else {
    }
    %c0 = arith.constant 0 : index
    %c0_1 = arith.constant 0 : index
    %3 = vector.load %arg8[%c0, %c0_1] : memref<32x128xf32, #tpu.memory_space<vmem>>, vector<32x128xf32>
    %c0_2 = arith.constant 0 : index
    %c0_3 = arith.constant 0 : index
    %4 = vector.load %arg3[%c0_2, %c0_3] : memref<32x512xbf16, #tpu.memory_space<vmem>>, vector<32x512xbf16>
    %c0_4 = arith.constant 0 : index
    %c0_5 = arith.constant 0 : index
    %5 = vector.load %arg4[%c0_4, %c0_5] : memref<512x128xbf16, #tpu.memory_space<vmem>>, vector<512x128xbf16>
    %cst = arith.constant dense<0.000000e+00> : vector<32x128xf32>
    %6 = tpu.matmul %4, %5, %cst {dimension_numbers = #tpu.dot_dimension_numbers<[1], [0], [0], [1], [0, 0, 1, 1], [], []>} : vector<32x512xbf16>, vector<512x128xbf16>, vector<32x128xf32> -> vector<32x128xf32>
    %7 = arith.addf %3, %6 : vector<32x128xf32>
    %c0_6 = arith.constant 0 : index
    %c0_7 = arith.constant 0 : index
    %8 = vector.load %arg8[%c0_6, %c0_7] : memref<32x128xf32, #tpu.memory_space<vmem>>, vector<32x128xf32>
    tpu.vector_store %arg8[%c0_6, %c0_7], %7 {strides = array<i32>} : memref<32x128xf32, #tpu.memory_space<vmem>>, vector<32x128xf32>,
    %c0_i32_8 = arith.constant 0 : i32
    %9 = arith.cmpi eq, %arg2, %c0_i32_8 : i32
    %10 = arith.extui %9 : i1 to i32
    %c0_i32_9 = arith.constant 0 : i32
    %11 = arith.cmpi ne, %10, %c0_i32_9 : i32
    scf.if %11 {
      %c0_10 = arith.constant 0 : index
      %c0_11 = arith.constant 0 : index
      %12 = vector.load %arg8[%c0_10, %c0_11] : memref<32x128xf32, #tpu.memory_space<vmem>>, vector<32x128xf32>
      %c0_12 = arith.constant 0 : index
      %c0_13 = arith.constant 0 : index
      %13 = vector.load %arg5[%c0_12, %c0_13] : memref<1x128xf32, #tpu.memory_space<vmem>>, vector<1x128xf32>
      %14 = vector.broadcast %13 : vector<1x128xf32> to vector<32x128xf32>
      %15 = arith.mulf %12, %14 : vector<32x128xf32>
      %c0_14 = arith.constant 0 : index
      %c0_15 = arith.constant 0 : index
      %16 = vector.load %arg6[%c0_14, %c0_15] : memref<1x128xf32, #tpu.memory_space<vmem>>, vector<1x128xf32>
      %17 = vector.broadcast %16 : vector<1x128xf32> to vector<32x128xf32>
      %18 = arith.addf %15, %17 : vector<32x128xf32>
      %19 = arith.truncf %18 : vector<32x128xf32> to vector<32x128xbf16>
      %c0_16 = arith.constant 0 : index
      %c0_17 = arith.constant 0 : index
      %20 = vector.load %arg7[%c0_16, %c0_17] : memref<32x128xbf16, #tpu.memory_space<vmem>>, vector<32x128xbf16>
      tpu.vector_store %arg7[%c0_16, %c0_17], %19 {strides = array<i32>} : memref<32x128xbf16, #tpu.memory_space<vmem>>, vector<32x128xbf16>,
    } else {
    }
    return
  }
  func.func @transform_0(%arg0: i32, %arg1: i32, %arg2: i32) -> (i32, i32) {
    %c0_i32 = arith.constant 0 : i32
    return %arg0, %arg2 : i32, i32
  }
  func.func @transform_1(%arg0: i32, %arg1: i32, %arg2: i32) -> (i32, i32) {
    %c0_i32 = arith.constant 0 : i32
    return %arg2, %arg1 : i32, i32
  }
  func.func @transform_2(%arg0: i32, %arg1: i32, %arg2: i32) -> (i32, i32) {
    %c0_i32 = arith.constant 0 : i32
    %c0_i32_0 = arith.constant 0 : i32
    return %c0_i32, %arg1 : i32, i32
  }
  func.func @transform_3(%arg0: i32, %arg1: i32, %arg2: i32) -> (i32, i32) {
    %c0_i32 = arith.constant 0 : i32
    %c0_i32_0 = arith.constant 0 : i32
    return %c0_i32, %arg1 : i32, i32
  }
  func.func @transform_4(%arg0: i32, %arg1: i32, %arg2: i32) -> (i32, i32) {
    %c0_i32 = arith.constant 0 : i32
    return %arg0, %arg1 : i32, i32
  }
}

module attributes {stable_mosaic.version = 11 : i64} {
  func.func @_pool_kernel(%arg0: i32, %arg1: memref<4x8x80xbf16, #tpu.memory_space<vmem>>, %arg2: memref<1x80xf32, #tpu.memory_space<vmem>>, %arg3: memref<1x80xf32, #tpu.memory_space<vmem>>, %arg4: memref<8x80xbf16, #tpu.memory_space<vmem>>) attributes {dimension_semantics = [#tpu.dimension_semantics<parallel>], iteration_bounds = array<i64: 1>, scalar_prefetch = 0 : i64, scratch_operands = 0 : i64, tpu.core_type = #tpu.core_type<tc>, window_params = [{transform_indices = @transform_0, window_bounds = array<i64: 4, 8, 80>}, {pipeline_mode = #tpu.pipeline_mode<synchronous>, transform_indices = @transform_1, window_bounds = array<i64: 1, 80>}, {pipeline_mode = #tpu.pipeline_mode<synchronous>, transform_indices = @transform_2, window_bounds = array<i64: 1, 80>}, {transform_indices = @transform_3, window_bounds = array<i64: 8, 80>}]} {
    %c0 = arith.constant 0 : index
    %c0_0 = arith.constant 0 : index
    %c0_1 = arith.constant 0 : index
    %0 = vector.load %arg1[%c0, %c0_0, %c0_1] : memref<4x8x80xbf16, #tpu.memory_space<vmem>>, vector<4x8x80xbf16>
    %1 = arith.extf %0 : vector<4x8x80xbf16> to vector<4x8x80xf32>
    %c0_2 = arith.constant 0 : index
    %c0_3 = arith.constant 0 : index
    %2 = vector.load %arg2[%c0_2, %c0_3] : memref<1x80xf32, #tpu.memory_space<vmem>>, vector<1x80xf32>
    %3 = vector.shape_cast %2 : vector<1x80xf32> to vector<1x1x80xf32>
    %4 = vector.broadcast %3 : vector<1x1x80xf32> to vector<4x8x80xf32>
    %5 = arith.mulf %1, %4 : vector<4x8x80xf32>
    %c0_4 = arith.constant 0 : index
    %c0_5 = arith.constant 0 : index
    %6 = vector.load %arg3[%c0_4, %c0_5] : memref<1x80xf32, #tpu.memory_space<vmem>>, vector<1x80xf32>
    %7 = vector.shape_cast %6 : vector<1x80xf32> to vector<1x1x80xf32>
    %8 = vector.broadcast %7 : vector<1x1x80xf32> to vector<4x8x80xf32>
    %9 = arith.addf %5, %8 : vector<4x8x80xf32>
    %cst = arith.constant 0.000000e+00 : f32
    %10 = vector.broadcast %cst : f32 to vector<4x8x80xf32>
    %11 = arith.maximumf %9, %10 : vector<4x8x80xf32>
    %cst_6 = arith.constant dense<0.000000e+00> : vector<8x80xf32>
    %12 = vector.multi_reduction <add>, %11, %cst_6 [0] : vector<4x8x80xf32> to vector<8x80xf32>
    %cst_7 = arith.constant 4.000000e+00 : f32
    %13 = vector.broadcast %cst_7 : f32 to vector<8x80xf32>
    %14 = arith.divf %12, %13 : vector<8x80xf32>
    %15 = arith.truncf %14 : vector<8x80xf32> to vector<8x80xbf16>
    %c0_8 = arith.constant 0 : index
    %c0_9 = arith.constant 0 : index
    %16 = vector.load %arg4[%c0_8, %c0_9] : memref<8x80xbf16, #tpu.memory_space<vmem>>, vector<8x80xbf16>
    tpu.vector_store %arg4[%c0_8, %c0_9], %15 {strides = array<i32>} : memref<8x80xbf16, #tpu.memory_space<vmem>>, vector<8x80xbf16>,
    return
  }
  func.func @transform_0(%arg0: i32) -> (i32, i32, i32) {
    %c0_i32 = arith.constant 0 : i32
    %c0_i32_0 = arith.constant 0 : i32
    %c0_i32_1 = arith.constant 0 : i32
    return %c0_i32, %arg0, %c0_i32_0 : i32, i32, i32
  }
  func.func @transform_1(%arg0: i32) -> (i32, i32) {
    %c0_i32 = arith.constant 0 : i32
    %c0_i32_0 = arith.constant 0 : i32
    %c0_i32_1 = arith.constant 0 : i32
    return %c0_i32, %c0_i32_0 : i32, i32
  }
  func.func @transform_2(%arg0: i32) -> (i32, i32) {
    %c0_i32 = arith.constant 0 : i32
    %c0_i32_0 = arith.constant 0 : i32
    %c0_i32_1 = arith.constant 0 : i32
    return %c0_i32, %c0_i32_0 : i32, i32
  }
  func.func @transform_3(%arg0: i32) -> (i32, i32) {
    %c0_i32 = arith.constant 0 : i32
    %c0_i32_0 = arith.constant 0 : i32
    return %arg0, %c0_i32 : i32, i32
  }
}

module attributes {stable_mosaic.version = 11 : i64} {
  func.func @_mm_kernel(%arg0: i32, %arg1: i32, %arg2: i32, %arg3: memref<8x128xbf16, #tpu.memory_space<vmem>>, %arg4: memref<128x128xbf16, #tpu.memory_space<vmem>>, %arg5: memref<1x128xf32, #tpu.memory_space<vmem>>, %arg6: memref<1x128xf32, #tpu.memory_space<vmem>>, %arg7: memref<8x128xbf16, #tpu.memory_space<vmem>>, %arg8: memref<8x128xf32, #tpu.memory_space<vmem>>) attributes {dimension_semantics = [#tpu.dimension_semantics<parallel>, #tpu.dimension_semantics<parallel>, #tpu.dimension_semantics<arbitrary>], iteration_bounds = array<i64: 1, 1, 1>, scalar_prefetch = 0 : i64, scratch_operands = 1 : i64, tpu.core_type = #tpu.core_type<tc>, window_params = [{transform_indices = @transform_0, window_bounds = array<i64: 8, 128>}, {transform_indices = @transform_1, window_bounds = array<i64: 128, 128>}, {transform_indices = @transform_2, window_bounds = array<i64: 1, 128>}, {transform_indices = @transform_3, window_bounds = array<i64: 1, 128>}, {transform_indices = @transform_4, window_bounds = array<i64: 8, 128>}]} {
    %c0_i32 = arith.constant 0 : i32
    %0 = arith.cmpi eq, %arg2, %c0_i32 : i32
    %1 = arith.extui %0 : i1 to i32
    %c0_i32_0 = arith.constant 0 : i32
    %2 = arith.cmpi ne, %1, %c0_i32_0 : i32
    scf.if %2 {
      %cst_10 = arith.constant 0.000000e+00 : f32
      %12 = vector.broadcast %cst_10 : f32 to vector<8x128xf32>
      %c0_11 = arith.constant 0 : index
      %c0_12 = arith.constant 0 : index
      %13 = vector.load %arg8[%c0_11, %c0_12] : memref<8x128xf32, #tpu.memory_space<vmem>>, vector<8x128xf32>
      tpu.vector_store %arg8[%c0_11, %c0_12], %12 {strides = array<i32>} : memref<8x128xf32, #tpu.memory_space<vmem>>, vector<8x128xf32>,
    } else {
    }
    %c0 = arith.constant 0 : index
    %c0_1 = arith.constant 0 : index
    %3 = vector.load %arg8[%c0, %c0_1] : memref<8x128xf32, #tpu.memory_space<vmem>>, vector<8x128xf32>
    %c0_2 = arith.constant 0 : index
    %c0_3 = arith.constant 0 : index
    %4 = vector.load %arg3[%c0_2, %c0_3] : memref<8x128xbf16, #tpu.memory_space<vmem>>, vector<8x128xbf16>
    %c0_4 = arith.constant 0 : index
    %c0_5 = arith.constant 0 : index
    %5 = vector.load %arg4[%c0_4, %c0_5] : memref<128x128xbf16, #tpu.memory_space<vmem>>, vector<128x128xbf16>
    %cst = arith.constant dense<0.000000e+00> : vector<8x128xf32>
    %6 = tpu.matmul %4, %5, %cst {dimension_numbers = #tpu.dot_dimension_numbers<[1], [0], [0], [1], [0, 0, 1, 1], [], []>} : vector<8x128xbf16>, vector<128x128xbf16>, vector<8x128xf32> -> vector<8x128xf32>
    %7 = arith.addf %3, %6 : vector<8x128xf32>
    %c0_6 = arith.constant 0 : index
    %c0_7 = arith.constant 0 : index
    %8 = vector.load %arg8[%c0_6, %c0_7] : memref<8x128xf32, #tpu.memory_space<vmem>>, vector<8x128xf32>
    tpu.vector_store %arg8[%c0_6, %c0_7], %7 {strides = array<i32>} : memref<8x128xf32, #tpu.memory_space<vmem>>, vector<8x128xf32>,
    %c0_i32_8 = arith.constant 0 : i32
    %9 = arith.cmpi eq, %arg2, %c0_i32_8 : i32
    %10 = arith.extui %9 : i1 to i32
    %c0_i32_9 = arith.constant 0 : i32
    %11 = arith.cmpi ne, %10, %c0_i32_9 : i32
    scf.if %11 {
      %c0_10 = arith.constant 0 : index
      %c0_11 = arith.constant 0 : index
      %12 = vector.load %arg8[%c0_10, %c0_11] : memref<8x128xf32, #tpu.memory_space<vmem>>, vector<8x128xf32>
      %c0_12 = arith.constant 0 : index
      %c0_13 = arith.constant 0 : index
      %13 = vector.load %arg5[%c0_12, %c0_13] : memref<1x128xf32, #tpu.memory_space<vmem>>, vector<1x128xf32>
      %14 = vector.broadcast %13 : vector<1x128xf32> to vector<8x128xf32>
      %15 = arith.mulf %12, %14 : vector<8x128xf32>
      %c0_14 = arith.constant 0 : index
      %c0_15 = arith.constant 0 : index
      %16 = vector.load %arg6[%c0_14, %c0_15] : memref<1x128xf32, #tpu.memory_space<vmem>>, vector<1x128xf32>
      %17 = vector.broadcast %16 : vector<1x128xf32> to vector<8x128xf32>
      %18 = arith.addf %15, %17 : vector<8x128xf32>
      %19 = arith.truncf %18 : vector<8x128xf32> to vector<8x128xbf16>
      %c0_16 = arith.constant 0 : index
      %c0_17 = arith.constant 0 : index
      %20 = vector.load %arg7[%c0_16, %c0_17] : memref<8x128xbf16, #tpu.memory_space<vmem>>, vector<8x128xbf16>
      tpu.vector_store %arg7[%c0_16, %c0_17], %19 {strides = array<i32>} : memref<8x128xbf16, #tpu.memory_space<vmem>>, vector<8x128xbf16>,
    } else {
    }
    return
  }
  func.func @transform_0(%arg0: i32, %arg1: i32, %arg2: i32) -> (i32, i32) {
    %c0_i32 = arith.constant 0 : i32
    return %arg0, %arg2 : i32, i32
  }
  func.func @transform_1(%arg0: i32, %arg1: i32, %arg2: i32) -> (i32, i32) {
    %c0_i32 = arith.constant 0 : i32
    return %arg2, %arg1 : i32, i32
  }
  func.func @transform_2(%arg0: i32, %arg1: i32, %arg2: i32) -> (i32, i32) {
    %c0_i32 = arith.constant 0 : i32
    %c0_i32_0 = arith.constant 0 : i32
    return %c0_i32, %arg1 : i32, i32
  }
  func.func @transform_3(%arg0: i32, %arg1: i32, %arg2: i32) -> (i32, i32) {
    %c0_i32 = arith.constant 0 : i32
    %c0_i32_0 = arith.constant 0 : i32
    return %c0_i32, %arg1 : i32, i32
  }
  func.func @transform_4(%arg0: i32, %arg1: i32, %arg2: i32) -> (i32, i32) {
    %c0_i32 = arith.constant 0 : i32
    return %arg0, %arg1 : i32, i32
  }
}

module attributes {stable_mosaic.version = 11 : i64} {
  func.func @_bn_relu_kernel(%arg0: i32, %arg1: memref<8x40xbf16, #tpu.memory_space<vmem>>, %arg2: memref<1x40xf32, #tpu.memory_space<vmem>>, %arg3: memref<1x40xf32, #tpu.memory_space<vmem>>, %arg4: memref<8x40xbf16, #tpu.memory_space<vmem>>) attributes {dimension_semantics = [#tpu.dimension_semantics<parallel>], iteration_bounds = array<i64: 1>, scalar_prefetch = 0 : i64, scratch_operands = 0 : i64, tpu.core_type = #tpu.core_type<tc>, window_params = [{transform_indices = @transform_0, window_bounds = array<i64: 8, 40>}, {pipeline_mode = #tpu.pipeline_mode<synchronous>, transform_indices = @transform_1, window_bounds = array<i64: 1, 40>}, {pipeline_mode = #tpu.pipeline_mode<synchronous>, transform_indices = @transform_2, window_bounds = array<i64: 1, 40>}, {transform_indices = @transform_3, window_bounds = array<i64: 8, 40>}]} {
    %c0 = arith.constant 0 : index
    %c0_0 = arith.constant 0 : index
    %0 = vector.load %arg1[%c0, %c0_0] : memref<8x40xbf16, #tpu.memory_space<vmem>>, vector<8x40xbf16>
    %1 = arith.extf %0 : vector<8x40xbf16> to vector<8x40xf32>
    %c0_1 = arith.constant 0 : index
    %c0_2 = arith.constant 0 : index
    %2 = vector.load %arg2[%c0_1, %c0_2] : memref<1x40xf32, #tpu.memory_space<vmem>>, vector<1x40xf32>
    %3 = vector.broadcast %2 : vector<1x40xf32> to vector<8x40xf32>
    %4 = arith.mulf %1, %3 : vector<8x40xf32>
    %c0_3 = arith.constant 0 : index
    %c0_4 = arith.constant 0 : index
    %5 = vector.load %arg3[%c0_3, %c0_4] : memref<1x40xf32, #tpu.memory_space<vmem>>, vector<1x40xf32>
    %6 = vector.broadcast %5 : vector<1x40xf32> to vector<8x40xf32>
    %7 = arith.addf %4, %6 : vector<8x40xf32>
    %cst = arith.constant 0.000000e+00 : f32
    %8 = vector.broadcast %cst : f32 to vector<8x40xf32>
    %9 = arith.maximumf %7, %8 : vector<8x40xf32>
    %10 = arith.truncf %9 : vector<8x40xf32> to vector<8x40xbf16>
    %c0_5 = arith.constant 0 : index
    %c0_6 = arith.constant 0 : index
    %11 = vector.load %arg4[%c0_5, %c0_6] : memref<8x40xbf16, #tpu.memory_space<vmem>>, vector<8x40xbf16>
    tpu.vector_store %arg4[%c0_5, %c0_6], %10 {strides = array<i32>} : memref<8x40xbf16, #tpu.memory_space<vmem>>, vector<8x40xbf16>,
    return
  }
  func.func @transform_0(%arg0: i32) -> (i32, i32) {
    %c0_i32 = arith.constant 0 : i32
    %c0_i32_0 = arith.constant 0 : i32
    return %arg0, %c0_i32 : i32, i32
  }
  func.func @transform_1(%arg0: i32) -> (i32, i32) {
    %c0_i32 = arith.constant 0 : i32
    %c0_i32_0 = arith.constant 0 : i32
    %c0_i32_1 = arith.constant 0 : i32
    return %c0_i32, %c0_i32_0 : i32, i32
  }
  func.func @transform_2(%arg0: i32) -> (i32, i32) {
    %c0_i32 = arith.constant 0 : i32
    %c0_i32_0 = arith.constant 0 : i32
    %c0_i32_1 = arith.constant 0 : i32
    return %c0_i32, %c0_i32_0 : i32, i32
  }
  func.func @transform_3(%arg0: i32) -> (i32, i32) {
    %c0_i32 = arith.constant 0 : i32
    %c0_i32_0 = arith.constant 0 : i32
    return %arg0, %c0_i32 : i32, i32
  }
}

module attributes {stable_mosaic.version = 11 : i64} {
  func.func @_mm_kernel(%arg0: i32, %arg1: i32, %arg2: i32, %arg3: memref<8x128xbf16, #tpu.memory_space<vmem>>, %arg4: memref<128x128xbf16, #tpu.memory_space<vmem>>, %arg5: memref<1x128xf32, #tpu.memory_space<vmem>>, %arg6: memref<1x128xf32, #tpu.memory_space<vmem>>, %arg7: memref<8x128xbf16, #tpu.memory_space<vmem>>, %arg8: memref<8x128xf32, #tpu.memory_space<vmem>>) attributes {dimension_semantics = [#tpu.dimension_semantics<parallel>, #tpu.dimension_semantics<parallel>, #tpu.dimension_semantics<arbitrary>], iteration_bounds = array<i64: 1, 1, 3>, scalar_prefetch = 0 : i64, scratch_operands = 1 : i64, tpu.core_type = #tpu.core_type<tc>, window_params = [{transform_indices = @transform_0, window_bounds = array<i64: 8, 128>}, {transform_indices = @transform_1, window_bounds = array<i64: 128, 128>}, {transform_indices = @transform_2, window_bounds = array<i64: 1, 128>}, {transform_indices = @transform_3, window_bounds = array<i64: 1, 128>}, {transform_indices = @transform_4, window_bounds = array<i64: 8, 128>}]} {
    %c0_i32 = arith.constant 0 : i32
    %0 = arith.cmpi eq, %arg2, %c0_i32 : i32
    %1 = arith.extui %0 : i1 to i32
    %c0_i32_0 = arith.constant 0 : i32
    %2 = arith.cmpi ne, %1, %c0_i32_0 : i32
    scf.if %2 {
      %cst_9 = arith.constant 0.000000e+00 : f32
      %12 = vector.broadcast %cst_9 : f32 to vector<8x128xf32>
      %c0_10 = arith.constant 0 : index
      %c0_11 = arith.constant 0 : index
      %13 = vector.load %arg8[%c0_10, %c0_11] : memref<8x128xf32, #tpu.memory_space<vmem>>, vector<8x128xf32>
      tpu.vector_store %arg8[%c0_10, %c0_11], %12 {strides = array<i32>} : memref<8x128xf32, #tpu.memory_space<vmem>>, vector<8x128xf32>,
    } else {
    }
    %c0 = arith.constant 0 : index
    %c0_1 = arith.constant 0 : index
    %3 = vector.load %arg8[%c0, %c0_1] : memref<8x128xf32, #tpu.memory_space<vmem>>, vector<8x128xf32>
    %c0_2 = arith.constant 0 : index
    %c0_3 = arith.constant 0 : index
    %4 = vector.load %arg3[%c0_2, %c0_3] : memref<8x128xbf16, #tpu.memory_space<vmem>>, vector<8x128xbf16>
    %c0_4 = arith.constant 0 : index
    %c0_5 = arith.constant 0 : index
    %5 = vector.load %arg4[%c0_4, %c0_5] : memref<128x128xbf16, #tpu.memory_space<vmem>>, vector<128x128xbf16>
    %cst = arith.constant dense<0.000000e+00> : vector<8x128xf32>
    %6 = tpu.matmul %4, %5, %cst {dimension_numbers = #tpu.dot_dimension_numbers<[1], [0], [0], [1], [0, 0, 1, 1], [], []>} : vector<8x128xbf16>, vector<128x128xbf16>, vector<8x128xf32> -> vector<8x128xf32>
    %7 = arith.addf %3, %6 : vector<8x128xf32>
    %c0_6 = arith.constant 0 : index
    %c0_7 = arith.constant 0 : index
    %8 = vector.load %arg8[%c0_6, %c0_7] : memref<8x128xf32, #tpu.memory_space<vmem>>, vector<8x128xf32>
    tpu.vector_store %arg8[%c0_6, %c0_7], %7 {strides = array<i32>} : memref<8x128xf32, #tpu.memory_space<vmem>>, vector<8x128xf32>,
    %c2_i32 = arith.constant 2 : i32
    %9 = arith.cmpi eq, %arg2, %c2_i32 : i32
    %10 = arith.extui %9 : i1 to i32
    %c0_i32_8 = arith.constant 0 : i32
    %11 = arith.cmpi ne, %10, %c0_i32_8 : i32
    scf.if %11 {
      %c0_9 = arith.constant 0 : index
      %c0_10 = arith.constant 0 : index
      %12 = vector.load %arg8[%c0_9, %c0_10] : memref<8x128xf32, #tpu.memory_space<vmem>>, vector<8x128xf32>
      %c0_11 = arith.constant 0 : index
      %c0_12 = arith.constant 0 : index
      %13 = vector.load %arg5[%c0_11, %c0_12] : memref<1x128xf32, #tpu.memory_space<vmem>>, vector<1x128xf32>
      %14 = vector.broadcast %13 : vector<1x128xf32> to vector<8x128xf32>
      %15 = arith.mulf %12, %14 : vector<8x128xf32>
      %c0_13 = arith.constant 0 : index
      %c0_14 = arith.constant 0 : index
      %16 = vector.load %arg6[%c0_13, %c0_14] : memref<1x128xf32, #tpu.memory_space<vmem>>, vector<1x128xf32>
      %17 = vector.broadcast %16 : vector<1x128xf32> to vector<8x128xf32>
      %18 = arith.addf %15, %17 : vector<8x128xf32>
      %19 = arith.truncf %18 : vector<8x128xf32> to vector<8x128xbf16>
      %c0_15 = arith.constant 0 : index
      %c0_16 = arith.constant 0 : index
      %20 = vector.load %arg7[%c0_15, %c0_16] : memref<8x128xbf16, #tpu.memory_space<vmem>>, vector<8x128xbf16>
      tpu.vector_store %arg7[%c0_15, %c0_16], %19 {strides = array<i32>} : memref<8x128xbf16, #tpu.memory_space<vmem>>, vector<8x128xbf16>,
    } else {
    }
    return
  }
  func.func @transform_0(%arg0: i32, %arg1: i32, %arg2: i32) -> (i32, i32) {
    %c0_i32 = arith.constant 0 : i32
    return %arg0, %arg2 : i32, i32
  }
  func.func @transform_1(%arg0: i32, %arg1: i32, %arg2: i32) -> (i32, i32) {
    %c0_i32 = arith.constant 0 : i32
    return %arg2, %arg1 : i32, i32
  }
  func.func @transform_2(%arg0: i32, %arg1: i32, %arg2: i32) -> (i32, i32) {
    %c0_i32 = arith.constant 0 : i32
    %c0_i32_0 = arith.constant 0 : i32
    return %c0_i32, %arg1 : i32, i32
  }
  func.func @transform_3(%arg0: i32, %arg1: i32, %arg2: i32) -> (i32, i32) {
    %c0_i32 = arith.constant 0 : i32
    %c0_i32_0 = arith.constant 0 : i32
    return %c0_i32, %arg1 : i32, i32
  }
  func.func @transform_4(%arg0: i32, %arg1: i32, %arg2: i32) -> (i32, i32) {
    %c0_i32 = arith.constant 0 : i32
    return %arg0, %arg1 : i32, i32
  }
}

module attributes {stable_mosaic.version = 11 : i64} {
  func.func @_pool_kernel(%arg0: i32, %arg1: memref<4x8x72xbf16, #tpu.memory_space<vmem>>, %arg2: memref<1x72xf32, #tpu.memory_space<vmem>>, %arg3: memref<1x72xf32, #tpu.memory_space<vmem>>, %arg4: memref<8x72xbf16, #tpu.memory_space<vmem>>) attributes {dimension_semantics = [#tpu.dimension_semantics<parallel>], iteration_bounds = array<i64: 1>, scalar_prefetch = 0 : i64, scratch_operands = 0 : i64, tpu.core_type = #tpu.core_type<tc>, window_params = [{transform_indices = @transform_0, window_bounds = array<i64: 4, 8, 72>}, {pipeline_mode = #tpu.pipeline_mode<synchronous>, transform_indices = @transform_1, window_bounds = array<i64: 1, 72>}, {pipeline_mode = #tpu.pipeline_mode<synchronous>, transform_indices = @transform_2, window_bounds = array<i64: 1, 72>}, {transform_indices = @transform_3, window_bounds = array<i64: 8, 72>}]} {
    %c0 = arith.constant 0 : index
    %c0_0 = arith.constant 0 : index
    %c0_1 = arith.constant 0 : index
    %0 = vector.load %arg1[%c0, %c0_0, %c0_1] : memref<4x8x72xbf16, #tpu.memory_space<vmem>>, vector<4x8x72xbf16>
    %1 = arith.extf %0 : vector<4x8x72xbf16> to vector<4x8x72xf32>
    %c0_2 = arith.constant 0 : index
    %c0_3 = arith.constant 0 : index
    %2 = vector.load %arg2[%c0_2, %c0_3] : memref<1x72xf32, #tpu.memory_space<vmem>>, vector<1x72xf32>
    %3 = vector.shape_cast %2 : vector<1x72xf32> to vector<1x1x72xf32>
    %4 = vector.broadcast %3 : vector<1x1x72xf32> to vector<4x8x72xf32>
    %5 = arith.mulf %1, %4 : vector<4x8x72xf32>
    %c0_4 = arith.constant 0 : index
    %c0_5 = arith.constant 0 : index
    %6 = vector.load %arg3[%c0_4, %c0_5] : memref<1x72xf32, #tpu.memory_space<vmem>>, vector<1x72xf32>
    %7 = vector.shape_cast %6 : vector<1x72xf32> to vector<1x1x72xf32>
    %8 = vector.broadcast %7 : vector<1x1x72xf32> to vector<4x8x72xf32>
    %9 = arith.addf %5, %8 : vector<4x8x72xf32>
    %cst = arith.constant 0.000000e+00 : f32
    %10 = vector.broadcast %cst : f32 to vector<4x8x72xf32>
    %11 = arith.maximumf %9, %10 : vector<4x8x72xf32>
    %cst_6 = arith.constant dense<0.000000e+00> : vector<8x72xf32>
    %12 = vector.multi_reduction <add>, %11, %cst_6 [0] : vector<4x8x72xf32> to vector<8x72xf32>
    %cst_7 = arith.constant 4.000000e+00 : f32
    %13 = vector.broadcast %cst_7 : f32 to vector<8x72xf32>
    %14 = arith.divf %12, %13 : vector<8x72xf32>
    %15 = arith.truncf %14 : vector<8x72xf32> to vector<8x72xbf16>
    %c0_8 = arith.constant 0 : index
    %c0_9 = arith.constant 0 : index
    %16 = vector.load %arg4[%c0_8, %c0_9] : memref<8x72xbf16, #tpu.memory_space<vmem>>, vector<8x72xbf16>
    tpu.vector_store %arg4[%c0_8, %c0_9], %15 {strides = array<i32>} : memref<8x72xbf16, #tpu.memory_space<vmem>>, vector<8x72xbf16>,
    return
  }
  func.func @transform_0(%arg0: i32) -> (i32, i32, i32) {
    %c0_i32 = arith.constant 0 : i32
    %c0_i32_0 = arith.constant 0 : i32
    %c0_i32_1 = arith.constant 0 : i32
    return %c0_i32, %arg0, %c0_i32_0 : i32, i32, i32
  }
  func.func @transform_1(%arg0: i32) -> (i32, i32) {
    %c0_i32 = arith.constant 0 : i32
    %c0_i32_0 = arith.constant 0 : i32
    %c0_i32_1 = arith.constant 0 : i32
    return %c0_i32, %c0_i32_0 : i32, i32
  }
  func.func @transform_2(%arg0: i32) -> (i32, i32) {
    %c0_i32 = arith.constant 0 : i32
    %c0_i32_0 = arith.constant 0 : i32
    %c0_i32_1 = arith.constant 0 : i32
    return %c0_i32, %c0_i32_0 : i32, i32
  }
  func.func @transform_3(%arg0: i32) -> (i32, i32) {
    %c0_i32 = arith.constant 0 : i32
    %c0_i32_0 = arith.constant 0 : i32
    return %arg0, %c0_i32 : i32, i32
  }
}

module attributes {stable_mosaic.version = 11 : i64} {
  func.func @_bn_relu_kernel(%arg0: i32, %arg1: memref<8x36xbf16, #tpu.memory_space<vmem>>, %arg2: memref<1x36xf32, #tpu.memory_space<vmem>>, %arg3: memref<1x36xf32, #tpu.memory_space<vmem>>, %arg4: memref<8x36xbf16, #tpu.memory_space<vmem>>) attributes {dimension_semantics = [#tpu.dimension_semantics<parallel>], iteration_bounds = array<i64: 1>, scalar_prefetch = 0 : i64, scratch_operands = 0 : i64, tpu.core_type = #tpu.core_type<tc>, window_params = [{transform_indices = @transform_0, window_bounds = array<i64: 8, 36>}, {pipeline_mode = #tpu.pipeline_mode<synchronous>, transform_indices = @transform_1, window_bounds = array<i64: 1, 36>}, {pipeline_mode = #tpu.pipeline_mode<synchronous>, transform_indices = @transform_2, window_bounds = array<i64: 1, 36>}, {transform_indices = @transform_3, window_bounds = array<i64: 8, 36>}]} {
    %c0 = arith.constant 0 : index
    %c0_0 = arith.constant 0 : index
    %0 = vector.load %arg1[%c0, %c0_0] : memref<8x36xbf16, #tpu.memory_space<vmem>>, vector<8x36xbf16>
    %1 = arith.extf %0 : vector<8x36xbf16> to vector<8x36xf32>
    %c0_1 = arith.constant 0 : index
    %c0_2 = arith.constant 0 : index
    %2 = vector.load %arg2[%c0_1, %c0_2] : memref<1x36xf32, #tpu.memory_space<vmem>>, vector<1x36xf32>
    %3 = vector.broadcast %2 : vector<1x36xf32> to vector<8x36xf32>
    %4 = arith.mulf %1, %3 : vector<8x36xf32>
    %c0_3 = arith.constant 0 : index
    %c0_4 = arith.constant 0 : index
    %5 = vector.load %arg3[%c0_3, %c0_4] : memref<1x36xf32, #tpu.memory_space<vmem>>, vector<1x36xf32>
    %6 = vector.broadcast %5 : vector<1x36xf32> to vector<8x36xf32>
    %7 = arith.addf %4, %6 : vector<8x36xf32>
    %cst = arith.constant 0.000000e+00 : f32
    %8 = vector.broadcast %cst : f32 to vector<8x36xf32>
    %9 = arith.maximumf %7, %8 : vector<8x36xf32>
    %10 = arith.truncf %9 : vector<8x36xf32> to vector<8x36xbf16>
    %c0_5 = arith.constant 0 : index
    %c0_6 = arith.constant 0 : index
    %11 = vector.load %arg4[%c0_5, %c0_6] : memref<8x36xbf16, #tpu.memory_space<vmem>>, vector<8x36xbf16>
    tpu.vector_store %arg4[%c0_5, %c0_6], %10 {strides = array<i32>} : memref<8x36xbf16, #tpu.memory_space<vmem>>, vector<8x36xbf16>,
    return
  }
  func.func @transform_0(%arg0: i32) -> (i32, i32) {
    %c0_i32 = arith.constant 0 : i32
    %c0_i32_0 = arith.constant 0 : i32
    return %arg0, %c0_i32 : i32, i32
  }
  func.func @transform_1(%arg0: i32) -> (i32, i32) {
    %c0_i32 = arith.constant 0 : i32
    %c0_i32_0 = arith.constant 0 : i32
    %c0_i32_1 = arith.constant 0 : i32
    return %c0_i32, %c0_i32_0 : i32, i32
  }
  func.func @transform_2(%arg0: i32) -> (i32, i32) {
    %c0_i32 = arith.constant 0 : i32
    %c0_i32_0 = arith.constant 0 : i32
    %c0_i32_1 = arith.constant 0 : i32
    return %c0_i32, %c0_i32_0 : i32, i32
  }
  func.func @transform_3(%arg0: i32) -> (i32, i32) {
    %c0_i32 = arith.constant 0 : i32
    %c0_i32_0 = arith.constant 0 : i32
    return %arg0, %c0_i32 : i32, i32
  }
}

module attributes {stable_mosaic.version = 11 : i64} {
  func.func @_pool_kernel(%arg0: i32, %arg1: memref<1x8x68xbf16, #tpu.memory_space<vmem>>, %arg2: memref<1x68xf32, #tpu.memory_space<vmem>>, %arg3: memref<1x68xf32, #tpu.memory_space<vmem>>, %arg4: memref<8x68xbf16, #tpu.memory_space<vmem>>) attributes {dimension_semantics = [#tpu.dimension_semantics<parallel>], iteration_bounds = array<i64: 1>, scalar_prefetch = 0 : i64, scratch_operands = 0 : i64, tpu.core_type = #tpu.core_type<tc>, window_params = [{transform_indices = @transform_0, window_bounds = array<i64: 1, 8, 68>}, {pipeline_mode = #tpu.pipeline_mode<synchronous>, transform_indices = @transform_1, window_bounds = array<i64: 1, 68>}, {pipeline_mode = #tpu.pipeline_mode<synchronous>, transform_indices = @transform_2, window_bounds = array<i64: 1, 68>}, {transform_indices = @transform_3, window_bounds = array<i64: 8, 68>}]} {
    %c0 = arith.constant 0 : index
    %c0_0 = arith.constant 0 : index
    %c0_1 = arith.constant 0 : index
    %0 = vector.load %arg1[%c0, %c0_0, %c0_1] : memref<1x8x68xbf16, #tpu.memory_space<vmem>>, vector<1x8x68xbf16>
    %1 = arith.extf %0 : vector<1x8x68xbf16> to vector<1x8x68xf32>
    %c0_2 = arith.constant 0 : index
    %c0_3 = arith.constant 0 : index
    %2 = vector.load %arg2[%c0_2, %c0_3] : memref<1x68xf32, #tpu.memory_space<vmem>>, vector<1x68xf32>
    %3 = vector.shape_cast %2 : vector<1x68xf32> to vector<1x1x68xf32>
    %4 = vector.broadcast %3 : vector<1x1x68xf32> to vector<1x8x68xf32>
    %5 = arith.mulf %1, %4 : vector<1x8x68xf32>
    %c0_4 = arith.constant 0 : index
    %c0_5 = arith.constant 0 : index
    %6 = vector.load %arg3[%c0_4, %c0_5] : memref<1x68xf32, #tpu.memory_space<vmem>>, vector<1x68xf32>
    %7 = vector.shape_cast %6 : vector<1x68xf32> to vector<1x1x68xf32>
    %8 = vector.broadcast %7 : vector<1x1x68xf32> to vector<1x8x68xf32>
    %9 = arith.addf %5, %8 : vector<1x8x68xf32>
    %cst = arith.constant 0.000000e+00 : f32
    %10 = vector.broadcast %cst : f32 to vector<1x8x68xf32>
    %11 = arith.maximumf %9, %10 : vector<1x8x68xf32>
    %cst_6 = arith.constant dense<0.000000e+00> : vector<8x68xf32>
    %12 = vector.multi_reduction <add>, %11, %cst_6 [0] : vector<1x8x68xf32> to vector<8x68xf32>
    %cst_7 = arith.constant 1.000000e+00 : f32
    %13 = vector.broadcast %cst_7 : f32 to vector<8x68xf32>
    %14 = arith.divf %12, %13 : vector<8x68xf32>
    %15 = arith.truncf %14 : vector<8x68xf32> to vector<8x68xbf16>
    %c0_8 = arith.constant 0 : index
    %c0_9 = arith.constant 0 : index
    %16 = vector.load %arg4[%c0_8, %c0_9] : memref<8x68xbf16, #tpu.memory_space<vmem>>, vector<8x68xbf16>
    tpu.vector_store %arg4[%c0_8, %c0_9], %15 {strides = array<i32>} : memref<8x68xbf16, #tpu.memory_space<vmem>>, vector<8x68xbf16>,
    return
  }
  func.func @transform_0(%arg0: i32) -> (i32, i32, i32) {
    %c0_i32 = arith.constant 0 : i32
    %c0_i32_0 = arith.constant 0 : i32
    %c0_i32_1 = arith.constant 0 : i32
    return %c0_i32, %arg0, %c0_i32_0 : i32, i32, i32
  }
  func.func @transform_1(%arg0: i32) -> (i32, i32) {
    %c0_i32 = arith.constant 0 : i32
    %c0_i32_0 = arith.constant 0 : i32
    %c0_i32_1 = arith.constant 0 : i32
    return %c0_i32, %c0_i32_0 : i32, i32
  }
  func.func @transform_2(%arg0: i32) -> (i32, i32) {
    %c0_i32 = arith.constant 0 : i32
    %c0_i32_0 = arith.constant 0 : i32
    %c0_i32_1 = arith.constant 0 : i32
    return %c0_i32, %c0_i32_0 : i32, i32
  }
  func.func @transform_3(%arg0: i32) -> (i32, i32) {
    %c0_i32 = arith.constant 0 : i32
    %c0_i32_0 = arith.constant 0 : i32
    return %arg0, %c0_i32 : i32, i32
  }
}

module attributes {stable_mosaic.version = 11 : i64} {
  func.func @_mm_kernel(%arg0: i32, %arg1: i32, %arg2: i32, %arg3: memref<8x128xbf16, #tpu.memory_space<vmem>>, %arg4: memref<128x128xbf16, #tpu.memory_space<vmem>>, %arg5: memref<1x128xf32, #tpu.memory_space<vmem>>, %arg6: memref<1x128xf32, #tpu.memory_space<vmem>>, %arg7: memref<8x128xf32, #tpu.memory_space<vmem>>, %arg8: memref<8x128xf32, #tpu.memory_space<vmem>>) attributes {dimension_semantics = [#tpu.dimension_semantics<parallel>, #tpu.dimension_semantics<parallel>, #tpu.dimension_semantics<arbitrary>], iteration_bounds = array<i64: 1, 1, 1>, scalar_prefetch = 0 : i64, scratch_operands = 1 : i64, tpu.core_type = #tpu.core_type<tc>, window_params = [{transform_indices = @transform_0, window_bounds = array<i64: 8, 128>}, {transform_indices = @transform_1, window_bounds = array<i64: 128, 128>}, {transform_indices = @transform_2, window_bounds = array<i64: 1, 128>}, {transform_indices = @transform_3, window_bounds = array<i64: 1, 128>}, {transform_indices = @transform_4, window_bounds = array<i64: 8, 128>}]} {
    %c0_i32 = arith.constant 0 : i32
    %0 = arith.cmpi eq, %arg2, %c0_i32 : i32
    %1 = arith.extui %0 : i1 to i32
    %c0_i32_0 = arith.constant 0 : i32
    %2 = arith.cmpi ne, %1, %c0_i32_0 : i32
    scf.if %2 {
      %cst_10 = arith.constant 0.000000e+00 : f32
      %12 = vector.broadcast %cst_10 : f32 to vector<8x128xf32>
      %c0_11 = arith.constant 0 : index
      %c0_12 = arith.constant 0 : index
      %13 = vector.load %arg8[%c0_11, %c0_12] : memref<8x128xf32, #tpu.memory_space<vmem>>, vector<8x128xf32>
      tpu.vector_store %arg8[%c0_11, %c0_12], %12 {strides = array<i32>} : memref<8x128xf32, #tpu.memory_space<vmem>>, vector<8x128xf32>,
    } else {
    }
    %c0 = arith.constant 0 : index
    %c0_1 = arith.constant 0 : index
    %3 = vector.load %arg8[%c0, %c0_1] : memref<8x128xf32, #tpu.memory_space<vmem>>, vector<8x128xf32>
    %c0_2 = arith.constant 0 : index
    %c0_3 = arith.constant 0 : index
    %4 = vector.load %arg3[%c0_2, %c0_3] : memref<8x128xbf16, #tpu.memory_space<vmem>>, vector<8x128xbf16>
    %c0_4 = arith.constant 0 : index
    %c0_5 = arith.constant 0 : index
    %5 = vector.load %arg4[%c0_4, %c0_5] : memref<128x128xbf16, #tpu.memory_space<vmem>>, vector<128x128xbf16>
    %cst = arith.constant dense<0.000000e+00> : vector<8x128xf32>
    %6 = tpu.matmul %4, %5, %cst {dimension_numbers = #tpu.dot_dimension_numbers<[1], [0], [0], [1], [0, 0, 1, 1], [], []>} : vector<8x128xbf16>, vector<128x128xbf16>, vector<8x128xf32> -> vector<8x128xf32>
    %7 = arith.addf %3, %6 : vector<8x128xf32>
    %c0_6 = arith.constant 0 : index
    %c0_7 = arith.constant 0 : index
    %8 = vector.load %arg8[%c0_6, %c0_7] : memref<8x128xf32, #tpu.memory_space<vmem>>, vector<8x128xf32>
    tpu.vector_store %arg8[%c0_6, %c0_7], %7 {strides = array<i32>} : memref<8x128xf32, #tpu.memory_space<vmem>>, vector<8x128xf32>,
    %c0_i32_8 = arith.constant 0 : i32
    %9 = arith.cmpi eq, %arg2, %c0_i32_8 : i32
    %10 = arith.extui %9 : i1 to i32
    %c0_i32_9 = arith.constant 0 : i32
    %11 = arith.cmpi ne, %10, %c0_i32_9 : i32
    scf.if %11 {
      %c0_10 = arith.constant 0 : index
      %c0_11 = arith.constant 0 : index
      %12 = vector.load %arg8[%c0_10, %c0_11] : memref<8x128xf32, #tpu.memory_space<vmem>>, vector<8x128xf32>
      %c0_12 = arith.constant 0 : index
      %c0_13 = arith.constant 0 : index
      %13 = vector.load %arg5[%c0_12, %c0_13] : memref<1x128xf32, #tpu.memory_space<vmem>>, vector<1x128xf32>
      %14 = vector.broadcast %13 : vector<1x128xf32> to vector<8x128xf32>
      %15 = arith.mulf %12, %14 : vector<8x128xf32>
      %c0_14 = arith.constant 0 : index
      %c0_15 = arith.constant 0 : index
      %16 = vector.load %arg6[%c0_14, %c0_15] : memref<1x128xf32, #tpu.memory_space<vmem>>, vector<1x128xf32>
      %17 = vector.broadcast %16 : vector<1x128xf32> to vector<8x128xf32>
      %18 = arith.addf %15, %17 : vector<8x128xf32>
      %c0_16 = arith.constant 0 : index
      %c0_17 = arith.constant 0 : index
      %19 = vector.load %arg7[%c0_16, %c0_17] : memref<8x128xf32, #tpu.memory_space<vmem>>, vector<8x128xf32>
      tpu.vector_store %arg7[%c0_16, %c0_17], %18 {strides = array<i32>} : memref<8x128xf32, #tpu.memory_space<vmem>>, vector<8x128xf32>,
    } else {
    }
    return
  }
  func.func @transform_0(%arg0: i32, %arg1: i32, %arg2: i32) -> (i32, i32) {
    %c0_i32 = arith.constant 0 : i32
    return %arg0, %arg2 : i32, i32
  }
  func.func @transform_1(%arg0: i32, %arg1: i32, %arg2: i32) -> (i32, i32) {
    %c0_i32 = arith.constant 0 : i32
    return %arg2, %arg1 : i32, i32
  }
  func.func @transform_2(%arg0: i32, %arg1: i32, %arg2: i32) -> (i32, i32) {
    %c0_i32 = arith.constant 0 : i32
    %c0_i32_0 = arith.constant 0 : i32
    return %c0_i32, %arg1 : i32, i32
  }
  func.func @transform_3(%arg0: i32, %arg1: i32, %arg2: i32) -> (i32, i32) {
    %c0_i32 = arith.constant 0 : i32
    %c0_i32_0 = arith.constant 0 : i32
    return %c0_i32, %arg1 : i32, i32
  }
  func.func @transform_4(%arg0: i32, %arg1: i32, %arg2: i32) -> (i32, i32) {
    %c0_i32 = arith.constant 0 : i32
    return %arg0, %arg1 : i32, i32
  }
}

</mosaic_0001>

<bundles_post_ra>
// kernel: densenet_forward.20
= control target key start
LH: loop header
LB: loop body
LE: loop exit
PB: predicated region body
PF: predicated region fallthrough
CT: control target
= control target key end

     0   :  { %vm172_vm0 = vcmask 519168   ;;  %s416_s0 = inlined_call_operand.vmem [shape: bf16[128,64], index: 0, kind: input, shape index: {}]   ;;  %s417_s1 = inlined_call_operand.vmem [shape: f32[1,64], index: 1, kind: input, shape index: {}]   ;;  %s418_s2 = inlined_call_operand.vmem [shape: f32[1,64], index: 2, kind: input, shape index: {}]   ;;  %s419_s3 = inlined_call_operand.vmem [shape: bf16[128,64], index: 3, kind: output, shape index: {}]  }
   0x1   :  { %v228_v0 = vld [vmem:[%s416_s0] sm:$0xff]   ;;  %v259_v4 = vld [vmem:[%s416_s0 + $0x8] sm:$0xff]   ;;  %v260_v5 = vld [vmem:[%s416_s0 + $0x10] sm:$0xff]  }
   0x2   :  { %v292_v1 = vld [vmem:[%s417_s1] ss:$0 sm:$0xff]  ;;  %v229_v2 = vunpack.c.l.bf16 %v228_v0  ;;  %v230_v3 = vunpack.c.h.bf16 %v228_v0  ;;  %v261_v6 = vld [vmem:[%s416_s0 + $0x18] sm:$0xff]   ;;  %v233_v8 = vunpack.c.l.bf16 %v259_v4  ;;  %v234_v9 = vunpack.c.h.bf16 %v259_v4  ;;  %v263_v41 = vld [vmem:[%s416_s0 + $0x28] sm:$0xff]  }
   0x3   :  { %v306_v7 = vld [vmem:[%s418_s2] ss:$0 sm:$0xff]  ;;  %v237_v10 = vunpack.c.l.bf16 %v260_v5  ;;  %v238_v11 = vunpack.c.h.bf16 %v260_v5  ;;  %v241_v14 = vunpack.c.l.bf16 %v261_v6  ;;  %v242_v15 = vunpack.c.h.bf16 %v261_v6  ;;  %v264_v42 = vld [vmem:[%s416_s0 + $0x30] sm:$0xff]   ;;  %v265_v47 = vld [vmem:[%s416_s0 + $0x38] sm:$0xff]  }
   0x4   :  { %v53_v12 = vmul.f32 %v229_v2, %v292_v1  ;;  %v54_v13 = vmul.f32 %v230_v3, %v292_v1  ;;  %v55_v16 = vmul.f32 %v233_v8, %v292_v1  ;;  %v56_v17 = vmul.f32 %v234_v9, %v292_v1  ;;  %v262_v36 = vld [vmem:[%s416_s0 + $0x20] sm:$0xff]  }
   0x5   :  { %v57_v18 = vmul.f32 %v237_v10, %v292_v1  ;;  %v58_v19 = vmul.f32 %v238_v11, %v292_v1  ;;  %v59_v22 = vmul.f32 %v241_v14, %v292_v1  ;;  %v60_v23 = vmul.f32 %v242_v15, %v292_v1 }
   0x6   :  { %v76_v20 = vadd.f32 %v306_v7, %v53_v12  ;;  %v77_v21 = vadd.f32 %v306_v7, %v54_v13  ;;  %v78_v24 = vadd.f32 %v306_v7, %v55_v16  ;;  %v79_v25 = vadd.f32 %v306_v7, %v56_v17 }
   0x7   :  { %v80_v26 = vadd.f32 %v306_v7, %v57_v18  ;;  %v81_v27 = vadd.f32 %v306_v7, %v58_v19  ;;  %v82_v30 = vadd.f32 %v306_v7, %v59_v22  ;;  %v83_v31 = vadd.f32 %v306_v7, %v60_v23 }
   0x8   :  { %v92_v28 = vmax.f32 %v76_v20, 0.0  ;;  %v93_v29 = vmax.f32 %v77_v21, 0.0  ;;  %v94_v32 = vmax.f32 %v78_v24, 0.0  ;;  %v95_v33 = vmax.f32 %v79_v25, 0.0 }
   0x9   :  { %v96_v34 = vmax.f32 %v80_v26, 0.0  ;;  %v97_v35 = vmax.f32 %v81_v27, 0.0  ;;  %v98_v39 = vmax.f32 %v82_v30, 0.0  ;;  %v99_v40 = vmax.f32 %v83_v31, 0.0 }
   0xa   :  { %v211_v37 = vpack.c.bf16 %v92_v28, %v92_v28  ;;  %v212_v38 = vpack.c.bf16 %v93_v29, %v93_v29  ;;  %v213_v43 = vpack.c.bf16 %v94_v32, %v94_v32  ;;  %v214_v44 = vpack.c.bf16 %v95_v33, %v95_v33 }
   0xb   :  { %v215_v45 = vpack.c.bf16 %v96_v34, %v96_v34  ;;  %v216_v46 = vpack.c.bf16 %v97_v35, %v97_v35  ;;  %v217_v48 = vpack.c.bf16 %v98_v39, %v98_v39  ;;  %v218_v49 = vpack.c.bf16 %v99_v40, %v99_v40 }
   0xc   :  { %173 = vst.msk [vmem:[%s419_s3] sm:$0xf] %vm172_vm0, %v211_v37  ;;  %174 = vst.msk [vmem:[%s419_s3 + $0x4] sm:$0xf] %vm172_vm0, %v212_v38  ;;  %v245_v50 = vunpack.c.l.bf16 %v262_v36  ;;  %v246_v51 = vunpack.c.h.bf16 %v262_v36  ;;  %v249_v52 = vunpack.c.l.bf16 %v263_v41  ;;  %v250_v53 = vunpack.c.h.bf16 %v263_v41 }
   0xd   :  { %175 = vst.msk [vmem:[%s419_s3 + $0x8] sm:$0xf] %vm172_vm0, %v213_v43  ;;  %176 = vst.msk [vmem:[%s419_s3 + $0xc] sm:$0xf] %vm172_vm0, %v214_v44  ;;  %v253_v54 = vunpack.c.l.bf16 %v264_v42  ;;  %v254_v55 = vunpack.c.h.bf16 %v264_v42  ;;  %v257_v58 = vunpack.c.l.bf16 %v265_v47  ;;  %v258_v59 = vunpack.c.h.bf16 %v265_v47 }
   0xe   :  { %177 = vst.msk [vmem:[%s419_s3 + $0x10] sm:$0xf] %vm172_vm0, %v215_v45  ;;  %178 = vst.msk [vmem:[%s419_s3 + $0x14] sm:$0xf] %vm172_vm0, %v216_v46  ;;  %v61_v56 = vmul.f32 %v245_v50, %v292_v1  ;;  %v62_v57 = vmul.f32 %v246_v51, %v292_v1  ;;  %v63_v60 = vmul.f32 %v249_v52, %v292_v1 }
   0xf   :  { %179 = vst.msk [vmem:[%s419_s3 + $0x18] sm:$0xf] %vm172_vm0, %v217_v48  ;;  %180 = vst.msk [vmem:[%s419_s3 + $0x1c] sm:$0xf] %vm172_vm0, %v218_v49  ;;  %v64_v61 = vmul.f32 %v250_v53, %v292_v1  ;;  %v65_v62 = vmul.f32 %v253_v54, %v292_v1  ;;  %v66_v63 = vmul.f32 %v254_v55, %v292_v1 }
  0x10   :  { %v84_v0 = vadd.f32 %v306_v7, %v61_v56  ;;  %v85_v2 = vadd.f32 %v306_v7, %v62_v57  ;;  %v67_v3 = vmul.f32 %v257_v58, %v292_v1  ;;  %v68_v4 = vmul.f32 %v258_v59, %v292_v1 }
  0x11   :  { %v86_v5 = vadd.f32 %v306_v7, %v63_v60  ;;  %v87_v6 = vadd.f32 %v306_v7, %v64_v61  ;;  %v88_v8 = vadd.f32 %v306_v7, %v65_v62  ;;  %v89_v9 = vadd.f32 %v306_v7, %v66_v63 }
  0x12   :  { %v100_v10 = vmax.f32 %v84_v0, 0.0  ;;  %v101_v11 = vmax.f32 %v85_v2, 0.0  ;;  %v90_v12 = vadd.f32 %v306_v7, %v67_v3  ;;  %v91_v13 = vadd.f32 %v306_v7, %v68_v4 }
  0x13   :  { %v102_v14 = vmax.f32 %v86_v5, 0.0  ;;  %v103_v15 = vmax.f32 %v87_v6, 0.0  ;;  %v104_v16 = vmax.f32 %v88_v8, 0.0  ;;  %v105_v17 = vmax.f32 %v89_v9, 0.0 }
  0x14   :  { %v219_v18 = vpack.c.bf16 %v100_v10, %v100_v10  ;;  %v220_v1 = vpack.c.bf16 %v101_v11, %v101_v11  ;;  %v106_v19 = vmax.f32 %v90_v12, 0.0  ;;  %v107_v20 = vmax.f32 %v91_v13, 0.0 }
  0x15   :  { %v221_v21 = vpack.c.bf16 %v102_v14, %v102_v14  ;;  %v222_v22 = vpack.c.bf16 %v103_v15, %v103_v15  ;;  %v223_v23 = vpack.c.bf16 %v104_v16, %v104_v16  ;;  %v224_v24 = vpack.c.bf16 %v105_v17, %v105_v17 }
  0x16   :  { %181 = vst.msk [vmem:[%s419_s3 + $0x20] sm:$0xf] %vm172_vm0, %v219_v18  ;;  %182 = vst.msk [vmem:[%s419_s3 + $0x24] sm:$0xf] %vm172_vm0, %v220_v1  ;;  %v225_v7 = vpack.c.bf16 %v106_v19, %v106_v19  ;;  %v226_v25 = vpack.c.bf16 %v107_v20, %v107_v20 }
  0x17   :  { %183 = vst.msk [vmem:[%s419_s3 + $0x28] sm:$0xf] %vm172_vm0, %v221_v21  ;;  %184 = vst.msk [vmem:[%s419_s3 + $0x2c] sm:$0xf] %vm172_vm0, %v222_v22 }
  0x18   :  { %185 = vst.msk [vmem:[%s419_s3 + $0x30] sm:$0xf] %vm172_vm0, %v223_v23  ;;  %186 = vst.msk [vmem:[%s419_s3 + $0x34] sm:$0xf] %vm172_vm0, %v224_v24 }
  0x19   :  { %187 = vst.msk [vmem:[%s419_s3 + $0x38] sm:$0xf] %vm172_vm0, %v225_v7  ;;  %188 = vst.msk [vmem:[%s419_s3 + $0x3c] sm:$0xf] %vm172_vm0, %v226_v25 }

// kernel: densenet_forward.19
= control target key start
LH: loop header
LB: loop body
LE: loop exit
PB: predicated region body
PF: predicated region fallthrough
CT: control target
= control target key end

     0   :  { %vm302_vm0 = vcmask 523264   ;;  %vm639_vm1 = vcmask 519168   ;;  %s1635_s0 = inlined_call_operand.vmem [shape: bf16[9,128,64], index: 0, kind: input, shape index: {}]   ;;  %s1636_s1 = inlined_call_operand.vmem [shape: f32[1,64], index: 1, kind: input, shape index: {}]   ;;  %s1637_s2 = inlined_call_operand.vmem [shape: f32[1,64], index: 2, kind: input, shape index: {}]   ;;  %s1638_s3 = inlined_call_operand.vmem [shape: bf16[128,64], index: 3, kind: output, shape index: {}]  }
   0x1   :  { %v693_v0 = vld [vmem:[%s1635_s0] sm:$0xff]   ;;  %v1114_v35 = vld [vmem:[%s1635_s0 + $0x8] sm:$0xff]  }
   0x2   :  { %v987_v1 = vld [vmem:[%s1635_s0 + $0x40] sm:$0xff]   ;;  %v694_v3 = vunpack.c.l.bf16 %v693_v0  ;;  %v695_v19 = vunpack.c.h.bf16 %v693_v0  ;;  %v1119_v36 = vld [vmem:[%s1635_s0 + $0x48] sm:$0xff]   ;;  %v698_v49 = vunpack.c.l.bf16 %v1114_v35 }
   0x3   :  { %v995_v2 = vld [vmem:[%s1635_s0 + $0x80] sm:$0xff]   ;;  %v726_v4 = vunpack.c.l.bf16 %v987_v1  ;;  %v727_v20 = vunpack.c.h.bf16 %v987_v1  ;;  %v996_v41 = vld [vmem:[%s1635_s0 + $0x88] sm:$0xff]   ;;  %v730_v50 = vunpack.c.l.bf16 %v1119_v36 }
   0x4   :  { %v758_v5 = vunpack.c.l.bf16 %v995_v2  ;;  %v1003_v6 = vld [vmem:[%s1635_s0 + $0xc0] sm:$0xff]   ;;  %v303_v16 = vsel %vm302_vm0, %v694_v3, -inf  ;;  %v759_v25 = vunpack.c.h.bf16 %v995_v2  ;;  %v320_v32 = vsel %vm302_vm0, %v695_v19, -inf  ;;  %v1127_v42 = vld [vmem:[%s1635_s0 + $0xc8] sm:$0xff]  }
   0x5   :  { %v1011_v7 = vld [vmem:[%s1635_s0 + $0x100] sm:$0xff]   ;;  %v790_v9 = vunpack.c.l.bf16 %v1003_v6  ;;  %v304_v17 = vsel %vm302_vm0, %v726_v4, -inf  ;;  %v791_v26 = vunpack.c.h.bf16 %v1003_v6  ;;  %v321_v33 = vsel %vm302_vm0, %v727_v20, -inf  ;;  %v1137_v51 = vld [vmem:[%s1635_s0 + $0x108] sm:$0xff]  }
   0x6   :  { %v1019_v8 = vld [vmem:[%s1635_s0 + $0x140] sm:$0xff]   ;;  %v822_v12 = vunpack.c.l.bf16 %v1011_v7  ;;  %v306_v18 = vsel %vm302_vm0, %v758_v5, -inf  ;;  %v305_v22 = vmax.f32 %v303_v16, %v304_v17  ;;  %v823_v31 = vunpack.c.h.bf16 %v1011_v7  ;;  %v1147_v60 = vld [vmem:[%s1635_s0 + $0x148] sm:$0xff]  }
   0x7   :  { %v1027_v10 = vld [vmem:[%s1635_s0 + $0x180] sm:$0xff]   ;;  %v854_v13 = vunpack.c.l.bf16 %v1019_v8  ;;  %v308_v24 = vsel %vm302_vm0, %v790_v9, -inf  ;;  %v323_v34 = vsel %vm302_vm0, %v759_v25, -inf  ;;  %v855_v38 = vunpack.c.h.bf16 %v1019_v8  ;;  %v1152_v61 = vld [vmem:[%s1635_s0 + $0x188] sm:$0xff]  }
   0x8   :  { %v1035_v11 = vld [vmem:[%s1635_s0 + $0x1c0] sm:$0xff]   ;;  %v886_v14 = vunpack.c.l.bf16 %v1027_v10  ;;  %v307_v27 = vmax.f32 %v305_v22, %v306_v18  ;;  %v310_v28 = vsel %vm302_vm0, %v822_v12, -inf  ;;  %v887_v39 = vunpack.c.h.bf16 %v1027_v10  ;;  %v1157_v62 = vld [vmem:[%s1635_s0 + $0x1c8] sm:$0xff]  }
   0x9   :  { %v1098_v15 = vld [vmem:[%s1635_s0 + $0x200] sm:$0xff]   ;;  %v918_v21 = vunpack.c.l.bf16 %v1035_v11  ;;  %v312_v29 = vsel %vm302_vm0, %v854_v13, -inf  ;;  %v322_v40 = vmax.f32 %v320_v32, %v321_v33  ;;  %v919_v45 = vunpack.c.h.bf16 %v1035_v11  ;;  %v1170_v10 = vld [vmem:[%s1635_s0 + $0x208] sm:$0xff]   ;;  %v1186_v32 = vld [vmem:[%s1635_s0 + $0x10] sm:$0xff]  }
   0xa   :  { %v950_v23 = vunpack.c.l.bf16 %v1098_v15  ;;  %v314_v30 = vsel %vm302_vm0, %v886_v14, -inf  ;;  %v309_v37 = vmax.f32 %v307_v27, %v308_v24  ;;  %v325_v46 = vsel %vm302_vm0, %v791_v26, -inf }
   0xb   :  { %v316_v43 = vsel %vm302_vm0, %v918_v21, -inf  ;;  %v324_v48 = vmax.f32 %v322_v40, %v323_v34  ;;  %v951_v52 = vunpack.c.h.bf16 %v1098_v15  ;;  %v327_v53 = vsel %vm302_vm0, %v823_v31, -inf }
   0xc   :  { %v318_v44 = vsel %vm302_vm0, %v950_v23, -inf  ;;  %v311_v47 = vmax.f32 %v309_v37, %v310_v28  ;;  %v762_v54 = vunpack.c.l.bf16 %v996_v41  ;;  %v794_v55 = vunpack.c.l.bf16 %v1127_v42  ;;  %v989_v37 = vld [vmem:[%s1635_s0 + $0x50] sm:$0xff]  }
   0xd   :  { %v326_v57 = vmax.f32 %v324_v48, %v325_v46  ;;  %v329_v58 = vsel %vm302_vm0, %v855_v38, -inf  ;;  %v331_v59 = vsel %vm302_vm0, %v887_v39, -inf  ;;  %v826_v63 = vunpack.c.l.bf16 %v1137_v51 }
   0xe   :  { %v313_v56 = vmax.f32 %v311_v47, %v312_v29  ;;  %v337_v0 = vsel %vm302_vm0, %v698_v49, -inf  ;;  %v338_v1 = vsel %vm302_vm0, %v730_v50, -inf  ;;  %v340_v2 = vsel %vm302_vm0, %v762_v54, -inf }
   0xf   :  { %v328_v4 = vmax.f32 %v326_v57, %v327_v53  ;;  %v333_v5 = vsel %vm302_vm0, %v919_v45, -inf  ;;  %v339_v6 = vmax.f32 %v337_v0, %v338_v1  ;;  %v858_v7 = vunpack.c.l.bf16 %v1147_v60  ;;  %v1238_v0 = vld [vmem:[%s1635_s0 + $0x1d0] sm:$0xff]  }
  0x10   :  { %v315_v3 = vmax.f32 %v313_v56, %v314_v30  ;;  %v890_v8 = vunpack.c.l.bf16 %v1152_v61  ;;  %v922_v9 = vunpack.c.l.bf16 %v1157_v62  ;;  %v342_v11 = vsel %vm302_vm0, %v794_v55, -inf }
  0x11   :  { %v330_v13 = vmax.f32 %v328_v4, %v329_v58  ;;  %v335_v14 = vsel %vm302_vm0, %v951_v52, -inf  ;;  %v341_v15 = vmax.f32 %v339_v6, %v340_v2  ;;  %v344_v16 = vsel %vm302_vm0, %v826_v63, -inf  ;;  %v1215_v52 = vld [vmem:[%s1635_s0 + $0x110] sm:$0xff]  }
  0x12   :  { %v317_v12 = vmax.f32 %v315_v3, %v316_v43  ;;  %v699_v17 = vunpack.c.h.bf16 %v1114_v35  ;;  %v731_v18 = vunpack.c.h.bf16 %v1119_v36  ;;  %v763_v19 = vunpack.c.h.bf16 %v996_v41  ;;  %v1206_v43 = vld [vmem:[%s1635_s0 + $0xd0] sm:$0xff]  }
  0x13   :  { %v332_v21 = vmax.f32 %v330_v13, %v331_v59  ;;  %v954_v22 = vunpack.c.l.bf16 %v1170_v10  ;;  %v343_v23 = vmax.f32 %v341_v15, %v342_v11  ;;  %v346_v24 = vsel %vm302_vm0, %v858_v7, -inf  ;;  %v1045_v11 = vld [vmem:[%s1635_s0 + $0x210] sm:$0xff]  }
  0x14   :  { %v319_v20 = vmax.f32 %v317_v12, %v318_v44  ;;  %v348_v25 = vsel %vm302_vm0, %v890_v8, -inf  ;;  %v350_v26 = vsel %vm302_vm0, %v922_v9, -inf  ;;  %v795_v27 = vunpack.c.h.bf16 %v1127_v42  ;;  %v997_v42 = vld [vmem:[%s1635_s0 + $0x90] sm:$0xff]  }
  0x15   :  { %v334_v29 = vmax.f32 %v332_v21, %v333_v5  ;;  %v345_v30 = vmax.f32 %v343_v23, %v344_v16  ;;  %v354_v31 = vsel %vm302_vm0, %v699_v17, -inf  ;;  %v827_v33 = vunpack.c.h.bf16 %v1137_v51 }
  0x16   :  { %v676_v28 = vpack.c.bf16 %v319_v20, %v319_v20  ;;  %v859_v34 = vunpack.c.h.bf16 %v1147_v60  ;;  %v355_v35 = vsel %vm302_vm0, %v731_v18, -inf  ;;  %v357_v36 = vsel %vm302_vm0, %v763_v19, -inf }
  0x17   :  { %v336_v38 = vmax.f32 %v334_v29, %v335_v14  ;;  %v347_v39 = vmax.f32 %v345_v30, %v346_v24  ;;  %v891_v40 = vunpack.c.h.bf16 %v1152_v61  ;;  %v356_v41 = vmax.f32 %v354_v31, %v355_v35  ;;  %v1021_v61 = vld [vmem:[%s1635_s0 + $0x150] sm:$0xff]  }
  0x18   :  { %640 = vst.msk [vmem:[%s1638_s3] sm:$0xf] %vm639_vm1, %v676_v28  ;;  %v352_v44 = vsel %vm302_vm0, %v954_v22, -inf  ;;  %v923_v45 = vunpack.c.h.bf16 %v1157_v62  ;;  %v359_v46 = vsel %vm302_vm0, %v795_v27, -inf  ;;  %v702_v47 = vunpack.c.l.bf16 %v1186_v32  ;;  %v1232_v62 = vld [vmem:[%s1635_s0 + $0x190] sm:$0xff]  }
  0x19   :  { %v677_v48 = vpack.c.bf16 %v336_v38, %v336_v38  ;;  %v349_v49 = vmax.f32 %v347_v39, %v348_v25  ;;  %v358_v50 = vmax.f32 %v356_v41, %v357_v36  ;;  %v734_v51 = vunpack.c.l.bf16 %v989_v37  ;;  %v998_v39 = vld [vmem:[%s1635_s0 + $0x98] sm:$0xff]  }
  0x1a   :  { %v955_v53 = vunpack.c.h.bf16 %v1170_v10  ;;  %v361_v54 = vsel %vm302_vm0, %v827_v33, -inf  ;;  %v766_v55 = vunpack.c.l.bf16 %v997_v42  ;;  %v798_v56 = vunpack.c.l.bf16 %v1206_v43  ;;  %v982_v33 = vld [vmem:[%s1635_s0 + $0x18] sm:$0xff]  }
  0x1b   :  { %641 = vst.msk [vmem:[%s1638_s3 + $0x4] sm:$0xf] %vm639_vm1, %v677_v48  ;;  %v351_v57 = vmax.f32 %v349_v49, %v350_v26  ;;  %v360_v58 = vmax.f32 %v358_v50, %v359_v46  ;;  %v363_v59 = vsel %vm302_vm0, %v859_v34, -inf  ;;  %v365_v60 = vsel %vm302_vm0, %v891_v40, -inf  ;;  %v990_v34 = vld [vmem:[%s1635_s0 + $0x58] sm:$0xff]  }
  0x1c   :  { %v830_v63 = vunpack.c.l.bf16 %v1215_v52  ;;  %v371_v1 = vsel %vm302_vm0, %v702_v47, -inf  ;;  %v372_v2 = vsel %vm302_vm0, %v734_v51, -inf  ;;  %v374_v3 = vsel %vm302_vm0, %v766_v55, -inf }
  0x1d   :  { %v353_v4 = vmax.f32 %v351_v57, %v352_v44  ;;  %v362_v5 = vmax.f32 %v360_v58, %v361_v54  ;;  %v367_v6 = vsel %vm302_vm0, %v923_v45, -inf  ;;  %v373_v7 = vmax.f32 %v371_v1, %v372_v2  ;;  %v1280_v44 = vld [vmem:[%s1635_s0 + $0xd8] sm:$0xff]  }
  0x1e   :  { %v369_v8 = vsel %vm302_vm0, %v955_v53, -inf  ;;  %v862_v9 = vunpack.c.l.bf16 %v1021_v61  ;;  %v894_v10 = vunpack.c.l.bf16 %v1232_v62  ;;  %v376_v12 = vsel %vm302_vm0, %v798_v56, -inf  ;;  %v1014_v53 = vld [vmem:[%s1635_s0 + $0x118] sm:$0xff]  }
  0x1f   :  { %v678_v13 = vpack.c.bf16 %v353_v4, %v353_v4  ;;  %v364_v14 = vmax.f32 %v362_v5, %v363_v59  ;;  %v926_v15 = vunpack.c.l.bf16 %v1238_v0  ;;  %v375_v16 = vmax.f32 %v373_v7, %v374_v3  ;;  %v1292_v58 = vld [vmem:[%s1635_s0 + $0x158] sm:$0xff]  }
  0x20   :  { %v378_v17 = vsel %vm302_vm0, %v830_v63, -inf  ;;  %v703_v18 = vunpack.c.h.bf16 %v1186_v32  ;;  %v735_v19 = vunpack.c.h.bf16 %v989_v37  ;;  %v767_v20 = vunpack.c.h.bf16 %v997_v42  ;;  %v1308_v63 = vld [vmem:[%s1635_s0 + $0x1d8] sm:$0xff]  }
  0x21   :  { %642 = vst.msk [vmem:[%s1638_s3 + $0x8] sm:$0xf] %vm639_vm1, %v678_v13  ;;  %v366_v21 = vmax.f32 %v364_v14, %v365_v60  ;;  %v958_v22 = vunpack.c.l.bf16 %v1045_v11  ;;  %v377_v23 = vmax.f32 %v375_v16, %v376_v12  ;;  %v799_v24 = vunpack.c.h.bf16 %v1206_v43  ;;  %v1320_v12 = vld [vmem:[%s1635_s0 + $0x218] sm:$0xff]  }
  0x22   :  { %v380_v25 = vsel %vm302_vm0, %v862_v9, -inf  ;;  %v382_v26 = vsel %vm302_vm0, %v894_v10, -inf  ;;  %v831_v27 = vunpack.c.h.bf16 %v1215_v52  ;;  %v388_v28 = vsel %vm302_vm0, %v703_v18, -inf }
  0x23   :  { %v368_v29 = vmax.f32 %v366_v21, %v367_v6  ;;  %v379_v30 = vmax.f32 %v377_v23, %v378_v17  ;;  %v389_v31 = vsel %vm302_vm0, %v735_v19, -inf  ;;  %v391_v32 = vsel %vm302_vm0, %v767_v20, -inf }
  0x24   :  { %v384_v35 = vsel %vm302_vm0, %v926_v15, -inf  ;;  %v863_v36 = vunpack.c.h.bf16 %v1021_v61  ;;  %v895_v37 = vunpack.c.h.bf16 %v1232_v62  ;;  %v390_v38 = vmax.f32 %v388_v28, %v389_v31  ;;  %v1303_v62 = vld [vmem:[%s1635_s0 + $0x198] sm:$0xff]  }
  0x25   :  { %v370_v40 = vmax.f32 %v368_v29, %v369_v8  ;;  %v381_v41 = vmax.f32 %v379_v30, %v380_v25  ;;  %v927_v42 = vunpack.c.h.bf16 %v1238_v0  ;;  %v393_v43 = vsel %vm302_vm0, %v799_v24, -inf }
  0x26   :  { %v959_v45 = vunpack.c.h.bf16 %v1045_v11  ;;  %v392_v46 = vmax.f32 %v390_v38, %v391_v32  ;;  %v706_v47 = vunpack.c.l.bf16 %v982_v33  ;;  %v738_v48 = vunpack.c.l.bf16 %v990_v34 }
  0x27   :  { %v679_v49 = vpack.c.bf16 %v370_v40, %v370_v40  ;;  %v383_v50 = vmax.f32 %v381_v41, %v382_v26  ;;  %v395_v51 = vsel %vm302_vm0, %v831_v27, -inf  ;;  %v770_v52 = vunpack.c.l.bf16 %v998_v39  ;;  %v1351_v41 = vld [vmem:[%s1635_s0 + $0xe0] sm:$0xff]  }
  0x28   :  { %v386_v54 = vsel %vm302_vm0, %v958_v22, -inf  ;;  %v394_v55 = vmax.f32 %v392_v46, %v393_v43  ;;  %v397_v56 = vsel %vm302_vm0, %v863_v36, -inf  ;;  %v802_v57 = vunpack.c.l.bf16 %v1280_v44  ;;  %v999_v36 = vld [vmem:[%s1635_s0 + $0xa0] sm:$0xff]  }
  0x29   :  { %643 = vst.msk [vmem:[%s1638_s3 + $0xc] sm:$0xf] %vm639_vm1, %v679_v49  ;;  %v385_v59 = vmax.f32 %v383_v50, %v384_v35  ;;  %v399_v60 = vsel %vm302_vm0, %v895_v37, -inf  ;;  %v401_v61 = vsel %vm302_vm0, %v927_v42, -inf  ;;  %v405_v0 = vsel %vm302_vm0, %v706_v47, -inf  ;;  %v991_v35 = vld [vmem:[%s1635_s0 + $0x60] sm:$0xff]  }
  0x2a   :  { %v396_v1 = vmax.f32 %v394_v55, %v395_v51  ;;  %v834_v2 = vunpack.c.l.bf16 %v1014_v53  ;;  %v406_v3 = vsel %vm302_vm0, %v738_v48, -inf  ;;  %v408_v4 = vsel %vm302_vm0, %v770_v52, -inf  ;;  %v1358_v46 = vld [vmem:[%s1635_s0 + $0x120] sm:$0xff]  }
  0x2b   :  { %v387_v5 = vmax.f32 %v385_v59, %v386_v54  ;;  %v403_v6 = vsel %vm302_vm0, %v959_v45, -inf  ;;  %v866_v7 = vunpack.c.l.bf16 %v1292_v58  ;;  %v407_v8 = vmax.f32 %v405_v0, %v406_v3  ;;  %v1365_v55 = vld [vmem:[%s1635_s0 + $0x160] sm:$0xff]  }
  0x2c   :  { %v398_v9 = vmax.f32 %v396_v1, %v397_v56  ;;  %v898_v10 = vunpack.c.l.bf16 %v1303_v62  ;;  %v930_v11 = vunpack.c.l.bf16 %v1308_v63  ;;  %v410_v13 = vsel %vm302_vm0, %v802_v57, -inf }
  0x2d   :  { %v680_v14 = vpack.c.bf16 %v387_v5, %v387_v5  ;;  %v409_v15 = vmax.f32 %v407_v8, %v408_v4  ;;  %v707_v16 = vunpack.c.h.bf16 %v982_v33  ;;  %v739_v17 = vunpack.c.h.bf16 %v990_v34  ;;  %v983_v34 = vld [vmem:[%s1635_s0 + $0x20] sm:$0xff]  }
  0x2e   :  { %v400_v18 = vmax.f32 %v398_v9, %v399_v60  ;;  %v412_v19 = vsel %vm302_vm0, %v834_v2, -inf  ;;  %v771_v20 = vunpack.c.h.bf16 %v998_v39  ;;  %v803_v21 = vunpack.c.h.bf16 %v1280_v44  ;;  %v1378_v60 = vld [vmem:[%s1635_s0 + $0x1a0] sm:$0xff]  }
  0x2f   :  { %644 = vst.msk [vmem:[%s1638_s3 + $0x10] sm:$0xf] %vm639_vm1, %v680_v14  ;;  %v962_v22 = vunpack.c.l.bf16 %v1320_v12  ;;  %v411_v23 = vmax.f32 %v409_v15, %v410_v13  ;;  %v414_v24 = vsel %vm302_vm0, %v866_v7, -inf  ;;  %v835_v25 = vunpack.c.h.bf16 %v1014_v53  ;;  %v1047_v9 = vld [vmem:[%s1635_s0 + $0x220] sm:$0xff]  }
  0x30   :  { %v402_v26 = vmax.f32 %v400_v18, %v401_v61  ;;  %v416_v27 = vsel %vm302_vm0, %v898_v10, -inf  ;;  %v422_v28 = vsel %vm302_vm0, %v707_v16, -inf  ;;  %v423_v29 = vsel %vm302_vm0, %v739_v17, -inf }
  0x31   :  { %v413_v30 = vmax.f32 %v411_v23, %v412_v19  ;;  %v418_v31 = vsel %vm302_vm0, %v930_v11, -inf  ;;  %v424_v32 = vmax.f32 %v422_v28, %v423_v29  ;;  %v425_v33 = vsel %vm302_vm0, %v771_v20, -inf }
  0x32   :  { %v404_v37 = vmax.f32 %v402_v26, %v403_v6  ;;  %v867_v38 = vunpack.c.h.bf16 %v1292_v58  ;;  %v899_v39 = vunpack.c.h.bf16 %v1303_v62  ;;  %v427_v40 = vsel %vm302_vm0, %v803_v21, -inf }
  0x33   :  { %v415_v42 = vmax.f32 %v413_v30, %v414_v24  ;;  %v931_v43 = vunpack.c.h.bf16 %v1308_v63  ;;  %v426_v44 = vmax.f32 %v424_v32, %v425_v33  ;;  %v429_v45 = vsel %vm302_vm0, %v835_v25, -inf  ;;  %v1383_v63 = vld [vmem:[%s1635_s0 + $0x1e0] sm:$0xff]  }
  0x34   :  { %v681_v47 = vpack.c.bf16 %v404_v37, %v404_v37  ;;  %v710_v48 = vunpack.c.l.bf16 %v983_v34  ;;  %v742_v49 = vunpack.c.l.bf16 %v991_v35  ;;  %v774_v50 = vunpack.c.l.bf16 %v999_v36  ;;  %v1000_v37 = vld [vmem:[%s1635_s0 + $0xa8] sm:$0xff]  }
  0x35   :  { %v417_v51 = vmax.f32 %v415_v42, %v416_v27  ;;  %v420_v52 = vsel %vm302_vm0, %v962_v22, -inf  ;;  %v428_v53 = vmax.f32 %v426_v44, %v427_v40  ;;  %v806_v54 = vunpack.c.l.bf16 %v1351_v41  ;;  %v1426_v42 = vld [vmem:[%s1635_s0 + $0xe8] sm:$0xff]  }
  0x36   :  { %645 = vst.msk [vmem:[%s1638_s3 + $0x14] sm:$0xf] %vm639_vm1, %v681_v47  ;;  %v963_v56 = vunpack.c.h.bf16 %v1320_v12  ;;  %v431_v57 = vsel %vm302_vm0, %v867_v38, -inf  ;;  %v433_v58 = vsel %vm302_vm0, %v899_v39, -inf  ;;  %v838_v59 = vunpack.c.l.bf16 %v1358_v46 }
  0x37   :  { %v419_v61 = vmax.f32 %v417_v51, %v418_v31  ;;  %v430_v62 = vmax.f32 %v428_v53, %v429_v45  ;;  %v439_v0 = vsel %vm302_vm0, %v710_v48, -inf  ;;  %v440_v1 = vsel %vm302_vm0, %v742_v49, -inf  ;;  %v984_v31 = vld [vmem:[%s1635_s0 + $0x28] sm:$0xff]  }
  0x38   :  { %v435_v2 = vsel %vm302_vm0, %v931_v43, -inf  ;;  %v870_v3 = vunpack.c.l.bf16 %v1365_v55  ;;  %v441_v4 = vmax.f32 %v439_v0, %v440_v1  ;;  %v442_v5 = vsel %vm302_vm0, %v774_v50, -inf  ;;  %v1016_v51 = vld [vmem:[%s1635_s0 + $0x128] sm:$0xff]  }
  0x39   :  { %v421_v6 = vmax.f32 %v419_v61, %v420_v52  ;;  %v432_v7 = vmax.f32 %v430_v62, %v431_v57  ;;  %v902_v8 = vunpack.c.l.bf16 %v1378_v60  ;;  %v444_v10 = vsel %vm302_vm0, %v806_v54, -inf  ;;  %v1454_v61 = vld [vmem:[%s1635_s0 + $0x1e8] sm:$0xff]  }
  0x3a   :  { %v934_v11 = vunpack.c.l.bf16 %v1383_v63  ;;  %v443_v12 = vmax.f32 %v441_v4, %v442_v5  ;;  %v446_v13 = vsel %vm302_vm0, %v838_v59, -inf  ;;  %v711_v14 = vunpack.c.h.bf16 %v983_v34 }
  0x3b   :  { %v682_v15 = vpack.c.bf16 %v421_v6, %v421_v6  ;;  %v434_v16 = vmax.f32 %v432_v7, %v433_v58  ;;  %v743_v17 = vunpack.c.h.bf16 %v991_v35  ;;  %v775_v18 = vunpack.c.h.bf16 %v999_v36  ;;  %v992_v36 = vld [vmem:[%s1635_s0 + $0x68] sm:$0xff]  }
  0x3c   :  { %v437_v19 = vsel %vm302_vm0, %v963_v56, -inf  ;;  %v966_v20 = vunpack.c.l.bf16 %v1047_v9  ;;  %v445_v21 = vmax.f32 %v443_v12, %v444_v10  ;;  %v807_v22 = vunpack.c.h.bf16 %v1351_v41  ;;  %v1442_v56 = vld [vmem:[%s1635_s0 + $0x168] sm:$0xff]  }
  0x3d   :  { %646 = vst.msk [vmem:[%s1638_s3 + $0x18] sm:$0xf] %vm639_vm1, %v682_v15  ;;  %v436_v23 = vmax.f32 %v434_v16, %v435_v2  ;;  %v448_v24 = vsel %vm302_vm0, %v870_v3, -inf  ;;  %v450_v25 = vsel %vm302_vm0, %v902_v8, -inf  ;;  %v839_v26 = vunpack.c.h.bf16 %v1358_v46  ;;  %v1466_v10 = vld [vmem:[%s1635_s0 + $0x228] sm:$0xff]  }
  0x3e   :  { %v447_v27 = vmax.f32 %v445_v21, %v446_v13  ;;  %v456_v28 = vsel %vm302_vm0, %v711_v14, -inf  ;;  %v457_v29 = vsel %vm302_vm0, %v743_v17, -inf  ;;  %v459_v30 = vsel %vm302_vm0, %v775_v18, -inf }
  0x3f   :  { %v438_v32 = vmax.f32 %v436_v23, %v437_v19  ;;  %v452_v33 = vsel %vm302_vm0, %v934_v11, -inf  ;;  %v871_v34 = vunpack.c.h.bf16 %v1365_v55  ;;  %v458_v35 = vmax.f32 %v456_v28, %v457_v29 }
  0x40   :  { %v449_v38 = vmax.f32 %v447_v27, %v448_v24  ;;  %v903_v39 = vunpack.c.h.bf16 %v1378_v60  ;;  %v935_v40 = vunpack.c.h.bf16 %v1383_v63  ;;  %v461_v41 = vsel %vm302_vm0, %v807_v22, -inf  ;;  %v1449_v60 = vld [vmem:[%s1635_s0 + $0x1a8] sm:$0xff]  }
  0x41   :  { %v683_v43 = vpack.c.bf16 %v438_v32, %v438_v32  ;;  %v967_v44 = vunpack.c.h.bf16 %v1047_v9  ;;  %v460_v45 = vmax.f32 %v458_v35, %v459_v30  ;;  %v714_v46 = vunpack.c.l.bf16 %v984_v31  ;;  %v985_v32 = vld [vmem:[%s1635_s0 + $0x30] sm:$0xff]  }
  0x42   :  { %v451_v47 = vmax.f32 %v449_v38, %v450_v25  ;;  %v463_v48 = vsel %vm302_vm0, %v839_v26, -inf  ;;  %v746_v49 = vunpack.c.l.bf16 %v992_v36  ;;  %v778_v50 = vunpack.c.l.bf16 %v1000_v37 }
  0x43   :  { %647 = vst.msk [vmem:[%s1638_s3 + $0x1c] sm:$0xf] %vm639_vm1, %v683_v43  ;;  %v454_v52 = vsel %vm302_vm0, %v966_v20, -inf  ;;  %v462_v53 = vmax.f32 %v460_v45, %v461_v41  ;;  %v465_v54 = vsel %vm302_vm0, %v871_v34, -inf  ;;  %v810_v55 = vunpack.c.l.bf16 %v1426_v42  ;;  %v1001_v34 = vld [vmem:[%s1635_s0 + $0xb0] sm:$0xff]  }
  0x44   :  { %v453_v57 = vmax.f32 %v451_v47, %v452_v33  ;;  %v467_v58 = vsel %vm302_vm0, %v903_v39, -inf  ;;  %v469_v59 = vsel %vm302_vm0, %v935_v40, -inf  ;;  %v473_v62 = vsel %vm302_vm0, %v714_v46, -inf  ;;  %v993_v33 = vld [vmem:[%s1635_s0 + $0x70] sm:$0xff]  }
  0x45   :  { %v464_v63 = vmax.f32 %v462_v53, %v463_v48  ;;  %v842_v0 = vunpack.c.l.bf16 %v1016_v51  ;;  %v474_v1 = vsel %vm302_vm0, %v746_v49, -inf  ;;  %v476_v2 = vsel %vm302_vm0, %v778_v50, -inf  ;;  %v1497_v39 = vld [vmem:[%s1635_s0 + $0xf0] sm:$0xff]  }
  0x46   :  { %v455_v3 = vmax.f32 %v453_v57, %v454_v52  ;;  %v471_v4 = vsel %vm302_vm0, %v967_v44, -inf  ;;  %v874_v5 = vunpack.c.l.bf16 %v1442_v56  ;;  %v475_v6 = vmax.f32 %v473_v62, %v474_v1  ;;  %v1504_v44 = vld [vmem:[%s1635_s0 + $0x130] sm:$0xff]  }
  0x47   :  { %v466_v7 = vmax.f32 %v464_v63, %v465_v54  ;;  %v906_v8 = vunpack.c.l.bf16 %v1449_v60  ;;  %v938_v9 = vunpack.c.l.bf16 %v1454_v61  ;;  %v478_v11 = vsel %vm302_vm0, %v810_v55, -inf }
  0x48   :  { %v684_v12 = vpack.c.bf16 %v455_v3, %v455_v3  ;;  %v477_v13 = vmax.f32 %v475_v6, %v476_v2  ;;  %v715_v14 = vunpack.c.h.bf16 %v984_v31  ;;  %v747_v15 = vunpack.c.h.bf16 %v992_v36 }
  0x49   :  { %v468_v16 = vmax.f32 %v466_v7, %v467_v58  ;;  %v480_v17 = vsel %vm302_vm0, %v842_v0, -inf  ;;  %v779_v18 = vunpack.c.h.bf16 %v1000_v37  ;;  %v811_v19 = vunpack.c.h.bf16 %v1426_v42 }
  0x4a   :  { %648 = vst.msk [vmem:[%s1638_s3 + $0x20] sm:$0xf] %vm639_vm1, %v684_v12  ;;  %v970_v20 = vunpack.c.l.bf16 %v1466_v10  ;;  %v479_v21 = vmax.f32 %v477_v13, %v478_v11  ;;  %v482_v22 = vsel %vm302_vm0, %v874_v5, -inf  ;;  %v843_v23 = vunpack.c.h.bf16 %v1016_v51  ;;  %v1534_v5 = vld [vmem:[%s1635_s0 + $0x1f0] sm:$0xff]  }
  0x4b   :  { %v470_v24 = vmax.f32 %v468_v16, %v469_v59  ;;  %v484_v25 = vsel %vm302_vm0, %v906_v8, -inf  ;;  %v490_v26 = vsel %vm302_vm0, %v715_v14, -inf  ;;  %v491_v27 = vsel %vm302_vm0, %v747_v15, -inf  ;;  %v1523_v59 = vld [vmem:[%s1635_s0 + $0x1b0] sm:$0xff]  }
  0x4c   :  { %v481_v28 = vmax.f32 %v479_v21, %v480_v17  ;;  %v486_v29 = vsel %vm302_vm0, %v938_v9, -inf  ;;  %v492_v30 = vmax.f32 %v490_v26, %v491_v27  ;;  %v493_v31 = vsel %vm302_vm0, %v779_v18, -inf  ;;  %v1544_v17 = vld [vmem:[%s1635_s0 + $0x230] sm:$0xff]   ;;  %v986_v27 = vld [vmem:[%s1635_s0 + $0x38] sm:$0xff]  }
  0x4d   :  { %v472_v35 = vmax.f32 %v470_v24, %v471_v4  ;;  %v875_v36 = vunpack.c.h.bf16 %v1442_v56  ;;  %v907_v37 = vunpack.c.h.bf16 %v1449_v60  ;;  %v495_v38 = vsel %vm302_vm0, %v811_v19, -inf  ;;  %v1518_v56 = vld [vmem:[%s1635_s0 + $0x170] sm:$0xff]  }
  0x4e   :  { %v483_v40 = vmax.f32 %v481_v28, %v482_v22  ;;  %v939_v41 = vunpack.c.h.bf16 %v1454_v61  ;;  %v494_v42 = vmax.f32 %v492_v30, %v493_v31  ;;  %v497_v43 = vsel %vm302_vm0, %v843_v23, -inf }
  0x4f   :  { %v685_v45 = vpack.c.bf16 %v472_v35, %v472_v35  ;;  %v718_v46 = vunpack.c.l.bf16 %v985_v32  ;;  %v750_v47 = vunpack.c.l.bf16 %v993_v33  ;;  %v782_v48 = vunpack.c.l.bf16 %v1001_v34 }
  0x50   :  { %v485_v49 = vmax.f32 %v483_v40, %v484_v25  ;;  %v496_v50 = vmax.f32 %v494_v42, %v495_v38  ;;  %v814_v51 = vunpack.c.l.bf16 %v1497_v39  ;;  %v488_v52 = vsel %vm302_vm0, %v970_v20, -inf  ;;  %v1010_v38 = vld [vmem:[%s1635_s0 + $0xf8] sm:$0xff]  }
  0x51   :  { %649 = vst.msk [vmem:[%s1638_s3 + $0x24] sm:$0xf] %vm639_vm1, %v685_v45  ;;  %v971_v53 = vunpack.c.h.bf16 %v1466_v10  ;;  %v499_v54 = vsel %vm302_vm0, %v875_v36, -inf  ;;  %v846_v55 = vunpack.c.l.bf16 %v1504_v44  ;;  %v507_v60 = vsel %vm302_vm0, %v718_v46, -inf }
  0x52   :  { %v487_v57 = vmax.f32 %v485_v49, %v486_v29  ;;  %v498_v58 = vmax.f32 %v496_v50, %v497_v43  ;;  %v508_v61 = vsel %vm302_vm0, %v750_v47, -inf  ;;  %v501_v62 = vsel %vm302_vm0, %v907_v37, -inf  ;;  %v1018_v47 = vld [vmem:[%s1635_s0 + $0x138] sm:$0xff]  }
  0x53   :  { %v503_v63 = vsel %vm302_vm0, %v939_v41, -inf  ;;  %v509_v0 = vmax.f32 %v507_v60, %v508_v61  ;;  %v510_v1 = vsel %vm302_vm0, %v782_v48, -inf  ;;  %v878_v4 = vunpack.c.l.bf16 %v1518_v56 }
  0x54   :  { %v489_v2 = vmax.f32 %v487_v57, %v488_v52  ;;  %v500_v3 = vmax.f32 %v498_v58, %v499_v54  ;;  %v512_v6 = vsel %vm302_vm0, %v814_v51, -inf  ;;  %v910_v7 = vunpack.c.l.bf16 %v1523_v59  ;;  %v1026_v52 = vld [vmem:[%s1635_s0 + $0x178] sm:$0xff]  }
  0x55   :  { %v511_v8 = vmax.f32 %v509_v0, %v510_v1  ;;  %v514_v9 = vsel %vm302_vm0, %v846_v55, -inf  ;;  %v719_v10 = vunpack.c.h.bf16 %v985_v32  ;;  %v751_v13 = vunpack.c.h.bf16 %v993_v33  ;;  %v994_v32 = vld [vmem:[%s1635_s0 + $0x78] sm:$0xff]  }
  0x56   :  { %v686_v11 = vpack.c.bf16 %v489_v2, %v489_v2  ;;  %v502_v12 = vmax.f32 %v500_v3, %v501_v62  ;;  %v783_v14 = vunpack.c.h.bf16 %v1001_v34  ;;  %v505_v15 = vsel %vm302_vm0, %v971_v53, -inf  ;;  %v1002_v33 = vld [vmem:[%s1635_s0 + $0xb8] sm:$0xff]  }
  0x57   :  { %v942_v16 = vunpack.c.l.bf16 %v1534_v5  ;;  %v513_v18 = vmax.f32 %v511_v8, %v512_v6  ;;  %v815_v19 = vunpack.c.h.bf16 %v1497_v39  ;;  %v516_v21 = vsel %vm302_vm0, %v878_v4, -inf }
  0x58   :  { %650 = vst.msk [vmem:[%s1638_s3 + $0x28] sm:$0xf] %vm639_vm1, %v686_v11  ;;  %v504_v20 = vmax.f32 %v502_v12, %v503_v63  ;;  %v847_v22 = vunpack.c.h.bf16 %v1504_v44  ;;  %v524_v24 = vsel %vm302_vm0, %v719_v10, -inf  ;;  %v525_v25 = vsel %vm302_vm0, %v751_v13, -inf  ;;  %v1050_v12 = vld [vmem:[%s1635_s0 + $0x238] sm:$0xff]  }
  0x59   :  { %v515_v23 = vmax.f32 %v513_v18, %v514_v9  ;;  %v527_v26 = vsel %vm302_vm0, %v783_v14, -inf  ;;  %v974_v29 = vunpack.c.l.bf16 %v1544_v17  ;;  %v518_v30 = vsel %vm302_vm0, %v910_v7, -inf }
  0x5a   :  { %v506_v28 = vmax.f32 %v504_v20, %v505_v15  ;;  %v526_v31 = vmax.f32 %v524_v24, %v525_v25  ;;  %v520_v35 = vsel %vm302_vm0, %v942_v16, -inf  ;;  %v879_v36 = vunpack.c.h.bf16 %v1518_v56  ;;  %v1034_v56 = vld [vmem:[%s1635_s0 + $0x1b8] sm:$0xff]  }
  0x5b   :  { %v517_v34 = vmax.f32 %v515_v23, %v516_v21  ;;  %v529_v37 = vsel %vm302_vm0, %v815_v19, -inf  ;;  %v911_v40 = vunpack.c.h.bf16 %v1523_v59  ;;  %v722_v42 = vunpack.c.l.bf16 %v986_v27 }
  0x5c   :  { %v687_v39 = vpack.c.bf16 %v506_v28, %v506_v28  ;;  %v528_v41 = vmax.f32 %v526_v31, %v527_v26  ;;  %v531_v44 = vsel %vm302_vm0, %v847_v22, -inf  ;;  %v754_v45 = vunpack.c.l.bf16 %v994_v32 }
  0x5d   :  { %v519_v43 = vmax.f32 %v517_v34, %v518_v30  ;;  %v786_v46 = vunpack.c.l.bf16 %v1002_v33  ;;  %v522_v48 = vsel %vm302_vm0, %v974_v29, -inf  ;;  %v943_v49 = vunpack.c.h.bf16 %v1534_v5  ;;  %v1042_v5 = vld [vmem:[%s1635_s0 + $0x1f8] sm:$0xff]  }
  0x5e   :  { %651 = vst.msk [vmem:[%s1638_s3 + $0x2c] sm:$0xf] %vm639_vm1, %v687_v39  ;;  %v530_v50 = vmax.f32 %v528_v41, %v529_v37  ;;  %v818_v51 = vunpack.c.l.bf16 %v1010_v38  ;;  %v975_v54 = vunpack.c.h.bf16 %v1544_v17  ;;  %v533_v55 = vsel %vm302_vm0, %v879_v36, -inf }
  0x5f   :  { %v521_v53 = vmax.f32 %v519_v43, %v520_v35  ;;  %v541_v57 = vsel %vm302_vm0, %v722_v42, -inf  ;;  %v850_v59 = vunpack.c.l.bf16 %v1018_v47  ;;  %v542_v60 = vsel %vm302_vm0, %v754_v45, -inf }
  0x60   :  { %v532_v58 = vmax.f32 %v530_v50, %v531_v44  ;;  %v544_v61 = vsel %vm302_vm0, %v786_v46, -inf  ;;  %v535_v63 = vsel %vm302_vm0, %v911_v40, -inf  ;;  %v882_v0 = vunpack.c.l.bf16 %v1026_v52 }
  0x61   :  { %v523_v62 = vmax.f32 %v521_v53, %v522_v48  ;;  %v543_v1 = vmax.f32 %v541_v57, %v542_v60  ;;  %v537_v3 = vsel %vm302_vm0, %v943_v49, -inf  ;;  %v914_v4 = vunpack.c.l.bf16 %v1034_v56 }
  0x62   :  { %v534_v2 = vmax.f32 %v532_v58, %v533_v55  ;;  %v546_v6 = vsel %vm302_vm0, %v818_v51, -inf  ;;  %v723_v9 = vunpack.c.h.bf16 %v986_v27  ;;  %v755_v10 = vunpack.c.h.bf16 %v994_v32 }
  0x63   :  { %v688_v7 = vpack.c.bf16 %v523_v62, %v523_v62  ;;  %v545_v8 = vmax.f32 %v543_v1, %v544_v61  ;;  %v548_v13 = vsel %vm302_vm0, %v850_v59, -inf  ;;  %v787_v14 = vunpack.c.h.bf16 %v1002_v33 }
  0x64   :  { %v536_v11 = vmax.f32 %v534_v2, %v535_v63  ;;  %v819_v15 = vunpack.c.h.bf16 %v1010_v38  ;;  %v539_v16 = vsel %vm302_vm0, %v975_v54, -inf  ;;  %v946_v17 = vunpack.c.l.bf16 %v1042_v5 }
  0x65   :  { %652 = vst.msk [vmem:[%s1638_s3 + $0x30] sm:$0xf] %vm639_vm1, %v688_v7  ;;  %v547_v18 = vmax.f32 %v545_v8, %v546_v6  ;;  %v550_v19 = vsel %vm302_vm0, %v882_v0, -inf  ;;  %v851_v21 = vunpack.c.h.bf16 %v1018_v47  ;;  %v558_v22 = vsel %vm302_vm0, %v723_v9, -inf }
  0x66   :  { %v538_v20 = vmax.f32 %v536_v11, %v537_v3  ;;  %v559_v23 = vsel %vm302_vm0, %v755_v10, -inf  ;;  %v978_v24 = vunpack.c.l.bf16 %v1050_v12  ;;  %v561_v27 = vsel %vm302_vm0, %v787_v14, -inf }
  0x67   :  { %v549_v25 = vmax.f32 %v547_v18, %v548_v13  ;;  %v560_v26 = vmax.f32 %v558_v22, %v559_v23  ;;  %v552_v29 = vsel %vm302_vm0, %v914_v4, -inf  ;;  %v883_v30 = vunpack.c.h.bf16 %v1026_v52 }
  0x68   :  { %v540_v28 = vmax.f32 %v538_v20, %v539_v16  ;;  %v563_v31 = vsel %vm302_vm0, %v819_v15, -inf  ;;  %v554_v35 = vsel %vm302_vm0, %v946_v17, -inf  ;;  %v915_v36 = vunpack.c.h.bf16 %v1034_v56 }
  0x69   :  { %v551_v32 = vmax.f32 %v549_v25, %v550_v19  ;;  %v562_v33 = vmax.f32 %v560_v26, %v561_v27  ;;  %v565_v37 = vsel %vm302_vm0, %v851_v21, -inf  ;;  %v556_v40 = vsel %vm302_vm0, %v978_v24, -inf }
  0x6a   :  { %v689_v34 = vpack.c.bf16 %v540_v28, %v540_v28  ;;  %v947_v41 = vunpack.c.h.bf16 %v1042_v5  ;;  %v567_v42 = vsel %vm302_vm0, %v883_v30, -inf  ;;  %v979_v45 = vunpack.c.h.bf16 %v1050_v12 }
  0x6b   :  { %v553_v38 = vmax.f32 %v551_v32, %v552_v29  ;;  %v564_v39 = vmax.f32 %v562_v33, %v563_v31  ;;  %v569_v46 = vsel %vm302_vm0, %v915_v36, -inf }
  0x6c   :  { %653 = vst.msk [vmem:[%s1638_s3 + $0x34] sm:$0xf] %vm639_vm1, %v689_v34  ;;  %v571_v49 = vsel %vm302_vm0, %v947_v41, -inf  ;;  %v573_v52 = vsel %vm302_vm0, %v979_v45, -inf }
  0x6d   :  { %v555_v43 = vmax.f32 %v553_v38, %v554_v35  ;;  %v566_v44 = vmax.f32 %v564_v39, %v565_v37 }
  0x6f   :  { %v557_v47 = vmax.f32 %v555_v43, %v556_v40  ;;  %v568_v48 = vmax.f32 %v566_v44, %v567_v42 }
  0x71   :  { %v690_v50 = vpack.c.bf16 %v557_v47, %v557_v47  ;;  %v570_v51 = vmax.f32 %v568_v48, %v569_v46 }
  0x73   :  { %654 = vst.msk [vmem:[%s1638_s3 + $0x38] sm:$0xf] %vm639_vm1, %v690_v50  ;;  %v572_v53 = vmax.f32 %v570_v51, %v571_v49 }
  0x75   :  { %v574_v54 = vmax.f32 %v572_v53, %v573_v52 }
  0x77   :  { %v691_v55 = vpack.c.bf16 %v574_v54, %v574_v54 }
  0x79   :  { %655 = vst.msk [vmem:[%s1638_s3 + $0x3c] sm:$0xf] %vm639_vm1, %v691_v55 }

// kernel: densenet_forward.18
= control target key start
LH: loop header
LB: loop body
LE: loop exit
PB: predicated region body
PF: predicated region fallthrough
CT: control target
= control target key end

     0   :  { %v2222_v0 = vmov 0   ;;  %s2754_s1 = inlined_call_operand.vmem [shape: bf16[256,128], index: 1, kind: input, shape index: {}]   ;;  %s2755_s0 = inlined_call_operand.vmem [shape: bf16[512,256], index: 0, kind: input, shape index: {}]   ;;  %s2756_s2 = inlined_call_operand.vmem [shape: f32[1,128], index: 2, kind: input, shape index: {}]   ;;  %s2757_s3 = inlined_call_operand.vmem [shape: f32[1,128], index: 3, kind: input, shape index: {}]   ;;  %s2758_s4 = inlined_call_operand.vmem [shape: bf16[512,128], index: 4, kind: output, shape index: {}]  }
   0x1   :  { %662 = vmatprep.subr.bf16.mxu0 %v2222_v0  ;;  %2077 = vmatprep.subr.bf16.mxu1 %v2222_v0  ;;  %v2110_v1 = vld [vmem:[%s2754_s1] sm:$0xff]   ;;  %v2111_v2 = vld [vmem:[%s2754_s1 + $0x8] sm:$0xff]   ;;  %v2112_v3 = vld [vmem:[%s2754_s1 + $0x10] sm:$0xff]  }
   0x2   :  { %663 = vmatpush1.bf16.msra.mxu0 %v2110_v1  ;;  %2093 = vmatpush1.bf16.msra.mxu1 %v2110_v1  ;;  %v2113_v4 = vld [vmem:[%s2754_s1 + $0x18] sm:$0xff]   ;;  %v2114_v5 = vld [vmem:[%s2754_s1 + $0x20] sm:$0xff]   ;;  %v2115_v7 = vld [vmem:[%s2754_s1 + $0x28] sm:$0xff]  }
   0x3   :  { %664 = vmatprep.subr.bf16.mxu0 %v2222_v0  ;;  %2078 = vmatprep.subr.bf16.mxu1 %v2222_v0  ;;  %v2128_v6 = vld [vmem:[%s2755_s0 + $0x4] ss:$8 sps:$4 sm:$0xff]   ;;  %v2116_v9 = vld [vmem:[%s2754_s1 + $0x30] sm:$0xff]   ;;  %v2117_v10 = vld [vmem:[%s2754_s1 + $0x38] sm:$0xff]  }
   0x4   :  { %v2131_v8 = vld [vmem:[%s2755_s0 + $0x104] ss:$8 sps:$4 sm:$0xff]   ;;  %694 = vmatprep.mubr.bf16.mxu0 %v2128_v6  ;;  %v2120_v13 = vld [vmem:[%s2754_s1 + $0x50] sm:$0xff]   ;;  %v2121_v14 = vld [vmem:[%s2754_s1 + $0x58] sm:$0xff]  }
   0x5   :  { %822 = vmatprep.mubr.bf16.mxu1 %v2131_v8  ;;  %v2118_v11 = vld [vmem:[%s2754_s1 + $0x40] sm:$0xff]   ;;  %v2119_v12 = vld [vmem:[%s2754_s1 + $0x48] sm:$0xff]   ;;  %v2124_v17 = vld [vmem:[%s2754_s1 + $0x70] sm:$0xff]  }
   0x6   :  { %665 = vmatpush1.bf16.msra.mxu0 %v2111_v2  ;;  %2094 = vmatpush1.bf16.msra.mxu1 %v2111_v2  ;;  %v2122_v15 = vld [vmem:[%s2754_s1 + $0x60] sm:$0xff]   ;;  %v2123_v16 = vld [vmem:[%s2754_s1 + $0x68] sm:$0xff]   ;;  %v2125_v18 = vld [vmem:[%s2754_s1 + $0x78] sm:$0xff]  }
   0x7   :  { %666 = vmatprep.subr.bf16.mxu0 %v2222_v0  ;;  %2079 = vmatprep.subr.bf16.mxu1 %v2222_v0  ;;  %v2126_v19 = vld [vmem:[%s2755_s0] ss:$8 sps:$4 sm:$0xff]   ;;  %v2132_v21 = vld [vmem:[%s2755_s0 + $0x14] ss:$8 sps:$4 sm:$0xff]   ;;  %v2136_v23 = vld [vmem:[%s2755_s0 + $0x10] ss:$8 sps:$4 sm:$0xff]  }
   0x8   :  { %v2129_v20 = vld [vmem:[%s2755_s0 + $0x100] ss:$8 sps:$4 sm:$0xff]   ;;  %v2134_v22 = vld [vmem:[%s2755_s0 + $0x114] ss:$8 sps:$4 sm:$0xff]   ;;  %v2137_v24 = vld [vmem:[%s2755_s0 + $0x110] ss:$8 sps:$4 sm:$0xff]  }
   0x9   :  { %v2138_v25 = vld [vmem:[%s2755_s0 + $0x24] ss:$8 sps:$4 sm:$0xff]   ;;  %v2142_v27 = vld [vmem:[%s2755_s0 + $0x20] ss:$8 sps:$4 sm:$0xff]   ;;  %v2144_v29 = vld [vmem:[%s2755_s0 + $0x34] ss:$8 sps:$4 sm:$0xff]  }
   0xa   :  { %667 = vmatpush1.bf16.msra.mxu0 %v2112_v3  ;;  %2095 = vmatpush1.bf16.msra.mxu1 %v2112_v3  ;;  %v2140_v26 = vld [vmem:[%s2755_s0 + $0x124] ss:$8 sps:$4 sm:$0xff]   ;;  %v2143_v28 = vld [vmem:[%s2755_s0 + $0x120] ss:$8 sps:$4 sm:$0xff]   ;;  %v2146_v30 = vld [vmem:[%s2755_s0 + $0x134] ss:$8 sps:$4 sm:$0xff]  }
   0xb   :  { %668 = vmatprep.subr.bf16.mxu0 %v2222_v0  ;;  %2080 = vmatprep.subr.bf16.mxu1 %v2222_v0  ;;  %v2148_v31 = vld [vmem:[%s2755_s0 + $0x30] ss:$8 sps:$4 sm:$0xff]   ;;  %v2150_v33 = vld [vmem:[%s2755_s0 + $0x44] ss:$8 sps:$4 sm:$0xff]   ;;  %v2154_v35 = vld [vmem:[%s2755_s0 + $0x40] ss:$8 sps:$4 sm:$0xff]  }
   0xc   :  { %v2149_v32 = vld [vmem:[%s2755_s0 + $0x130] ss:$8 sps:$4 sm:$0xff]   ;;  %v2152_v34 = vld [vmem:[%s2755_s0 + $0x144] ss:$8 sps:$4 sm:$0xff]   ;;  %v2155_v36 = vld [vmem:[%s2755_s0 + $0x140] ss:$8 sps:$4 sm:$0xff]  }
   0xd   :  { %v2156_v37 = vld [vmem:[%s2755_s0 + $0x54] ss:$8 sps:$4 sm:$0xff]   ;;  %v2160_v39 = vld [vmem:[%s2755_s0 + $0x50] ss:$8 sps:$4 sm:$0xff]   ;;  %v2162_v41 = vld [vmem:[%s2755_s0 + $0x64] ss:$8 sps:$4 sm:$0xff]  }
   0xe   :  { %669 = vmatpush1.bf16.msra.mxu0 %v2113_v4  ;;  %2096 = vmatpush1.bf16.msra.mxu1 %v2113_v4  ;;  %v2158_v38 = vld [vmem:[%s2755_s0 + $0x154] ss:$8 sps:$4 sm:$0xff]   ;;  %v2161_v40 = vld [vmem:[%s2755_s0 + $0x150] ss:$8 sps:$4 sm:$0xff]   ;;  %v2164_v42 = vld [vmem:[%s2755_s0 + $0x164] ss:$8 sps:$4 sm:$0xff]  }
   0xf   :  { %670 = vmatprep.subr.bf16.mxu0 %v2222_v0  ;;  %2081 = vmatprep.subr.bf16.mxu1 %v2222_v0  ;;  %v2166_v43 = vld [vmem:[%s2755_s0 + $0x60] ss:$8 sps:$4 sm:$0xff]   ;;  %v2168_v45 = vld [vmem:[%s2755_s0 + $0x74] ss:$8 sps:$4 sm:$0xff]   ;;  %v2172_v47 = vld [vmem:[%s2755_s0 + $0x70] ss:$8 sps:$4 sm:$0xff]  }
  0x10   :  { %v2167_v44 = vld [vmem:[%s2755_s0 + $0x160] ss:$8 sps:$4 sm:$0xff]   ;;  %v2170_v46 = vld [vmem:[%s2755_s0 + $0x174] ss:$8 sps:$4 sm:$0xff]   ;;  %v2173_v48 = vld [vmem:[%s2755_s0 + $0x170] ss:$8 sps:$4 sm:$0xff]  }
  0x11   :  { %v2174_v49 = vld [vmem:[%s2755_s0 + $0x84] ss:$8 sps:$4 sm:$0xff]   ;;  %v2178_v51 = vld [vmem:[%s2755_s0 + $0x80] ss:$8 sps:$4 sm:$0xff]   ;;  %v2180_v53 = vld [vmem:[%s2755_s0 + $0x94] ss:$8 sps:$4 sm:$0xff]  }
  0x12   :  { %671 = vmatpush1.bf16.msra.mxu0 %v2114_v5  ;;  %2097 = vmatpush1.bf16.msra.mxu1 %v2114_v5  ;;  %v2176_v50 = vld [vmem:[%s2755_s0 + $0x184] ss:$8 sps:$4 sm:$0xff]   ;;  %v2179_v52 = vld [vmem:[%s2755_s0 + $0x180] ss:$8 sps:$4 sm:$0xff]   ;;  %v2182_v54 = vld [vmem:[%s2755_s0 + $0x194] ss:$8 sps:$4 sm:$0xff]  }
  0x13   :  { %672 = vmatprep.subr.bf16.mxu0 %v2222_v0  ;;  %2082 = vmatprep.subr.bf16.mxu1 %v2222_v0  ;;  %v2184_v55 = vld [vmem:[%s2755_s0 + $0x90] ss:$8 sps:$4 sm:$0xff]   ;;  %v2186_v57 = vld [vmem:[%s2755_s0 + $0xa4] ss:$8 sps:$4 sm:$0xff]   ;;  %v2190_v59 = vld [vmem:[%s2755_s0 + $0xa0] ss:$8 sps:$4 sm:$0xff]  }
  0x14   :  { %v2185_v56 = vld [vmem:[%s2755_s0 + $0x190] ss:$8 sps:$4 sm:$0xff]   ;;  %v2188_v58 = vld [vmem:[%s2755_s0 + $0x1a4] ss:$8 sps:$4 sm:$0xff]   ;;  %v2191_v60 = vld [vmem:[%s2755_s0 + $0x1a0] ss:$8 sps:$4 sm:$0xff]  }
  0x15   :  { %v2192_v61 = vld [vmem:[%s2755_s0 + $0xb4] ss:$8 sps:$4 sm:$0xff]   ;;  %v2196_v63 = vld [vmem:[%s2755_s0 + $0xb0] ss:$8 sps:$4 sm:$0xff]   ;;  %v2198_v1 = vld [vmem:[%s2755_s0 + $0xc4] ss:$8 sps:$4 sm:$0xff]  }
  0x16   :  { %673 = vmatpush1.bf16.msra.mxu0 %v2115_v7  ;;  %2098 = vmatpush1.bf16.msra.mxu1 %v2115_v7  ;;  %v2194_v62 = vld [vmem:[%s2755_s0 + $0x1b4] ss:$8 sps:$4 sm:$0xff]   ;;  %v2200_v2 = vld [vmem:[%s2755_s0 + $0x1c4] ss:$8 sps:$4 sm:$0xff]   ;;  %v2202_v3 = vld [vmem:[%s2755_s0 + $0xc0] ss:$8 sps:$4 sm:$0xff]  }
  0x17   :  { %674 = vmatprep.subr.bf16.mxu0 %v2222_v0  ;;  %2083 = vmatprep.subr.bf16.mxu1 %v2222_v0  ;;  %v2203_v4 = vld [vmem:[%s2755_s0 + $0x1c0] ss:$8 sps:$4 sm:$0xff]   ;;  %v2204_v5 = vld [vmem:[%s2755_s0 + $0xd4] ss:$8 sps:$4 sm:$0xff]   ;;  %v2208_v7 = vld [vmem:[%s2755_s0 + $0xd0] ss:$8 sps:$4 sm:$0xff]  }
  0x18   :  { %v2206_v6 = vld [vmem:[%s2755_s0 + $0x1d4] ss:$8 sps:$4 sm:$0xff]   ;;  %v2209_v8 = vld [vmem:[%s2755_s0 + $0x1d0] ss:$8 sps:$4 sm:$0xff]  }
  0x1a   :  { %675 = vmatpush1.bf16.msra.mxu0 %v2116_v9  ;;  %2099 = vmatpush1.bf16.msra.mxu1 %v2116_v9  ;;  %v2210_v9 = vld [vmem:[%s2755_s0 + $0xe4] ss:$8 sps:$4 sm:$0xff]  }
  0x1b   :  { %676 = vmatprep.subr.bf16.mxu0 %v2222_v0  ;;  %2084 = vmatprep.subr.bf16.mxu1 %v2222_v0 }
  0x1e   :  { %677 = vmatpush1.bf16.msra.mxu0 %v2117_v10  ;;  %2100 = vmatpush1.bf16.msra.mxu1 %v2117_v10  ;;  %v2212_v10 = vld [vmem:[%s2755_s0 + $0x1e4] ss:$8 sps:$4 sm:$0xff]  }
  0x1f   :  { %678 = vmatprep.subr.bf16.mxu0 %v2222_v0  ;;  %2085 = vmatprep.subr.bf16.mxu1 %v2222_v0 }
  0x22   :  { %679 = vmatpush1.bf16.msra.mxu0 %v2118_v11  ;;  %2101 = vmatpush1.bf16.msra.mxu1 %v2118_v11  ;;  %v2214_v11 = vld [vmem:[%s2755_s0 + $0xe0] ss:$8 sps:$4 sm:$0xff]  }
  0x23   :  { %680 = vmatprep.subr.bf16.mxu0 %v2222_v0  ;;  %2086 = vmatprep.subr.bf16.mxu1 %v2222_v0 }
  0x26   :  { %681 = vmatpush1.bf16.msra.mxu0 %v2119_v12  ;;  %2102 = vmatpush1.bf16.msra.mxu1 %v2119_v12  ;;  %v2215_v12 = vld [vmem:[%s2755_s0 + $0x1e0] ss:$8 sps:$4 sm:$0xff]  }
  0x27   :  { %682 = vmatprep.subr.bf16.mxu0 %v2222_v0  ;;  %2087 = vmatprep.subr.bf16.mxu1 %v2222_v0 }
  0x2a   :  { %683 = vmatpush1.bf16.msra.mxu0 %v2120_v13  ;;  %2103 = vmatpush1.bf16.msra.mxu1 %v2120_v13  ;;  %v2216_v13 = vld [vmem:[%s2755_s0 + $0xf4] ss:$8 sps:$4 sm:$0xff]  }
  0x2b   :  { %684 = vmatprep.subr.bf16.mxu0 %v2222_v0  ;;  %2088 = vmatprep.subr.bf16.mxu1 %v2222_v0 }
  0x2e   :  { %685 = vmatpush1.bf16.msra.mxu0 %v2121_v14  ;;  %2104 = vmatpush1.bf16.msra.mxu1 %v2121_v14  ;;  %v2218_v14 = vld [vmem:[%s2755_s0 + $0x1f4] ss:$8 sps:$4 sm:$0xff]  }
  0x2f   :  { %686 = vmatprep.subr.bf16.mxu0 %v2222_v0  ;;  %2089 = vmatprep.subr.bf16.mxu1 %v2222_v0 }
  0x32   :  { %687 = vmatpush1.bf16.msra.mxu0 %v2122_v15  ;;  %2105 = vmatpush1.bf16.msra.mxu1 %v2122_v15  ;;  %v2220_v15 = vld [vmem:[%s2755_s0 + $0xf0] ss:$8 sps:$4 sm:$0xff]  }
  0x33   :  { %688 = vmatprep.subr.bf16.mxu0 %v2222_v0  ;;  %2090 = vmatprep.subr.bf16.mxu1 %v2222_v0 }
  0x36   :  { %689 = vmatpush1.bf16.msra.mxu0 %v2123_v16  ;;  %2106 = vmatpush1.bf16.msra.mxu1 %v2123_v16  ;;  %v2221_v16 = vld [vmem:[%s2755_s0 + $0x1f0] ss:$8 sps:$4 sm:$0xff]  }
  0x37   :  { %690 = vmatprep.subr.bf16.mxu0 %v2222_v0  ;;  %2091 = vmatprep.subr.bf16.mxu1 %v2222_v0 }
  0x3a   :  { %691 = vmatpush1.bf16.msra.mxu0 %v2124_v17  ;;  %2107 = vmatpush1.bf16.msra.mxu1 %v2124_v17  ;;  %v2523_v17 = vld [vmem:[%s2756_s2] ss:$0 sm:$0xff] }
  0x3b   :  { %692 = vmatprep.subr.bf16.mxu0 %v2222_v0  ;;  %2092 = vmatprep.subr.bf16.mxu1 %v2222_v0  ;;  %v2197_v0 = vld [vmem:[%s2755_s0 + $0x1b0] ss:$8 sps:$4 sm:$0xff]  }
  0x3e   :  { %693 = vmatpush1.bf16.msra.mxu0 %v2125_v18  ;;  %2108 = vmatpush1.bf16.msra.mxu1 %v2125_v18 }
  0x41   :  { %695 = vmatmul.mubr.bf16.vlgmr.msra.gmra.mrb[0].mxu0 %v2126_v19  ;;  %823 = vmatmul.mubr.bf16.vlgmr.msra.gmra.mrb[0].mxu1 %v2129_v20  ;;  %v2528_v19 = vld [vmem:[%s2757_s3] ss:$0 sm:$0xff] }
  0x42   :  { %702 = vmatprep.mubr.bf16.mxu0 %v2132_v21  ;;  %830 = vmatprep.mubr.bf16.mxu1 %v2134_v22 }
  0x49   :  { %703 = vmatmul.mubr.bf16.gmra.mrb[4].mxu0 %v2136_v23  ;;  %831 = vmatmul.mubr.bf16.gmra.mrb[4].mxu1 %v2137_v24 }
  0x4a   :  { %710 = vmatprep.mubr.bf16.mxu0 %v2138_v25  ;;  %838 = vmatprep.mubr.bf16.mxu1 %v2140_v26 }
  0x51   :  { %711 = vmatmul.mubr.bf16.gmra.mrb[8].mxu0 %v2142_v27  ;;  %839 = vmatmul.mubr.bf16.gmra.mrb[8].mxu1 %v2143_v28 }
  0x52   :  { %718 = vmatprep.mubr.bf16.mxu0 %v2144_v29  ;;  %846 = vmatprep.mubr.bf16.mxu1 %v2146_v30 }
  0x59   :  { %719 = vmatmul.mubr.bf16.gmra.mrb[12].mxu0 %v2148_v31  ;;  %847 = vmatmul.mubr.bf16.gmra.mrb[12].mxu1 %v2149_v32 }
  0x5a   :  { %726 = vmatprep.mubr.bf16.mxu0 %v2150_v33  ;;  %854 = vmatprep.mubr.bf16.mxu1 %v2152_v34 }
  0x61   :  { %727 = vmatmul.mubr.bf16.gmra.mrb[16].mxu0 %v2154_v35  ;;  %855 = vmatmul.mubr.bf16.gmra.mrb[16].mxu1 %v2155_v36 }
  0x62   :  { %734 = vmatprep.mubr.bf16.mxu0 %v2156_v37  ;;  %862 = vmatprep.mubr.bf16.mxu1 %v2158_v38 }
  0x69   :  { %735 = vmatmul.mubr.bf16.gmra.mrb[20].mxu0 %v2160_v39  ;;  %863 = vmatmul.mubr.bf16.gmra.mrb[20].mxu1 %v2161_v40 }
  0x6a   :  { %742 = vmatprep.mubr.bf16.mxu0 %v2162_v41  ;;  %870 = vmatprep.mubr.bf16.mxu1 %v2164_v42 }
  0x71   :  { %743 = vmatmul.mubr.bf16.gmra.mrb[24].mxu0 %v2166_v43  ;;  %871 = vmatmul.mubr.bf16.gmra.mrb[24].mxu1 %v2167_v44 }
  0x72   :  { %750 = vmatprep.mubr.bf16.mxu0 %v2168_v45  ;;  %878 = vmatprep.mubr.bf16.mxu1 %v2170_v46 }
  0x79   :  { %751 = vmatmul.mubr.bf16.gmra.mrb[28].mxu0 %v2172_v47  ;;  %879 = vmatmul.mubr.bf16.gmra.mrb[28].mxu1 %v2173_v48 }
  0x7a   :  { %758 = vmatprep.mubr.bf16.mxu0 %v2174_v49  ;;  %886 = vmatprep.mubr.bf16.mxu1 %v2176_v50 }
  0x81   :  { %759 = vmatmul.mubr.bf16.gmra.mrb[32].mxu0 %v2178_v51  ;;  %887 = vmatmul.mubr.bf16.gmra.mrb[32].mxu1 %v2179_v52 }
  0x82   :  { %766 = vmatprep.mubr.bf16.mxu0 %v2180_v53  ;;  %894 = vmatprep.mubr.bf16.mxu1 %v2182_v54 }
  0x89   :  { %767 = vmatmul.mubr.bf16.gmra.mrb[36].mxu0 %v2184_v55  ;;  %895 = vmatmul.mubr.bf16.gmra.mrb[36].mxu1 %v2185_v56 }
  0x8a   :  { %774 = vmatprep.mubr.bf16.mxu0 %v2186_v57  ;;  %902 = vmatprep.mubr.bf16.mxu1 %v2188_v58 }
  0x91   :  { %775 = vmatmul.mubr.bf16.gmra.mrb[40].mxu0 %v2190_v59  ;;  %903 = vmatmul.mubr.bf16.gmra.mrb[40].mxu1 %v2191_v60 }
  0x92   :  { %782 = vmatprep.mubr.bf16.mxu0 %v2192_v61  ;;  %910 = vmatprep.mubr.bf16.mxu1 %v2194_v62 }
  0x99   :  { %783 = vmatmul.mubr.bf16.gmra.mrb[44].mxu0 %v2196_v63  ;;  %911 = vmatmul.mubr.bf16.gmra.mrb[44].mxu1 %v2197_v0 }
  0x9a   :  { %790 = vmatprep.mubr.bf16.mxu0 %v2198_v1  ;;  %918 = vmatprep.mubr.bf16.mxu1 %v2200_v2 }
  0xa1   :  { %791 = vmatmul.mubr.bf16.gmra.mrb[48].mxu0 %v2202_v3  ;;  %919 = vmatmul.mubr.bf16.gmra.mrb[48].mxu1 %v2203_v4 }
  0xa2   :  { %798 = vmatprep.mubr.bf16.mxu0 %v2204_v5  ;;  %926 = vmatprep.mubr.bf16.mxu1 %v2206_v6 }
  0xa9   :  { %799 = vmatmul.mubr.bf16.gmra.mrb[52].mxu0 %v2208_v7  ;;  %927 = vmatmul.mubr.bf16.gmra.mrb[52].mxu1 %v2209_v8 }
  0xaa   :  { %806 = vmatprep.mubr.bf16.mxu0 %v2210_v9  ;;  %934 = vmatprep.mubr.bf16.mxu1 %v2212_v10 }
  0xb1   :  { %807 = vmatmul.mubr.bf16.gmra.mrb[56].mxu0 %v2214_v11  ;;  %935 = vmatmul.mubr.bf16.gmra.mrb[56].mxu1 %v2215_v12 }
  0xb2   :  { %814 = vmatprep.mubr.bf16.mxu0 %v2216_v13  ;;  %942 = vmatprep.mubr.bf16.mxu1 %v2218_v14 }
  0xb9   :  { %815 = vmatmul.mubr.bf16.gmra.mrb[60].mxu0 %v2220_v15  ;;  %943 = vmatmul.mubr.bf16.gmra.mrb[60].mxu1 %v2221_v16 }
 0x114   :  { %v696_v18 = vpop.f32.mrb[0].mxu0  ;;  %v824_v20 = vpop.f32.mrb[0].mxu1 }
 0x115   :  { %v1153_v21 = vmul.f32 %v2523_v17, %v696_v18  ;;  %v1185_v22 = vmul.f32 %v2523_v17, %v824_v20  ;;  %v698_v23 = vpop.f32.mrb[1].mxu0  ;;  %v826_v24 = vpop.f32.mrb[1].mxu1 }
 0x116   :  { %v699_v25 = vpop.f32.mrb[2].mxu0  ;;  %v827_v26 = vpop.f32.mrb[2].mxu1 }
 0x117   :  { %v1224_v27 = vadd.f32 %v2528_v19, %v1153_v21  ;;  %v1256_v28 = vadd.f32 %v2528_v19, %v1185_v22  ;;  %v1154_v29 = vmul.f32 %v2523_v17, %v699_v25  ;;  %v1186_v30 = vmul.f32 %v2523_v17, %v827_v26  ;;  %v701_v31 = vpop.f32.mrb[3].mxu0  ;;  %v829_v32 = vpop.f32.mrb[3].mxu1 }
 0x119   :  { %v1225_v33 = vadd.f32 %v2528_v19, %v1154_v29  ;;  %v1257_v34 = vadd.f32 %v2528_v19, %v1186_v30  ;;  %v1288_v35 = vmax.f32 %v1224_v27, 0.0  ;;  %v1320_v36 = vmax.f32 %v1256_v28, 0.0 }
 0x11b   :  { %v1289_v37 = vmax.f32 %v1225_v33, 0.0  ;;  %v1321_v38 = vmax.f32 %v1257_v34, 0.0 }
 0x11c   :  { %v704_v39 = vpop.f32.mrb[4].mxu0  ;;  %v832_v40 = vpop.f32.mrb[4].mxu1 }
 0x11d   :  { %v1889_v41 = vpack.c.bf16 %v1289_v37, %v1288_v35  ;;  %v1969_v42 = vpack.c.bf16 %v1321_v38, %v1320_v36  ;;  %v1155_v43 = vmul.f32 %v2523_v17, %v704_v39  ;;  %v1187_v44 = vmul.f32 %v2523_v17, %v832_v40  ;;  %v706_v45 = vpop.f32.mrb[5].mxu0  ;;  %v834_v46 = vpop.f32.mrb[5].mxu1 }
 0x11e   :  { %v707_v47 = vpop.f32.mrb[6].mxu0  ;;  %v835_v48 = vpop.f32.mrb[6].mxu1 }
 0x11f   :  { %1890 = vst [vmem:[%s2758_s4] sm:$0xff] %v1889_v41   ;;  %2061 = vst [vmem:[%s2758_s4 + $0x80] sm:$0xff] %v1969_v42   ;;  %v1226_v49 = vadd.f32 %v2528_v19, %v1155_v43  ;;  %v1258_v50 = vadd.f32 %v2528_v19, %v1187_v44  ;;  %v1156_v51 = vmul.f32 %v2523_v17, %v707_v47  ;;  %v709_v53 = vpop.f32.mrb[7].mxu0  ;;  %v837_v54 = vpop.f32.mrb[7].mxu1 }
 0x120   :  { %v1188_v52 = vmul.f32 %v2523_v17, %v835_v48 }
 0x121   :  { %v1227_v55 = vadd.f32 %v2528_v19, %v1156_v51  ;;  %v1290_v57 = vmax.f32 %v1226_v49, 0.0  ;;  %v1322_v58 = vmax.f32 %v1258_v50, 0.0 }
 0x122   :  { %v1259_v56 = vadd.f32 %v2528_v19, %v1188_v52 }
 0x123   :  { %v1291_v59 = vmax.f32 %v1227_v55, 0.0 }
 0x124   :  { %v1323_v60 = vmax.f32 %v1259_v56, 0.0  ;;  %v712_v61 = vpop.f32.mrb[8].mxu0  ;;  %v840_v62 = vpop.f32.mrb[8].mxu1 }
 0x125   :  { %v1894_v63 = vpack.c.bf16 %v1291_v59, %v1290_v57  ;;  %v1157_v1 = vmul.f32 %v2523_v17, %v712_v61  ;;  %v1189_v2 = vmul.f32 %v2523_v17, %v840_v62  ;;  %v714_v3 = vpop.f32.mrb[9].mxu0  ;;  %v842_v4 = vpop.f32.mrb[9].mxu1 }
 0x126   :  { %v1974_v0 = vpack.c.bf16 %v1323_v60, %v1322_v58  ;;  %v715_v5 = vpop.f32.mrb[10].mxu0  ;;  %v843_v6 = vpop.f32.mrb[10].mxu1 }
 0x127   :  { %2046 = vst [vmem:[%s2758_s4 + $0x8] sm:$0xff] %v1894_v63   ;;  %v1228_v7 = vadd.f32 %v2528_v19, %v1157_v1  ;;  %v1260_v8 = vadd.f32 %v2528_v19, %v1189_v2  ;;  %v1158_v9 = vmul.f32 %v2523_v17, %v715_v5  ;;  %v1190_v10 = vmul.f32 %v2523_v17, %v843_v6  ;;  %v717_v11 = vpop.f32.mrb[11].mxu0  ;;  %v845_v12 = vpop.f32.mrb[11].mxu1 }
 0x128   :  { %2062 = vst [vmem:[%s2758_s4 + $0x88] sm:$0xff] %v1974_v0  }
 0x129   :  { %v1229_v13 = vadd.f32 %v2528_v19, %v1158_v9  ;;  %v1261_v14 = vadd.f32 %v2528_v19, %v1190_v10  ;;  %v1292_v15 = vmax.f32 %v1228_v7, 0.0  ;;  %v1324_v16 = vmax.f32 %v1260_v8, 0.0 }
 0x12b   :  { %v1293_v18 = vmax.f32 %v1229_v13, 0.0  ;;  %v1325_v20 = vmax.f32 %v1261_v14, 0.0 }
 0x12c   :  { %v720_v21 = vpop.f32.mrb[12].mxu0  ;;  %v848_v22 = vpop.f32.mrb[12].mxu1 }
 0x12d   :  { %v1899_v23 = vpack.c.bf16 %v1293_v18, %v1292_v15  ;;  %v1979_v24 = vpack.c.bf16 %v1325_v20, %v1324_v16  ;;  %v1159_v25 = vmul.f32 %v2523_v17, %v720_v21  ;;  %v1191_v26 = vmul.f32 %v2523_v17, %v848_v22  ;;  %v722_v27 = vpop.f32.mrb[13].mxu0  ;;  %v850_v28 = vpop.f32.mrb[13].mxu1 }
 0x12e   :  { %v723_v29 = vpop.f32.mrb[14].mxu0  ;;  %v851_v30 = vpop.f32.mrb[14].mxu1 }
 0x12f   :  { %2047 = vst [vmem:[%s2758_s4 + $0x10] sm:$0xff] %v1899_v23   ;;  %2063 = vst [vmem:[%s2758_s4 + $0x90] sm:$0xff] %v1979_v24   ;;  %v1230_v31 = vadd.f32 %v2528_v19, %v1159_v25  ;;  %v1262_v32 = vadd.f32 %v2528_v19, %v1191_v26  ;;  %v1160_v33 = vmul.f32 %v2523_v17, %v723_v29  ;;  %v725_v35 = vpop.f32.mrb[15].mxu0  ;;  %v853_v36 = vpop.f32.mrb[15].mxu1 }
 0x130   :  { %v1192_v34 = vmul.f32 %v2523_v17, %v851_v30 }
 0x131   :  { %v1231_v37 = vadd.f32 %v2528_v19, %v1160_v33  ;;  %v1294_v39 = vmax.f32 %v1230_v31, 0.0  ;;  %v1326_v40 = vmax.f32 %v1262_v32, 0.0 }
 0x132   :  { %v1263_v38 = vadd.f32 %v2528_v19, %v1192_v34 }
 0x133   :  { %v1295_v41 = vmax.f32 %v1231_v37, 0.0 }
 0x134   :  { %v1327_v42 = vmax.f32 %v1263_v38, 0.0  ;;  %v728_v43 = vpop.f32.mrb[16].mxu0  ;;  %v856_v44 = vpop.f32.mrb[16].mxu1 }
 0x135   :  { %v1904_v45 = vpack.c.bf16 %v1295_v41, %v1294_v39  ;;  %v1161_v47 = vmul.f32 %v2523_v17, %v728_v43  ;;  %v1193_v48 = vmul.f32 %v2523_v17, %v856_v44  ;;  %v730_v49 = vpop.f32.mrb[17].mxu0  ;;  %v858_v50 = vpop.f32.mrb[17].mxu1 }
 0x136   :  { %v1984_v46 = vpack.c.bf16 %v1327_v42, %v1326_v40  ;;  %v731_v51 = vpop.f32.mrb[18].mxu0  ;;  %v859_v52 = vpop.f32.mrb[18].mxu1 }
 0x137   :  { %2048 = vst [vmem:[%s2758_s4 + $0x18] sm:$0xff] %v1904_v45   ;;  %v1232_v53 = vadd.f32 %v2528_v19, %v1161_v47  ;;  %v1264_v54 = vadd.f32 %v2528_v19, %v1193_v48  ;;  %v1162_v55 = vmul.f32 %v2523_v17, %v731_v51  ;;  %v1194_v56 = vmul.f32 %v2523_v17, %v859_v52  ;;  %v733_v57 = vpop.f32.mrb[19].mxu0  ;;  %v861_v58 = vpop.f32.mrb[19].mxu1 }
 0x138   :  { %2064 = vst [vmem:[%s2758_s4 + $0x98] sm:$0xff] %v1984_v46  }
 0x139   :  { %v1233_v59 = vadd.f32 %v2528_v19, %v1162_v55  ;;  %v1265_v60 = vadd.f32 %v2528_v19, %v1194_v56  ;;  %v1296_v61 = vmax.f32 %v1232_v53, 0.0  ;;  %v1328_v62 = vmax.f32 %v1264_v54, 0.0 }
 0x13b   :  { %v1297_v63 = vmax.f32 %v1233_v59, 0.0  ;;  %v1329_v0 = vmax.f32 %v1265_v60, 0.0 }
 0x13c   :  { %v736_v1 = vpop.f32.mrb[20].mxu0  ;;  %v864_v2 = vpop.f32.mrb[20].mxu1 }
 0x13d   :  { %v1909_v3 = vpack.c.bf16 %v1297_v63, %v1296_v61  ;;  %v1989_v4 = vpack.c.bf16 %v1329_v0, %v1328_v62  ;;  %v1163_v5 = vmul.f32 %v2523_v17, %v736_v1  ;;  %v1195_v6 = vmul.f32 %v2523_v17, %v864_v2  ;;  %v738_v7 = vpop.f32.mrb[21].mxu0  ;;  %v866_v8 = vpop.f32.mrb[21].mxu1 }
 0x13e   :  { %v739_v9 = vpop.f32.mrb[22].mxu0  ;;  %v867_v10 = vpop.f32.mrb[22].mxu1 }
 0x13f   :  { %2049 = vst [vmem:[%s2758_s4 + $0x20] sm:$0xff] %v1909_v3   ;;  %2065 = vst [vmem:[%s2758_s4 + $0xa0] sm:$0xff] %v1989_v4   ;;  %v1234_v11 = vadd.f32 %v2528_v19, %v1163_v5  ;;  %v1266_v12 = vadd.f32 %v2528_v19, %v1195_v6  ;;  %v1164_v13 = vmul.f32 %v2523_v17, %v739_v9  ;;  %v741_v15 = vpop.f32.mrb[23].mxu0  ;;  %v869_v16 = vpop.f32.mrb[23].mxu1 }
 0x140   :  { %v1196_v14 = vmul.f32 %v2523_v17, %v867_v10 }
 0x141   :  { %v1235_v18 = vadd.f32 %v2528_v19, %v1164_v13  ;;  %v1298_v21 = vmax.f32 %v1234_v11, 0.0  ;;  %v1330_v22 = vmax.f32 %v1266_v12, 0.0 }
 0x142   :  { %v1267_v20 = vadd.f32 %v2528_v19, %v1196_v14 }
 0x143   :  { %v1299_v23 = vmax.f32 %v1235_v18, 0.0 }
 0x144   :  { %v1331_v24 = vmax.f32 %v1267_v20, 0.0  ;;  %v744_v25 = vpop.f32.mrb[24].mxu0  ;;  %v872_v26 = vpop.f32.mrb[24].mxu1 }
 0x145   :  { %v1914_v27 = vpack.c.bf16 %v1299_v23, %v1298_v21  ;;  %v1165_v29 = vmul.f32 %v2523_v17, %v744_v25  ;;  %v1197_v30 = vmul.f32 %v2523_v17, %v872_v26  ;;  %v746_v31 = vpop.f32.mrb[25].mxu0  ;;  %v874_v32 = vpop.f32.mrb[25].mxu1 }
 0x146   :  { %v1994_v28 = vpack.c.bf16 %v1331_v24, %v1330_v22  ;;  %v747_v33 = vpop.f32.mrb[26].mxu0  ;;  %v875_v34 = vpop.f32.mrb[26].mxu1 }
 0x147   :  { %2050 = vst [vmem:[%s2758_s4 + $0x28] sm:$0xff] %v1914_v27   ;;  %v1236_v35 = vadd.f32 %v2528_v19, %v1165_v29  ;;  %v1268_v36 = vadd.f32 %v2528_v19, %v1197_v30  ;;  %v1166_v37 = vmul.f32 %v2523_v17, %v747_v33  ;;  %v1198_v38 = vmul.f32 %v2523_v17, %v875_v34  ;;  %v749_v39 = vpop.f32.mrb[27].mxu0  ;;  %v877_v40 = vpop.f32.mrb[27].mxu1 }
 0x148   :  { %2066 = vst [vmem:[%s2758_s4 + $0xa8] sm:$0xff] %v1994_v28  }
 0x149   :  { %v1237_v41 = vadd.f32 %v2528_v19, %v1166_v37  ;;  %v1269_v42 = vadd.f32 %v2528_v19, %v1198_v38  ;;  %v1300_v43 = vmax.f32 %v1236_v35, 0.0  ;;  %v1332_v44 = vmax.f32 %v1268_v36, 0.0 }
 0x14b   :  { %v1301_v45 = vmax.f32 %v1237_v41, 0.0  ;;  %v1333_v46 = vmax.f32 %v1269_v42, 0.0 }
 0x14c   :  { %v752_v47 = vpop.f32.mrb[28].mxu0  ;;  %v880_v48 = vpop.f32.mrb[28].mxu1 }
 0x14d   :  { %v1919_v49 = vpack.c.bf16 %v1301_v45, %v1300_v43  ;;  %v1999_v50 = vpack.c.bf16 %v1333_v46, %v1332_v44  ;;  %v1167_v51 = vmul.f32 %v2523_v17, %v752_v47  ;;  %v1199_v52 = vmul.f32 %v2523_v17, %v880_v48  ;;  %v754_v53 = vpop.f32.mrb[29].mxu0  ;;  %v882_v54 = vpop.f32.mrb[29].mxu1 }
 0x14e   :  { %v755_v55 = vpop.f32.mrb[30].mxu0  ;;  %v883_v56 = vpop.f32.mrb[30].mxu1 }
 0x14f   :  { %2051 = vst [vmem:[%s2758_s4 + $0x30] sm:$0xff] %v1919_v49   ;;  %2067 = vst [vmem:[%s2758_s4 + $0xb0] sm:$0xff] %v1999_v50   ;;  %v1238_v57 = vadd.f32 %v2528_v19, %v1167_v51  ;;  %v1270_v58 = vadd.f32 %v2528_v19, %v1199_v52  ;;  %v1168_v59 = vmul.f32 %v2523_v17, %v755_v55  ;;  %v757_v61 = vpop.f32.mrb[31].mxu0  ;;  %v885_v62 = vpop.f32.mrb[31].mxu1 }
 0x150   :  { %v1200_v60 = vmul.f32 %v2523_v17, %v883_v56 }
 0x151   :  { %v1239_v63 = vadd.f32 %v2528_v19, %v1168_v59  ;;  %v1302_v1 = vmax.f32 %v1238_v57, 0.0  ;;  %v1334_v2 = vmax.f32 %v1270_v58, 0.0 }
 0x152   :  { %v1271_v0 = vadd.f32 %v2528_v19, %v1200_v60 }
 0x153   :  { %v1303_v3 = vmax.f32 %v1239_v63, 0.0 }
 0x154   :  { %v1335_v4 = vmax.f32 %v1271_v0, 0.0  ;;  %v760_v5 = vpop.f32.mrb[32].mxu0  ;;  %v888_v6 = vpop.f32.mrb[32].mxu1 }
 0x155   :  { %v1924_v7 = vpack.c.bf16 %v1303_v3, %v1302_v1  ;;  %v1169_v9 = vmul.f32 %v2523_v17, %v760_v5  ;;  %v1201_v10 = vmul.f32 %v2523_v17, %v888_v6  ;;  %v762_v11 = vpop.f32.mrb[33].mxu0  ;;  %v890_v12 = vpop.f32.mrb[33].mxu1 }
 0x156   :  { %v2004_v8 = vpack.c.bf16 %v1335_v4, %v1334_v2  ;;  %v763_v13 = vpop.f32.mrb[34].mxu0  ;;  %v891_v14 = vpop.f32.mrb[34].mxu1 }
 0x157   :  { %2052 = vst [vmem:[%s2758_s4 + $0x38] sm:$0xff] %v1924_v7   ;;  %v1240_v15 = vadd.f32 %v2528_v19, %v1169_v9  ;;  %v1272_v16 = vadd.f32 %v2528_v19, %v1201_v10  ;;  %v1170_v18 = vmul.f32 %v2523_v17, %v763_v13  ;;  %v1202_v20 = vmul.f32 %v2523_v17, %v891_v14  ;;  %v765_v21 = vpop.f32.mrb[35].mxu0  ;;  %v893_v22 = vpop.f32.mrb[35].mxu1 }
 0x158   :  { %2068 = vst [vmem:[%s2758_s4 + $0xb8] sm:$0xff] %v2004_v8  }
 0x159   :  { %v1241_v23 = vadd.f32 %v2528_v19, %v1170_v18  ;;  %v1273_v24 = vadd.f32 %v2528_v19, %v1202_v20  ;;  %v1304_v25 = vmax.f32 %v1240_v15, 0.0  ;;  %v1336_v26 = vmax.f32 %v1272_v16, 0.0 }
 0x15b   :  { %v1305_v27 = vmax.f32 %v1241_v23, 0.0  ;;  %v1337_v28 = vmax.f32 %v1273_v24, 0.0 }
 0x15c   :  { %v768_v29 = vpop.f32.mrb[36].mxu0  ;;  %v896_v30 = vpop.f32.mrb[36].mxu1 }
 0x15d   :  { %v1929_v31 = vpack.c.bf16 %v1305_v27, %v1304_v25  ;;  %v2009_v32 = vpack.c.bf16 %v1337_v28, %v1336_v26  ;;  %v1171_v33 = vmul.f32 %v2523_v17, %v768_v29  ;;  %v1203_v34 = vmul.f32 %v2523_v17, %v896_v30  ;;  %v770_v35 = vpop.f32.mrb[37].mxu0  ;;  %v898_v36 = vpop.f32.mrb[37].mxu1 }
 0x15e   :  { %v771_v37 = vpop.f32.mrb[38].mxu0  ;;  %v899_v38 = vpop.f32.mrb[38].mxu1 }
 0x15f   :  { %2053 = vst [vmem:[%s2758_s4 + $0x40] sm:$0xff] %v1929_v31   ;;  %2069 = vst [vmem:[%s2758_s4 + $0xc0] sm:$0xff] %v2009_v32   ;;  %v1242_v39 = vadd.f32 %v2528_v19, %v1171_v33  ;;  %v1274_v40 = vadd.f32 %v2528_v19, %v1203_v34  ;;  %v1172_v41 = vmul.f32 %v2523_v17, %v771_v37  ;;  %v773_v43 = vpop.f32.mrb[39].mxu0  ;;  %v901_v44 = vpop.f32.mrb[39].mxu1 }
 0x160   :  { %v1204_v42 = vmul.f32 %v2523_v17, %v899_v38 }
 0x161   :  { %v1243_v45 = vadd.f32 %v2528_v19, %v1172_v41  ;;  %v1306_v47 = vmax.f32 %v1242_v39, 0.0  ;;  %v1338_v48 = vmax.f32 %v1274_v40, 0.0 }
 0x162   :  { %v1275_v46 = vadd.f32 %v2528_v19, %v1204_v42 }
 0x163   :  { %v1307_v49 = vmax.f32 %v1243_v45, 0.0 }
 0x164   :  { %v1339_v50 = vmax.f32 %v1275_v46, 0.0  ;;  %v776_v51 = vpop.f32.mrb[40].mxu0  ;;  %v904_v52 = vpop.f32.mrb[40].mxu1 }
 0x165   :  { %v1934_v53 = vpack.c.bf16 %v1307_v49, %v1306_v47  ;;  %v1173_v55 = vmul.f32 %v2523_v17, %v776_v51  ;;  %v1205_v56 = vmul.f32 %v2523_v17, %v904_v52  ;;  %v778_v57 = vpop.f32.mrb[41].mxu0  ;;  %v906_v58 = vpop.f32.mrb[41].mxu1 }
 0x166   :  { %v2014_v54 = vpack.c.bf16 %v1339_v50, %v1338_v48  ;;  %v779_v59 = vpop.f32.mrb[42].mxu0  ;;  %v907_v60 = vpop.f32.mrb[42].mxu1 }
 0x167   :  { %2054 = vst [vmem:[%s2758_s4 + $0x48] sm:$0xff] %v1934_v53   ;;  %v1244_v61 = vadd.f32 %v2528_v19, %v1173_v55  ;;  %v1276_v62 = vadd.f32 %v2528_v19, %v1205_v56  ;;  %v1174_v63 = vmul.f32 %v2523_v17, %v779_v59  ;;  %v1206_v0 = vmul.f32 %v2523_v17, %v907_v60  ;;  %v781_v1 = vpop.f32.mrb[43].mxu0  ;;  %v909_v2 = vpop.f32.mrb[43].mxu1 }
 0x168   :  { %2070 = vst [vmem:[%s2758_s4 + $0xc8] sm:$0xff] %v2014_v54  }
 0x169   :  { %v1245_v3 = vadd.f32 %v2528_v19, %v1174_v63  ;;  %v1277_v4 = vadd.f32 %v2528_v19, %v1206_v0  ;;  %v1308_v5 = vmax.f32 %v1244_v61, 0.0  ;;  %v1340_v6 = vmax.f32 %v1276_v62, 0.0 }
 0x16b   :  { %v1309_v7 = vmax.f32 %v1245_v3, 0.0  ;;  %v1341_v8 = vmax.f32 %v1277_v4, 0.0 }
 0x16c   :  { %v784_v9 = vpop.f32.mrb[44].mxu0  ;;  %v912_v10 = vpop.f32.mrb[44].mxu1 }
 0x16d   :  { %v1939_v11 = vpack.c.bf16 %v1309_v7, %v1308_v5  ;;  %v2019_v12 = vpack.c.bf16 %v1341_v8, %v1340_v6  ;;  %v1175_v13 = vmul.f32 %v2523_v17, %v784_v9  ;;  %v1207_v14 = vmul.f32 %v2523_v17, %v912_v10  ;;  %v786_v15 = vpop.f32.mrb[45].mxu0  ;;  %v914_v16 = vpop.f32.mrb[45].mxu1 }
 0x16e   :  { %v787_v18 = vpop.f32.mrb[46].mxu0  ;;  %v915_v20 = vpop.f32.mrb[46].mxu1 }
 0x16f   :  { %2055 = vst [vmem:[%s2758_s4 + $0x50] sm:$0xff] %v1939_v11   ;;  %2071 = vst [vmem:[%s2758_s4 + $0xd0] sm:$0xff] %v2019_v12   ;;  %v1246_v21 = vadd.f32 %v2528_v19, %v1175_v13  ;;  %v1278_v22 = vadd.f32 %v2528_v19, %v1207_v14  ;;  %v1176_v23 = vmul.f32 %v2523_v17, %v787_v18  ;;  %v789_v25 = vpop.f32.mrb[47].mxu0  ;;  %v917_v26 = vpop.f32.mrb[47].mxu1 }
 0x170   :  { %v1208_v24 = vmul.f32 %v2523_v17, %v915_v20 }
 0x171   :  { %v1247_v27 = vadd.f32 %v2528_v19, %v1176_v23  ;;  %v1310_v29 = vmax.f32 %v1246_v21, 0.0  ;;  %v1342_v30 = vmax.f32 %v1278_v22, 0.0 }
 0x172   :  { %v1279_v28 = vadd.f32 %v2528_v19, %v1208_v24 }
 0x173   :  { %v1311_v31 = vmax.f32 %v1247_v27, 0.0 }
 0x174   :  { %v1343_v32 = vmax.f32 %v1279_v28, 0.0  ;;  %v792_v33 = vpop.f32.mrb[48].mxu0  ;;  %v920_v34 = vpop.f32.mrb[48].mxu1 }
 0x175   :  { %v1944_v35 = vpack.c.bf16 %v1311_v31, %v1310_v29  ;;  %v1177_v37 = vmul.f32 %v2523_v17, %v792_v33  ;;  %v1209_v38 = vmul.f32 %v2523_v17, %v920_v34  ;;  %v794_v39 = vpop.f32.mrb[49].mxu0  ;;  %v922_v40 = vpop.f32.mrb[49].mxu1 }
 0x176   :  { %v2024_v36 = vpack.c.bf16 %v1343_v32, %v1342_v30  ;;  %v795_v41 = vpop.f32.mrb[50].mxu0  ;;  %v923_v42 = vpop.f32.mrb[50].mxu1 }
 0x177   :  { %2056 = vst [vmem:[%s2758_s4 + $0x58] sm:$0xff] %v1944_v35   ;;  %v1248_v43 = vadd.f32 %v2528_v19, %v1177_v37  ;;  %v1280_v44 = vadd.f32 %v2528_v19, %v1209_v38  ;;  %v1178_v45 = vmul.f32 %v2523_v17, %v795_v41  ;;  %v1210_v46 = vmul.f32 %v2523_v17, %v923_v42  ;;  %v797_v47 = vpop.f32.mrb[51].mxu0  ;;  %v925_v48 = vpop.f32.mrb[51].mxu1 }
 0x178   :  { %2072 = vst [vmem:[%s2758_s4 + $0xd8] sm:$0xff] %v2024_v36  }
 0x179   :  { %v1249_v49 = vadd.f32 %v2528_v19, %v1178_v45  ;;  %v1281_v50 = vadd.f32 %v2528_v19, %v1210_v46  ;;  %v1312_v51 = vmax.f32 %v1248_v43, 0.0  ;;  %v1344_v52 = vmax.f32 %v1280_v44, 0.0 }
 0x17b   :  { %v1313_v53 = vmax.f32 %v1249_v49, 0.0  ;;  %v1345_v54 = vmax.f32 %v1281_v50, 0.0 }
 0x17c   :  { %v800_v55 = vpop.f32.mrb[52].mxu0  ;;  %v928_v56 = vpop.f32.mrb[52].mxu1 }
 0x17d   :  { %v1949_v57 = vpack.c.bf16 %v1313_v53, %v1312_v51  ;;  %v2029_v58 = vpack.c.bf16 %v1345_v54, %v1344_v52  ;;  %v1179_v59 = vmul.f32 %v2523_v17, %v800_v55  ;;  %v1211_v60 = vmul.f32 %v2523_v17, %v928_v56  ;;  %v802_v61 = vpop.f32.mrb[53].mxu0  ;;  %v930_v62 = vpop.f32.mrb[53].mxu1 }
 0x17e   :  { %v803_v63 = vpop.f32.mrb[54].mxu0  ;;  %v931_v0 = vpop.f32.mrb[54].mxu1 }
 0x17f   :  { %2057 = vst [vmem:[%s2758_s4 + $0x60] sm:$0xff] %v1949_v57   ;;  %2073 = vst [vmem:[%s2758_s4 + $0xe0] sm:$0xff] %v2029_v58   ;;  %v1250_v1 = vadd.f32 %v2528_v19, %v1179_v59  ;;  %v1282_v2 = vadd.f32 %v2528_v19, %v1211_v60  ;;  %v1180_v3 = vmul.f32 %v2523_v17, %v803_v63  ;;  %v805_v5 = vpop.f32.mrb[55].mxu0  ;;  %v933_v6 = vpop.f32.mrb[55].mxu1 }
 0x180   :  { %v1212_v4 = vmul.f32 %v2523_v17, %v931_v0 }
 0x181   :  { %v1251_v7 = vadd.f32 %v2528_v19, %v1180_v3  ;;  %v1314_v9 = vmax.f32 %v1250_v1, 0.0  ;;  %v1346_v10 = vmax.f32 %v1282_v2, 0.0 }
 0x182   :  { %v1283_v8 = vadd.f32 %v2528_v19, %v1212_v4 }
 0x183   :  { %v1315_v11 = vmax.f32 %v1251_v7, 0.0 }
 0x184   :  { %v1347_v12 = vmax.f32 %v1283_v8, 0.0  ;;  %v808_v13 = vpop.f32.mrb[56].mxu0  ;;  %v936_v14 = vpop.f32.mrb[56].mxu1 }
 0x185   :  { %v1954_v15 = vpack.c.bf16 %v1315_v11, %v1314_v9  ;;  %v1181_v18 = vmul.f32 %v2523_v17, %v808_v13  ;;  %v1213_v20 = vmul.f32 %v2523_v17, %v936_v14  ;;  %v810_v21 = vpop.f32.mrb[57].mxu0  ;;  %v938_v22 = vpop.f32.mrb[57].mxu1 }
 0x186   :  { %v2034_v16 = vpack.c.bf16 %v1347_v12, %v1346_v10  ;;  %v811_v23 = vpop.f32.mrb[58].mxu0  ;;  %v939_v24 = vpop.f32.mrb[58].mxu1 }
 0x187   :  { %2058 = vst [vmem:[%s2758_s4 + $0x68] sm:$0xff] %v1954_v15   ;;  %v1252_v25 = vadd.f32 %v2528_v19, %v1181_v18  ;;  %v1284_v26 = vadd.f32 %v2528_v19, %v1213_v20  ;;  %v1182_v27 = vmul.f32 %v2523_v17, %v811_v23  ;;  %v1214_v28 = vmul.f32 %v2523_v17, %v939_v24  ;;  %v813_v29 = vpop.f32.mrb[59].mxu0  ;;  %v941_v30 = vpop.f32.mrb[59].mxu1 }
 0x188   :  { %2074 = vst [vmem:[%s2758_s4 + $0xe8] sm:$0xff] %v2034_v16  }
 0x189   :  { %v1253_v31 = vadd.f32 %v2528_v19, %v1182_v27  ;;  %v1285_v32 = vadd.f32 %v2528_v19, %v1214_v28  ;;  %v1316_v33 = vmax.f32 %v1252_v25, 0.0  ;;  %v1348_v34 = vmax.f32 %v1284_v26, 0.0 }
 0x18b   :  { %v1317_v35 = vmax.f32 %v1253_v31, 0.0  ;;  %v1349_v36 = vmax.f32 %v1285_v32, 0.0 }
 0x18c   :  { %v816_v37 = vpop.f32.mrb[60].mxu0  ;;  %v944_v38 = vpop.f32.mrb[60].mxu1 }
 0x18d   :  { %v1959_v39 = vpack.c.bf16 %v1317_v35, %v1316_v33  ;;  %v2039_v40 = vpack.c.bf16 %v1349_v36, %v1348_v34  ;;  %v1183_v41 = vmul.f32 %v2523_v17, %v816_v37  ;;  %v1215_v42 = vmul.f32 %v2523_v17, %v944_v38  ;;  %v818_v43 = vpop.f32.mrb[61].mxu0  ;;  %v946_v44 = vpop.f32.mrb[61].mxu1 }
 0x18e   :  { %v819_v45 = vpop.f32.mrb[62].mxu0  ;;  %v947_v46 = vpop.f32.mrb[62].mxu1 }
 0x18f   :  { %2059 = vst [vmem:[%s2758_s4 + $0x70] sm:$0xff] %v1959_v39   ;;  %2075 = vst [vmem:[%s2758_s4 + $0xf0] sm:$0xff] %v2039_v40   ;;  %v1254_v47 = vadd.f32 %v2528_v19, %v1183_v41  ;;  %v1286_v48 = vadd.f32 %v2528_v19, %v1215_v42  ;;  %v1184_v49 = vmul.f32 %v2523_v17, %v819_v45  ;;  %v821_v51 = vpop.f32.mrb[63].mxu0  ;;  %v949_v52 = vpop.f32.mrb[63].mxu1 }
 0x190   :  { %v1216_v50 = vmul.f32 %v2523_v17, %v947_v46 }
 0x191   :  { %v1255_v53 = vadd.f32 %v2528_v19, %v1184_v49  ;;  %v1318_v55 = vmax.f32 %v1254_v47, 0.0  ;;  %v1350_v56 = vmax.f32 %v1286_v48, 0.0 }
 0x192   :  { %v1287_v54 = vadd.f32 %v2528_v19, %v1216_v50 }
 0x193   :  { %v1319_v57 = vmax.f32 %v1255_v53, 0.0 }
 0x194   :  { %v1351_v58 = vmax.f32 %v1287_v54, 0.0 }
 0x195   :  { %v1964_v59 = vpack.c.bf16 %v1319_v57, %v1318_v55 }
 0x196   :  { %v2044_v60 = vpack.c.bf16 %v1351_v58, %v1350_v56 }
 0x197   :  { %2060 = vst [vmem:[%s2758_s4 + $0x78] sm:$0xff] %v1964_v59  }
 0x198   :  { %2076 = vst [vmem:[%s2758_s4 + $0xf8] sm:$0xff] %v2044_v60  }

// kernel: densenet_forward.22
= control target key start
LH: loop header
LB: loop body
LE: loop exit
PB: predicated region body
PF: predicated region fallthrough
CT: control target
= control target key end

     0   :  { %vm108_vm0 = vcmask 785408   ;;  %vm158_vm1 = vcmask 781312   ;;  %s334_s0 = inlined_call_operand.vmem [shape: bf16[4,32,96], index: 0, kind: input, shape index: {}]   ;;  %s335_s1 = inlined_call_operand.vmem [shape: f32[1,96], index: 1, kind: input, shape index: {}]   ;;  %s336_s2 = inlined_call_operand.vmem [shape: f32[1,96], index: 2, kind: input, shape index: {}]   ;;  %s337_s3 = inlined_call_operand.vmem [shape: bf16[32,96], index: 3, kind: output, shape index: {}]  }
   0x1   :  { %v178_v0 = vld [vmem:[%s334_s0] sm:$0xff]   ;;  %v210_v1 = vld [vmem:[%s334_s0 + $0x10] sm:$0xff]   ;;  %v209_v38 = vld [vmem:[%s334_s0 + $0x8] sm:$0xff]  }
   0x2   :  { %v212_v2 = vld [vmem:[%s334_s0 + $0x20] sm:$0xff]   ;;  %v179_v3 = vunpack.c.l.bf16 %v178_v0  ;;  %v187_v4 = vunpack.c.l.bf16 %v210_v1  ;;  %v214_v6 = vld [vmem:[%s334_s0 + $0x30] sm:$0xff]   ;;  %v180_v8 = vunpack.c.h.bf16 %v178_v0  ;;  %v188_v11 = vunpack.c.h.bf16 %v210_v1  ;;  %v211_v39 = vld [vmem:[%s334_s0 + $0x18] sm:$0xff]  }
   0x3   :  { %v195_v5 = vunpack.c.l.bf16 %v212_v2  ;;  %v251_v7 = vld [vmem:[%s335_s1] ss:$0 sm:$0xff]  ;;  %v203_v9 = vunpack.c.l.bf16 %v214_v6  ;;  %v196_v12 = vunpack.c.h.bf16 %v212_v2  ;;  %v204_v13 = vunpack.c.h.bf16 %v214_v6  ;;  %v213_v44 = vld [vmem:[%s334_s0 + $0x28] sm:$0xff]   ;;  %v215_v45 = vld [vmem:[%s334_s0 + $0x38] sm:$0xff]  }
   0x4   :  { %v256_v10 = vld [vmem:[%s336_s2] ss:$0 sm:$0xff]  ;;  %v53_v14 = vmul.f32 %v179_v3, %v251_v7  ;;  %v57_v15 = vmul.f32 %v187_v4, %v251_v7  ;;  %v54_v17 = vmul.f32 %v180_v8, %v251_v7  ;;  %v58_v19 = vmul.f32 %v188_v11, %v251_v7 }
   0x5   :  { %v61_v16 = vmul.f32 %v195_v5, %v251_v7  ;;  %v65_v18 = vmul.f32 %v203_v9, %v251_v7  ;;  %v62_v20 = vmul.f32 %v196_v12, %v251_v7  ;;  %v66_v21 = vmul.f32 %v204_v13, %v251_v7 }
   0x6   :  { %v76_v22 = vadd.f32 %v256_v10, %v53_v14  ;;  %v80_v23 = vadd.f32 %v256_v10, %v57_v15  ;;  %v77_v25 = vadd.f32 %v256_v10, %v54_v17  ;;  %v81_v27 = vadd.f32 %v256_v10, %v58_v19 }
   0x7   :  { %v84_v24 = vadd.f32 %v256_v10, %v61_v16  ;;  %v88_v26 = vadd.f32 %v256_v10, %v65_v18  ;;  %v85_v28 = vadd.f32 %v256_v10, %v62_v20  ;;  %v89_v29 = vadd.f32 %v256_v10, %v66_v21 }
   0x8   :  { %v92_v30 = vmax.f32 %v76_v22, 0.0  ;;  %v96_v31 = vmax.f32 %v80_v23, 0.0  ;;  %v93_v33 = vmax.f32 %v77_v25, 0.0  ;;  %v97_v35 = vmax.f32 %v81_v27, 0.0 }
   0x9   :  { %v100_v32 = vmax.f32 %v84_v24, 0.0  ;;  %v104_v34 = vmax.f32 %v88_v26, 0.0  ;;  %v101_v36 = vmax.f32 %v85_v28, 0.0  ;;  %v105_v37 = vmax.f32 %v89_v29, 0.0 }
   0xa   :  { %v109_v40 = vsel %vm108_vm0, %v92_v30, 0.0  ;;  %v110_v41 = vsel %vm108_vm0, %v96_v31, 0.0  ;;  %v116_v43 = vsel %vm108_vm0, %v93_v33, 0.0  ;;  %v117_v48 = vsel %vm108_vm0, %v97_v35, 0.0 }
   0xb   :  { %v112_v42 = vsel %vm108_vm0, %v100_v32, 0.0  ;;  %v111_v46 = vadd.f32 %v110_v41, %v109_v40  ;;  %v114_v47 = vsel %vm108_vm0, %v104_v34, 0.0  ;;  %v119_v49 = vsel %vm108_vm0, %v101_v36, 0.0 }
   0xc   :  { %v118_v50 = vadd.f32 %v117_v48, %v116_v43  ;;  %v121_v51 = vsel %vm108_vm0, %v105_v37, 0.0  ;;  %v183_v52 = vunpack.c.l.bf16 %v209_v38  ;;  %v191_v53 = vunpack.c.l.bf16 %v211_v39 }
   0xd   :  { %v113_v54 = vadd.f32 %v112_v42, %v111_v46  ;;  %v199_v55 = vunpack.c.l.bf16 %v213_v44  ;;  %v207_v56 = vunpack.c.l.bf16 %v215_v45  ;;  %v184_v57 = vunpack.c.h.bf16 %v209_v38 }
   0xe   :  { %v120_v58 = vadd.f32 %v119_v49, %v118_v50  ;;  %v55_v59 = vmul.f32 %v183_v52, %v251_v7  ;;  %v59_v60 = vmul.f32 %v191_v53, %v251_v7  ;;  %v192_v61 = vunpack.c.h.bf16 %v211_v39 }
   0xf   :  { %v115_v62 = vadd.f32 %v114_v47, %v113_v54  ;;  %v63_v63 = vmul.f32 %v199_v55, %v251_v7  ;;  %v67_v0 = vmul.f32 %v207_v56, %v251_v7  ;;  %v200_v1 = vunpack.c.h.bf16 %v213_v44 }
  0x10   :  { %v122_v2 = vadd.f32 %v121_v51, %v120_v58  ;;  %v78_v3 = vadd.f32 %v256_v10, %v55_v59  ;;  %v82_v4 = vadd.f32 %v256_v10, %v59_v60  ;;  %v208_v5 = vunpack.c.h.bf16 %v215_v45 }
  0x11   :  { %v138_v6 = vmul.f32 0.25, %v115_v62  ;;  %v86_v8 = vadd.f32 %v256_v10, %v63_v63  ;;  %v90_v9 = vadd.f32 %v256_v10, %v67_v0  ;;  %v56_v11 = vmul.f32 %v184_v57, %v251_v7 }
  0x12   :  { %v139_v12 = vmul.f32 0.25, %v122_v2  ;;  %v94_v13 = vmax.f32 %v78_v3, 0.0  ;;  %v98_v14 = vmax.f32 %v82_v4, 0.0  ;;  %v60_v15 = vmul.f32 %v192_v61, %v251_v7 }
  0x13   :  { %v173_v16 = vpack.c.bf16 %v138_v6, %v138_v6  ;;  %v102_v17 = vmax.f32 %v86_v8, 0.0  ;;  %v106_v18 = vmax.f32 %v90_v9, 0.0  ;;  %v64_v19 = vmul.f32 %v200_v1, %v251_v7 }
  0x14   :  { %v174_v20 = vpack.c.bf16 %v139_v12, %v139_v12  ;;  %v123_v21 = vsel %vm108_vm0, %v94_v13, 0.0  ;;  %v124_v22 = vsel %vm108_vm0, %v98_v14, 0.0  ;;  %v68_v23 = vmul.f32 %v208_v5, %v251_v7 }
  0x15   :  { %159 = vst.msk [vmem:[%s337_s3] sm:$0xf] %vm158_vm1, %v173_v16  ;;  %v125_v24 = vadd.f32 %v124_v22, %v123_v21  ;;  %v126_v25 = vsel %vm108_vm0, %v102_v17, 0.0  ;;  %v79_v26 = vadd.f32 %v256_v10, %v56_v11  ;;  %v128_v27 = vsel %vm108_vm0, %v106_v18, 0.0 }
  0x16   :  { %160 = vst.msk [vmem:[%s337_s3 + $0x4] sm:$0xf] %vm158_vm1, %v174_v20  ;;  %v83_v28 = vadd.f32 %v256_v10, %v60_v15  ;;  %v87_v7 = vadd.f32 %v256_v10, %v64_v19  ;;  %v91_v29 = vadd.f32 %v256_v10, %v68_v23 }
  0x17   :  { %v127_v30 = vadd.f32 %v126_v25, %v125_v24  ;;  %v95_v31 = vmax.f32 %v79_v26, 0.0 }
  0x18   :  { %v99_v32 = vmax.f32 %v83_v28, 0.0  ;;  %v103_v33 = vmax.f32 %v87_v7, 0.0  ;;  %v107_v34 = vmax.f32 %v91_v29, 0.0 }
  0x19   :  { %v129_v35 = vadd.f32 %v128_v27, %v127_v30  ;;  %v130_v36 = vsel %vm108_vm0, %v95_v31, 0.0 }
  0x1a   :  { %v131_v37 = vsel %vm108_vm0, %v99_v32, 0.0  ;;  %v133_v38 = vsel %vm108_vm0, %v103_v33, 0.0  ;;  %v135_v41 = vsel %vm108_vm0, %v107_v34, 0.0 }
  0x1b   :  { %v140_v39 = vmul.f32 0.25, %v129_v35  ;;  %v132_v40 = vadd.f32 %v131_v37, %v130_v36 }
  0x1d   :  { %v175_v42 = vpack.c.bf16 %v140_v39, %v140_v39  ;;  %v134_v43 = vadd.f32 %v133_v38, %v132_v40 }
  0x1f   :  { %161 = vst.msk [vmem:[%s337_s3 + $0x8] sm:$0xf] %vm158_vm1, %v175_v42  ;;  %v136_v10 = vadd.f32 %v135_v41, %v134_v43 }
  0x21   :  { %v141_v44 = vmul.f32 0.25, %v136_v10 }
  0x23   :  { %v176_v45 = vpack.c.bf16 %v141_v44, %v141_v44 }
  0x25   :  { %162 = vst.msk [vmem:[%s337_s3 + $0xc] sm:$0xf] %vm158_vm1, %v176_v45 }

// kernel: densenet_forward.21
= control target key start
LH: loop header
LB: loop body
LE: loop exit
PB: predicated region body
PF: predicated region fallthrough
CT: control target
= control target key end

     0   :  { %s1257_s15 = smov 0   ;;  %s1259_s16 = smov 0   ;;  %s1392_s0 = inlined_call_operand.vmem [shape: bf16[128,640], index: 0, kind: input, shape index: {}]   ;;  %s1393_s1 = inlined_call_operand.vmem [shape: bf16[640,128], index: 1, kind: input, shape index: {}]   ;;  %s1394_s2 = inlined_call_operand.vmem [shape: f32[1,128], index: 2, kind: input, shape index: {}]   ;;  %s1395_s3 = inlined_call_operand.vmem [shape: f32[1,128], index: 3, kind: input, shape index: {}]   ;;  %s1396_s4 = inlined_call_operand.vmem [shape: bf16[128,128], index: 4, kind: output, shape index: {}]  }
   0x1   :  { %s1261_s17 = smov 0   ;;  %s1263_s18 = smov 0  }
   0x2   :  { %s1265_s19 = smov 0  }
   0x3 LB: > { %s26_s20 = sadd.s32 1, %s1225_s18  ;;  %p49_p1 = scmp.ne.s32.totalorder %s1217_s16, %s1213_s15  ;;  %s1229_s19 = sphi %s1265_s19, %s14_s19   ;;  %s1225_s18 = sphi %s1263_s18, %s1400_s18   ;;  %s1221_s17 = sphi %s1261_s17, %s1399_s17   ;;  %s1217_s16 = sphi %s1259_s16, %s1398_s16   ;;  %s1213_s15 = sphi %s1257_s15, %s1397_s15  }
   0x4   : > { %p27_p0 = scmp.ge.s32.totalorder %s26_s20, 5  ;;  %p50_p2 = scmp.eq.s32.totalorder %s1229_s19, 0 }
   0x5   : > { %s42_s22 = sadd.s32 1, %s1217_s16  ;;  %p960_p5 = scmp.ge.s32.totalorder %s1229_s19, 5 }
   0x6   : > { %s1402_s20 = smov (%p27_p0, %s26_s20), 0  ;;  %p51_p3 = por %p50_p2, %p49_p1 }
   0x7   : > { %s38_s21 = ssub.s32 %s1225_s18, %s1402_s20  ;;  %195 = sbr.rel (%p960_p5) target bundleno = 28 (0x1c), region = 24 }
   0x8   : > { %p40_p4 = scmp.eq.s32.totalorder %s38_s21, 0 }
   0xa   : > { %s1292_s23 = scalar_select %p40_p4, %s1217_s16, %s42_s22  }
   0xe   : > { %198 = sbr.rel (!%p51_p3) target bundleno = 28 (0x1c), region = 28  ;;  %s200_s24 = sand.u32 (%p51_p3), 1, %s1217_s16  }
   0xf   : > { %s962_s25 = sshll.u32 (%p51_p3), %s1225_s18, 2  ;;  %s961_s26 = sshll.u32 (%p51_p3), %s200_s24, 6 }
  0x10   : > { %s1300_s29 = scalar_lea.vmem (%p51_p3), %s1392_s0, %s962_s25  ;;  %s202_s30 = scalar_lea.vmem (%p51_p3), [#allocation3], %s961_s26 }
  0x11   : > { %v223_v0 = vld [vmem:[%s1300_s29] sm:$0xf] (%p51_p3)  ;;  %v225_v1 = vld [vmem:[%s1300_s29 + $0x14] sm:$0xf] (%p51_p3)  ;;  %v227_v2 = vld [vmem:[%s1300_s29 + $0x28] sm:$0xf] (%p51_p3) }
  0x12   : > { %224 = vst [vmem:[%s202_s30] sm:$0xf] (%p51_p3), %v223_v0  ;;  %226 = vst [vmem:[%s202_s30 + $0x4] sm:$0xf] (%p51_p3), %v225_v1  ;;  %v229_v3 = vld [vmem:[%s1300_s29 + $0x3c] sm:$0xf] (%p51_p3) }
  0x13   : > { %v231_v4 = vld [vmem:[%s1300_s29 + $0x50] sm:$0xf] (%p51_p3)  ;;  %228 = vst [vmem:[%s202_s30 + $0x8] sm:$0xf] (%p51_p3), %v227_v2  ;;  %230 = vst [vmem:[%s202_s30 + $0xc] sm:$0xf] (%p51_p3), %v229_v3 }
  0x14   : > { %232 = vst [vmem:[%s202_s30 + $0x10] sm:$0xf] (%p51_p3), %v231_v4  ;;  %v233_v5 = vld [vmem:[%s1300_s29 + $0x64] sm:$0xf] (%p51_p3)  ;;  %v235_v6 = vld [vmem:[%s1300_s29 + $0x78] sm:$0xf] (%p51_p3) }
  0x15   : > { %v237_v7 = vld [vmem:[%s1300_s29 + $0x8c] sm:$0xf]  ;;  %234 = vst [vmem:[%s202_s30 + $0x14] sm:$0xf] %v233_v5  ;;  %236 = vst [vmem:[%s202_s30 + $0x18] sm:$0xf] %v235_v6 }
  0x16   : > { %238 = vst [vmem:[%s202_s30 + $0x1c] sm:$0xf] %v237_v7  ;;  %v239_v8 = vld [vmem:[%s1300_s29 + $0xa0] sm:$0xf]  ;;  %v241_v9 = vld [vmem:[%s1300_s29 + $0xb4] sm:$0xf] }
  0x17   : > { %v243_v10 = vld [vmem:[%s1300_s29 + $0xc8] sm:$0xf]  ;;  %240 = vst [vmem:[%s202_s30 + $0x20] sm:$0xf] %v239_v8  ;;  %242 = vst [vmem:[%s202_s30 + $0x24] sm:$0xf] %v241_v9 }
  0x18   : > { %244 = vst [vmem:[%s202_s30 + $0x28] sm:$0xf] %v243_v10  ;;  %v245_v11 = vld [vmem:[%s1300_s29 + $0xdc] sm:$0xf]  ;;  %v247_v12 = vld [vmem:[%s1300_s29 + $0xf0] sm:$0xf] }
  0x19   : > { %v249_v13 = vld [vmem:[%s1300_s29 + $0x104] sm:$0xf]  ;;  %246 = vst [vmem:[%s202_s30 + $0x2c] sm:$0xf] %v245_v11  ;;  %248 = vst [vmem:[%s202_s30 + $0x30] sm:$0xf] %v247_v12 }
  0x1a   : > { %250 = vst [vmem:[%s202_s30 + $0x34] sm:$0xf] %v249_v13  ;;  %v251_v14 = vld [vmem:[%s1300_s29 + $0x118] sm:$0xf]  ;;  %v253_v15 = vld [vmem:[%s1300_s29 + $0x12c] sm:$0xf] }
  0x1b   : > { %252 = vst [vmem:[%s202_s30 + $0x38] sm:$0xf] %v251_v14  ;;  %254 = vst [vmem:[%s202_s30 + $0x3c] sm:$0xf] %v253_v15 }
  0x1c PF: > { %p963_p6 = scmp.ge.s32.totalorder %s1229_s19, 1  ;;  %p320_p7 = scmp.lt.s32.totalorder %s1229_s19, 6 }
  0x1e   : > { %p321_p8 = pnand %p963_p6, %p320_p7 }
  0x1f   : > { %s327_s5 = sand.u32 (!%p321_p8), 1, %s1213_s15   ;;  %s965_s6 = sshll.u32 (!%p321_p8), %s1221_s17, 4 }
  0x20   : > { %324 = sbr.rel (%p321_p8) target bundleno = 323 (0x143), region = 73  ;;  %s964_s7 = sshll.u32 (!%p321_p8), %s327_s5, 6 }
  0x21   : > { %p371_p9 = scmp.lt.s32.totalorder (!%p321_p8), %s965_s6, 79  ;;  %s1327_s12 = scalar_lea.vmem (!%p321_p8), [#allocation3], %s964_s7 }
  0x22   : > { %p967_p10 = scmp.ne.s32.totalorder (!%p321_p8), %s1221_s17, 0 }
  0x27   : > { %s1404_s6 = smov (!%p371_p9, %s965_s6), 79  ;;  %398 = sbr.rel (%p967_p10) target bundleno = 49 (0x31), region = 81 }
  0x28   : > { %s966_s8 = sshll.u32 %s1404_s6, 2  ;;  %v1231_v16 = vmov (!%p967_p10), 0.0  }
  0x29   : > { %s1325_s11 = scalar_lea.vmem %s1393_s1, %s966_s8  ;;  %399 = vst [vmem:[#allocation2] sm:$0xff] (!%p967_p10), %v1231_v16  ;;  %400 = vst [vmem:[#allocation2 + $0x8] sm:$0xff] (!%p967_p10), %v1231_v16 }
  0x2a   : > { %401 = vst [vmem:[#allocation2 + $0x10] sm:$0xff] (!%p967_p10), %v1231_v16  ;;  %402 = vst [vmem:[#allocation2 + $0x18] sm:$0xff] (!%p967_p10), %v1231_v16 }
  0x2b   : > { %403 = vst [vmem:[#allocation2 + $0x20] sm:$0xff] (!%p967_p10), %v1231_v16  ;;  %404 = vst [vmem:[#allocation2 + $0x28] sm:$0xff] (!%p967_p10), %v1231_v16 }
  0x2c   : > { %405 = vst [vmem:[#allocation2 + $0x30] sm:$0xff] (!%p967_p10), %v1231_v16  ;;  %406 = vst [vmem:[#allocation2 + $0x38] sm:$0xff] (!%p967_p10), %v1231_v16 }
  0x2d   : > { %407 = vst [vmem:[#allocation2 + $0x40] sm:$0xff] (!%p967_p10), %v1231_v16  ;;  %408 = vst [vmem:[#allocation2 + $0x48] sm:$0xff] (!%p967_p10), %v1231_v16 }
  0x2e   : > { %409 = vst [vmem:[#allocation2 + $0x50] sm:$0xff] %v1231_v16  ;;  %410 = vst [vmem:[#allocation2 + $0x58] sm:$0xff] %v1231_v16 }
  0x2f   : > { %411 = vst [vmem:[#allocation2 + $0x60] sm:$0xff] %v1231_v16  ;;  %412 = vst [vmem:[#allocation2 + $0x68] sm:$0xff] %v1231_v16 }
  0x30   : > { %413 = vst [vmem:[#allocation2 + $0x70] sm:$0xff] %v1231_v16  ;;  %414 = vst [vmem:[#allocation2 + $0x78] sm:$0xff] %v1231_v16 }
  0x31 PF: > { %v1175_v17 = vld [vmem:[%s1325_s11] sm:$0xff]   ;;  %v1176_v18 = vld [vmem:[%s1325_s11 + $0x8] sm:$0xff]   ;;  %v1177_v19 = vld [vmem:[%s1325_s11 + $0x10] sm:$0xff]   ;;  %p984_p11 = scmp.ne.s32.totalorder %s1221_s17, 4 }
  0x32   : > { %1086 = vmatprep.subr.bf16.mxu0 %v1175_v17  ;;  %1118 = vmatprep.subr.bf16.mxu1 %v1175_v17  ;;  %v1178_v20 = vld [vmem:[%s1325_s11 + $0x18] sm:$0xff]   ;;  %v1183_v21 = vld [vmem:[%s1327_s12] sm:$0xff]   ;;  %v1180_v24 = vld [vmem:[%s1325_s11 + $0x28] sm:$0xff]  }
  0x33   : > { %1087 = vmatpush3.bf16.msra.mxu0 %v1175_v17  ;;  %1126 = vmatpush3.bf16.msra.mxu1 %v1175_v17  ;;  %v1184_v22 = vld [vmem:[%s1327_s12 + $0x20] sm:$0xff]   ;;  %v1181_v25 = vld [vmem:[%s1325_s11 + $0x30] sm:$0xff]   ;;  %v1182_v26 = vld [vmem:[%s1325_s11 + $0x38] sm:$0xff]  }
  0x34   : > { %1088 = vmatprep.subr.bf16.mxu0 %v1176_v18  ;;  %1119 = vmatprep.subr.bf16.mxu1 %v1176_v18  ;;  %v1179_v23 = vld [vmem:[%s1325_s11 + $0x20] sm:$0xff]   ;;  %v1185_v27 = vld [vmem:[%s1327_s12 + $0x8] sm:$0xff]   ;;  %v1187_v29 = vld [vmem:[%s1327_s12 + $0x10] sm:$0xff]  }
  0x35   : > { %1102 = vmatprep.mubr.bf16.mxu0 %v1183_v21  ;;  %1110 = vmatprep.mubr.bf16.mxu1 %v1184_v22  ;;  %v1186_v28 = vld [vmem:[%s1327_s12 + $0x28] sm:$0xff]   ;;  %v1188_v30 = vld [vmem:[%s1327_s12 + $0x30] sm:$0xff]   ;;  %v1189_v31 = vld [vmem:[%s1327_s12 + $0x18] sm:$0xff]  }
  0x36   : > { %v1190_v32 = vld [vmem:[%s1327_s12 + $0x38] sm:$0xff]   ;;  %v417_v33 = vld [vmem:[#allocation2 + $0x10] sm:$0xff]  ;;  %v415_v35 = vld [vmem:[#allocation2] sm:$0xff] }
  0x37   : > { %1089 = vmatpush3.bf16.msra.mxu0 %v1176_v18  ;;  %1127 = vmatpush3.bf16.msra.mxu1 %v1176_v18  ;;  %v425_v34 = vld [vmem:[#allocation2 + $0x50] sm:$0xff]  ;;  %v423_v36 = vld [vmem:[#allocation2 + $0x40] sm:$0xff]  ;;  %v418_v39 = vld [vmem:[#allocation2 + $0x18] sm:$0xff] }
  0x38   : > { %1090 = vmatprep.subr.bf16.mxu0 %v1177_v19  ;;  %1120 = vmatprep.subr.bf16.mxu1 %v1177_v19  ;;  %v426_v40 = vld [vmem:[#allocation2 + $0x58] sm:$0xff]  ;;  %v416_v45 = vld [vmem:[#allocation2 + $0x8] sm:$0xff]  ;;  %v421_v57 = vld [vmem:[#allocation2 + $0x30] sm:$0xff] }
  0x39   : > { %v424_v46 = vld [vmem:[#allocation2 + $0x48] sm:$0xff]  ;;  %v429_v58 = vld [vmem:[#allocation2 + $0x70] sm:$0xff]  ;;  %v419_v59 = vld [vmem:[#allocation2 + $0x20] sm:$0xff] }
  0x3a   : > { %v427_v60 = vld [vmem:[#allocation2 + $0x60] sm:$0xff]  ;;  %v422_v63 = vld [vmem:[#allocation2 + $0x38] sm:$0xff]  ;;  %v420_v5 = vld [vmem:[#allocation2 + $0x28] sm:$0xff] }
  0x3b   : > { %1091 = vmatpush3.bf16.msra.mxu0 %v1177_v19  ;;  %1128 = vmatpush3.bf16.msra.mxu1 %v1177_v19  ;;  %v430_v0 = vld [vmem:[#allocation2 + $0x78] sm:$0xff]  ;;  %v428_v6 = vld [vmem:[#allocation2 + $0x68] sm:$0xff]  ;;  %v985_v19 = vld [vmem:[%s1394_s2] ss:$0 sm:$0xff] (!%p984_p11) }
  0x3c   : > { %1092 = vmatprep.subr.bf16.mxu0 %v1178_v20  ;;  %1121 = vmatprep.subr.bf16.mxu1 %v1178_v20  ;;  %v986_v22 = vld [vmem:[%s1395_s3] ss:$0 sm:$0xff] (!%p984_p11) }
  0x3f   : > { %1093 = vmatpush3.bf16.msra.mxu0 %v1178_v20  ;;  %1129 = vmatpush3.bf16.msra.mxu1 %v1178_v20 }
  0x40   : > { %1094 = vmatprep.subr.bf16.mxu0 %v1179_v23  ;;  %1122 = vmatprep.subr.bf16.mxu1 %v1179_v23 }
  0x43   : > { %1095 = vmatpush3.bf16.msra.mxu0 %v1179_v23  ;;  %1130 = vmatpush3.bf16.msra.mxu1 %v1179_v23 }
  0x44   : > { %1096 = vmatprep.subr.bf16.mxu0 %v1180_v24  ;;  %1123 = vmatprep.subr.bf16.mxu1 %v1180_v24 }
  0x47   : > { %1097 = vmatpush3.bf16.msra.mxu0 %v1180_v24  ;;  %1131 = vmatpush3.bf16.msra.mxu1 %v1180_v24 }
  0x48   : > { %1098 = vmatprep.subr.bf16.mxu0 %v1181_v25  ;;  %1124 = vmatprep.subr.bf16.mxu1 %v1181_v25 }
  0x4b   : > { %1099 = vmatpush3.bf16.msra.mxu0 %v1181_v25  ;;  %1132 = vmatpush3.bf16.msra.mxu1 %v1181_v25 }
  0x4c   : > { %1100 = vmatprep.subr.bf16.mxu0 %v1182_v26  ;;  %1125 = vmatprep.subr.bf16.mxu1 %v1182_v26 }
  0x4f   : > { %1101 = vmatpush3.bf16.msra.mxu0 %v1182_v26  ;;  %1133 = vmatpush3.bf16.msra.mxu1 %v1182_v26 }
  0x52   : > { %1103 = vmatmul.mubr.bf16.vlgmr.msra.gmra.mrb[0].mxu0 %v1185_v27  ;;  %1111 = vmatmul.mubr.bf16.vlgmr.msra.gmra.mrb[0].mxu1 %v1186_v28 }
  0x53   : > { %1106 = vmatprep.mubr.bf16.mxu0 %v1187_v29  ;;  %1114 = vmatprep.mubr.bf16.mxu1 %v1188_v30 }
  0x5a   : > { %1107 = vmatmul.mubr.bf16.gmra.mrb[4].mxu0 %v1189_v31  ;;  %1115 = vmatmul.mubr.bf16.gmra.mrb[4].mxu1 %v1190_v32 }
 0x125   : > { %v1104_v37 = vpop.f32.mrb[0].mxu0  ;;  %v1112_v38 = vpop.f32.mrb[0].mxu1 }
 0x126   : > { %v658_v41 = vadd.f32 %v1104_v37, %v417_v33  ;;  %v666_v42 = vadd.f32 %v1112_v38, %v425_v34  ;;  %v593_v43 = vpop.f32.mrb[1].mxu0  ;;  %v625_v44 = vpop.f32.mrb[1].mxu1 }
 0x127   : > { %v656_v47 = vadd.f32 %v593_v43, %v415_v35  ;;  %v664_v48 = vadd.f32 %v625_v44, %v423_v36  ;;  %v1105_v49 = vpop.f32.mrb[2].mxu0  ;;  %v1113_v50 = vpop.f32.mrb[2].mxu1 }
 0x128   : > { %674 = vst [vmem:[#allocation2 + $0x10] sm:$0xff] %v658_v41  ;;  %682 = vst [vmem:[#allocation2 + $0x50] sm:$0xff] %v666_v42  ;;  %v659_v51 = vadd.f32 %v1105_v49, %v418_v39  ;;  %v667_v52 = vadd.f32 %v1113_v50, %v426_v40  ;;  %v596_v53 = vpop.f32.mrb[3].mxu0  ;;  %v628_v54 = vpop.f32.mrb[3].mxu1 }
 0x129   : > { %672 = vst [vmem:[#allocation2] sm:$0xff] %v656_v47  ;;  %680 = vst [vmem:[#allocation2 + $0x40] sm:$0xff] %v664_v48  ;;  %v657_v55 = vadd.f32 %v596_v53, %v416_v45  ;;  %v665_v56 = vadd.f32 %v628_v54, %v424_v46 }
 0x12a   : > { %675 = vst [vmem:[#allocation2 + $0x18] sm:$0xff] %v659_v51  ;;  %683 = vst [vmem:[#allocation2 + $0x58] sm:$0xff] %v667_v52 }
 0x12b   : > { %673 = vst [vmem:[#allocation2 + $0x8] sm:$0xff] %v657_v55  ;;  %681 = vst [vmem:[#allocation2 + $0x48] sm:$0xff] %v665_v56 }
 0x12d   : > { %v1108_v61 = vpop.f32.mrb[4].mxu0  ;;  %v1116_v62 = vpop.f32.mrb[4].mxu1  ;;  %691 = sbr.rel (%p984_p11) target bundleno = 323 (0x143), region = 85 }
 0x12e   : > { %v662_v1 = vadd.f32 %v1108_v61, %v421_v57  ;;  %v670_v2 = vadd.f32 %v1116_v62, %v429_v58  ;;  %v609_v3 = vpop.f32.mrb[5].mxu0  ;;  %v641_v4 = vpop.f32.mrb[5].mxu1 }
 0x12f   : > { %v660_v7 = vadd.f32 %v609_v3, %v419_v59  ;;  %v668_v8 = vadd.f32 %v641_v4, %v427_v60  ;;  %v1109_v9 = vpop.f32.mrb[6].mxu0  ;;  %v1117_v10 = vpop.f32.mrb[6].mxu1  ;;  %v694_v23 = vld [vmem:[#allocation2 + $0x10] sm:$0xff] (!%p984_p11) }
 0x130   : > { %678 = vst [vmem:[#allocation2 + $0x30] sm:$0xff] %v662_v1  ;;  %686 = vst [vmem:[#allocation2 + $0x70] sm:$0xff] %v670_v2  ;;  %v663_v11 = vadd.f32 %v1109_v9, %v422_v63  ;;  %v671_v12 = vadd.f32 %v1117_v10, %v430_v0  ;;  %v612_v13 = vpop.f32.mrb[7].mxu0  ;;  %v644_v14 = vpop.f32.mrb[7].mxu1  ;;  %v692_v17 = vld [vmem:[#allocation2] sm:$0xff] (!%p984_p11)  ;;  %v717_v25 = vmul.f32 (!%p984_p11), %v985_v19, %v694_v23  ;;  %v702_v41 = vld [vmem:[#allocation2 + $0x50] sm:$0xff] (!%p984_p11) }
 0x131   : > { %676 = vst [vmem:[#allocation2 + $0x20] sm:$0xff] %v660_v7  ;;  %684 = vst [vmem:[#allocation2 + $0x60] sm:$0xff] %v668_v8  ;;  %v661_v15 = vadd.f32 %v612_v13, %v420_v5  ;;  %v669_v16 = vadd.f32 %v644_v14, %v428_v6  ;;  %v715_v20 = vmul.f32 (!%p984_p11), %v985_v19, %v692_v17  ;;  %v695_v24 = vld [vmem:[#allocation2 + $0x18] sm:$0xff] (!%p984_p11)  ;;  %v700_v35 = vld [vmem:[#allocation2 + $0x40] sm:$0xff] (!%p984_p11) }
 0x132   : > { %679 = vst [vmem:[#allocation2 + $0x38] sm:$0xff] %v663_v11  ;;  %687 = vst [vmem:[#allocation2 + $0x78] sm:$0xff] %v671_v12  ;;  %v693_v18 = vld [vmem:[#allocation2 + $0x8] sm:$0xff] (!%p984_p11)  ;;  %v718_v26 = vmul.f32 (!%p984_p11), %v985_v19, %v695_v24  ;;  %v740_v37 = vadd.f32 (!%p984_p11), %v986_v22, %v717_v25  ;;  %v703_v42 = vld [vmem:[#allocation2 + $0x58] sm:$0xff] (!%p984_p11)  ;;  %v723_v46 = vmul.f32 (!%p984_p11), %v985_v19, %v700_v35 }
 0x133   : > { %677 = vst [vmem:[#allocation2 + $0x28] sm:$0xff] %v661_v15  ;;  %685 = vst [vmem:[#allocation2 + $0x68] sm:$0xff] %v669_v16  ;;  %v716_v21 = vmul.f32 (!%p984_p11), %v985_v19, %v693_v18  ;;  %v738_v30 = vadd.f32 (!%p984_p11), %v986_v22, %v715_v20  ;;  %v701_v36 = vld [vmem:[#allocation2 + $0x48] sm:$0xff] (!%p984_p11)  ;;  %v725_v57 = vmul.f32 (!%p984_p11), %v985_v19, %v702_v41 }
 0x134   : > { %v741_v38 = vadd.f32 %v986_v22, %v718_v26  ;;  %v724_v52 = vmul.f32 %v985_v19, %v701_v36  ;;  %v746_v56 = vadd.f32 %v986_v22, %v723_v46  ;;  %v726_v58 = vmul.f32 %v985_v19, %v703_v42 }
 0x135   : > { %v739_v31 = vadd.f32 %v986_v22, %v716_v21  ;;  %v748_v63 = vadd.f32 %v986_v22, %v725_v57 }
 0x136   : > { %v1031_v49 = vpack.c.bf16 %v741_v38, %v740_v37  ;;  %v747_v60 = vadd.f32 %v986_v22, %v724_v52  ;;  %v749_v0 = vadd.f32 %v986_v22, %v726_v58 }
 0x137   : > { %v698_v29 = vld [vmem:[#allocation2 + $0x30] sm:$0xff]  ;;  %v1026_v43 = vpack.c.bf16 %v739_v31, %v738_v30 }
 0x138   : > { %v696_v27 = vld [vmem:[#allocation2 + $0x20] sm:$0xff]  ;;  %v721_v39 = vmul.f32 %v985_v19, %v698_v29  ;;  %v706_v53 = vld [vmem:[#allocation2 + $0x70] sm:$0xff]  ;;  %1063 = vst [vmem:[%s1396_s4 + $0x8] sm:$0xff] %v1031_v49   ;;  %v1046_v3 = vpack.c.bf16 %v747_v60, %v746_v56  ;;  %v1051_v6 = vpack.c.bf16 %v749_v0, %v748_v63 }
 0x139   : > { %v719_v32 = vmul.f32 %v985_v19, %v696_v27  ;;  %v699_v34 = vld [vmem:[#allocation2 + $0x38] sm:$0xff]  ;;  %v704_v47 = vld [vmem:[#allocation2 + $0x60] sm:$0xff]  ;;  %1027 = vst [vmem:[%s1396_s4] sm:$0xff] %v1026_v43   ;;  %v729_v1 = vmul.f32 %v985_v19, %v706_v53 }
 0x13a   : > { %v697_v28 = vld [vmem:[#allocation2 + $0x28] sm:$0xff]  ;;  %v722_v40 = vmul.f32 %v985_v19, %v699_v34  ;;  %v744_v50 = vadd.f32 %v986_v22, %v721_v39  ;;  %v707_v54 = vld [vmem:[#allocation2 + $0x78] sm:$0xff]  ;;  %v727_v61 = vmul.f32 %v985_v19, %v704_v47  ;;  %1066 = vst [vmem:[%s1396_s4 + $0x20] sm:$0xff] %v1046_v3   ;;  %1067 = vst [vmem:[%s1396_s4 + $0x28] sm:$0xff] %v1051_v6  }
 0x13b   : > { %v720_v33 = vmul.f32 %v985_v19, %v697_v28  ;;  %v742_v44 = vadd.f32 %v986_v22, %v719_v32  ;;  %v705_v48 = vld [vmem:[#allocation2 + $0x68] sm:$0xff]  ;;  %v730_v2 = vmul.f32 %v985_v19, %v707_v54  ;;  %v752_v7 = vadd.f32 %v986_v22, %v729_v1 }
 0x13c   : > { %v745_v51 = vadd.f32 %v986_v22, %v722_v40  ;;  %v728_v62 = vmul.f32 %v985_v19, %v705_v48  ;;  %v750_v4 = vadd.f32 %v986_v22, %v727_v61 }
 0x13d   : > { %v743_v45 = vadd.f32 %v986_v22, %v720_v33  ;;  %v753_v8 = vadd.f32 %v986_v22, %v730_v2 }
 0x13e   : > { %v1041_v59 = vpack.c.bf16 %v745_v51, %v744_v50  ;;  %v751_v5 = vadd.f32 %v986_v22, %v728_v62 }
 0x13f   : > { %v1036_v55 = vpack.c.bf16 %v743_v45, %v742_v44  ;;  %v1061_v10 = vpack.c.bf16 %v753_v8, %v752_v7 }
 0x140   : > { %1065 = vst [vmem:[%s1396_s4 + $0x18] sm:$0xff] %v1041_v59   ;;  %v1056_v9 = vpack.c.bf16 %v751_v5, %v750_v4 }
 0x141   : > { %1064 = vst [vmem:[%s1396_s4 + $0x10] sm:$0xff] %v1036_v55   ;;  %1069 = vst [vmem:[%s1396_s4 + $0x38] sm:$0xff] %v1061_v10  }
 0x142   : > { %1068 = vst [vmem:[%s1396_s4 + $0x30] sm:$0xff] %v1056_v9  }
 0x143 PF: > { %s14_s19 = sadd.s32 1, %s1229_s19   ;;  %s1397_s15 = smov %s1217_s16 }
 0x144   : > { %p11_p12 = scmp.ge.s32.totalorder %s14_s19, 7   ;;  %s1398_s16 = smov %s1292_s23 }
 0x145   : > { %s1399_s17 = smov %s1225_s18  ;;  %s1400_s18 = smov %s1402_s20 }
 0x146   :  { %13 = sbr.rel (!%p11_p12) target bundleno = 3 (0x3), region = 129 }

// kernel: densenet_forward.24
= control target key start
LH: loop header
LB: loop body
LE: loop exit
PB: predicated region body
PF: predicated region fallthrough
CT: control target
= control target key end

     0   :  { %vm64_vm0 = vcmask 388096   ;;  %s136_s0 = inlined_call_operand.vmem [shape: bf16[32,48], index: 0, kind: input, shape index: {}]   ;;  %s137_s1 = inlined_call_operand.vmem [shape: f32[1,48], index: 1, kind: input, shape index: {}]   ;;  %s138_s2 = inlined_call_operand.vmem [shape: f32[1,48], index: 2, kind: input, shape index: {}]   ;;  %s139_s3 = inlined_call_operand.vmem [shape: bf16[32,48], index: 3, kind: output, shape index: {}]  }
   0x1   :  { %v84_v0 = vld [vmem:[%s136_s0] sm:$0xff]   ;;  %v91_v4 = vld [vmem:[%s136_s0 + $0x8] sm:$0xff]  }
   0x2   :  { %v73_v1 = vld [vmem:[%s137_s1] ss:$0 sm:$0xff]  ;;  %v85_v2 = vunpack.c.l.bf16 %v84_v0  ;;  %v86_v3 = vunpack.c.h.bf16 %v84_v0  ;;  %v89_v6 = vunpack.c.l.bf16 %v91_v4  ;;  %v90_v7 = vunpack.c.h.bf16 %v91_v4 }
   0x3   :  { %v74_v5 = vld [vmem:[%s138_s2] ss:$0 sm:$0xff] }
   0x4   :  { %v29_v8 = vmul.f32 %v85_v2, %v73_v1  ;;  %v30_v9 = vmul.f32 %v86_v3, %v73_v1  ;;  %v31_v10 = vmul.f32 %v89_v6, %v73_v1  ;;  %v32_v11 = vmul.f32 %v90_v7, %v73_v1 }
   0x6   :  { %v40_v12 = vadd.f32 %v74_v5, %v29_v8  ;;  %v41_v13 = vadd.f32 %v74_v5, %v30_v9  ;;  %v42_v14 = vadd.f32 %v74_v5, %v31_v10  ;;  %v43_v15 = vadd.f32 %v74_v5, %v32_v11 }
   0x8   :  { %v44_v16 = vmax.f32 %v40_v12, 0.0  ;;  %v45_v17 = vmax.f32 %v41_v13, 0.0  ;;  %v46_v18 = vmax.f32 %v42_v14, 0.0  ;;  %v47_v19 = vmax.f32 %v43_v15, 0.0 }
   0xa   :  { %v79_v20 = vpack.c.bf16 %v44_v16, %v44_v16  ;;  %v80_v21 = vpack.c.bf16 %v45_v17, %v45_v17  ;;  %v81_v22 = vpack.c.bf16 %v46_v18, %v46_v18  ;;  %v82_v23 = vpack.c.bf16 %v47_v19, %v47_v19 }
   0xc   :  { %65 = vst.msk [vmem:[%s139_s3] sm:$0xf] %vm64_vm0, %v79_v20  ;;  %66 = vst.msk [vmem:[%s139_s3 + $0x4] sm:$0xf] %vm64_vm0, %v80_v21 }
   0xd   :  { %67 = vst.msk [vmem:[%s139_s3 + $0x8] sm:$0xf] %vm64_vm0, %v81_v22  ;;  %68 = vst.msk [vmem:[%s139_s3 + $0xc] sm:$0xf] %vm64_vm0, %v82_v23 }

// kernel: densenet_forward.23
= control target key start
LH: loop header
LB: loop body
LE: loop exit
PB: predicated region body
PF: predicated region fallthrough
CT: control target
= control target key end

     0   :  { %s358_s1 = inlined_call_operand.vmem [shape: bf16[128,128], index: 1, kind: input, shape index: {}]   ;;  %s359_s0 = inlined_call_operand.vmem [shape: bf16[32,128], index: 0, kind: input, shape index: {}]   ;;  %s360_s2 = inlined_call_operand.vmem [shape: f32[1,128], index: 2, kind: input, shape index: {}]   ;;  %s361_s3 = inlined_call_operand.vmem [shape: f32[1,128], index: 3, kind: input, shape index: {}]   ;;  %s362_s4 = inlined_call_operand.vmem [shape: bf16[32,128], index: 4, kind: output, shape index: {}]  }
   0x1   :  { %v281_v0 = vld [vmem:[%s358_s1] sm:$0xff]   ;;  %v282_v1 = vld [vmem:[%s358_s1 + $0x8] sm:$0xff]   ;;  %v283_v2 = vld [vmem:[%s358_s1 + $0x10] sm:$0xff]  }
   0x2   :  { %261 = vmatprep.subr.bf16.mxu0 %v281_v0  ;;  %v284_v3 = vld [vmem:[%s358_s1 + $0x18] sm:$0xff]   ;;  %v289_v4 = vld [vmem:[%s359_s0] sm:$0xff]   ;;  %v286_v6 = vld [vmem:[%s358_s1 + $0x28] sm:$0xff]  }
   0x3   :  { %262 = vmatpush3.bf16.msra.mxu0 %v281_v0  ;;  %277 = vmatprep.mubr.bf16.mxu0 %v289_v4  ;;  %v285_v5 = vld [vmem:[%s358_s1 + $0x20] sm:$0xff]   ;;  %v287_v7 = vld [vmem:[%s358_s1 + $0x30] sm:$0xff]   ;;  %v288_v8 = vld [vmem:[%s358_s1 + $0x38] sm:$0xff]  }
   0x4   :  { %263 = vmatprep.subr.bf16.mxu0 %v282_v1  ;;  %v290_v9 = vld [vmem:[%s359_s0 + $0x8] sm:$0xff]   ;;  %v230_v10 = vld [vmem:[%s360_s2] ss:$0 sm:$0xff] }
   0x5   :  { %v231_v14 = vld [vmem:[%s361_s3] ss:$0 sm:$0xff] }
   0x7   :  { %264 = vmatpush3.bf16.msra.mxu0 %v282_v1 }
   0x8   :  { %265 = vmatprep.subr.bf16.mxu0 %v283_v2 }
   0xb   :  { %266 = vmatpush3.bf16.msra.mxu0 %v283_v2 }
   0xc   :  { %267 = vmatprep.subr.bf16.mxu0 %v284_v3 }
   0xf   :  { %268 = vmatpush3.bf16.msra.mxu0 %v284_v3 }
  0x10   :  { %269 = vmatprep.subr.bf16.mxu0 %v285_v5 }
  0x13   :  { %270 = vmatpush3.bf16.msra.mxu0 %v285_v5 }
  0x14   :  { %271 = vmatprep.subr.bf16.mxu0 %v286_v6 }
  0x17   :  { %272 = vmatpush3.bf16.msra.mxu0 %v286_v6 }
  0x18   :  { %273 = vmatprep.subr.bf16.mxu0 %v287_v7 }
  0x1b   :  { %274 = vmatpush3.bf16.msra.mxu0 %v287_v7 }
  0x1c   :  { %275 = vmatprep.subr.bf16.mxu0 %v288_v8 }
  0x1f   :  { %276 = vmatpush3.bf16.msra.mxu0 %v288_v8 }
  0x22   :  { %278 = vmatmul.mubr.bf16.vlgmr.msra.gmra.mrb[0].mxu0 %v290_v9 }
  0xf5   :  { %v279_v11 = vpop.f32.mrb[0].mxu0 }
  0xf6   :  { %v183_v12 = vmul.f32 %v279_v11, %v230_v10  ;;  %v144_v13 = vpop.f32.mrb[1].mxu0 }
  0xf7   :  { %v181_v15 = vmul.f32 %v230_v10, %v144_v13  ;;  %v280_v16 = vpop.f32.mrb[2].mxu0 }
  0xf8   :  { %v184_v17 = vmul.f32 %v280_v16, %v230_v10  ;;  %v147_v18 = vpop.f32.mrb[3].mxu0  ;;  %v194_v20 = vadd.f32 %v231_v14, %v183_v12 }
  0xf9   :  { %v182_v19 = vmul.f32 %v230_v10, %v147_v18  ;;  %v192_v22 = vadd.f32 %v231_v14, %v181_v15 }
  0xfa   :  { %v195_v21 = vadd.f32 %v231_v14, %v184_v17 }
  0xfb   :  { %v193_v23 = vadd.f32 %v231_v14, %v182_v19 }
  0xfc   :  { %v248_v24 = vpack.c.bf16 %v195_v21, %v194_v20 }
  0xfd   :  { %v243_v25 = vpack.c.bf16 %v193_v23, %v192_v22 }
  0xfe   :  { %250 = vst [vmem:[%s362_s4 + $0x8] sm:$0xff] %v248_v24  }
  0xff   :  { %244 = vst [vmem:[%s362_s4] sm:$0xff] %v243_v25  }

// kernel: densenet_forward.26
= control target key start
LH: loop header
LB: loop body
LE: loop exit
PB: predicated region body
PF: predicated region fallthrough
CT: control target
= control target key end

     0   :  { %vm48_vm0 = vcmask 654336   ;;  %vm59_vm1 = vcmask 650240   ;;  %s111_s0 = inlined_call_operand.vmem [shape: bf16[4,8,80], index: 0, kind: input, shape index: {}]   ;;  %s112_s1 = inlined_call_operand.vmem [shape: f32[1,80], index: 1, kind: input, shape index: {}]   ;;  %s113_s2 = inlined_call_operand.vmem [shape: f32[1,80], index: 2, kind: input, shape index: {}]   ;;  %s114_s3 = inlined_call_operand.vmem [shape: bf16[8,80], index: 3, kind: output, shape index: {}]  }
   0x1   :  { %v68_v0 = vld [vmem:[%s111_s0] sm:$0xff]   ;;  %v75_v1 = vld [vmem:[%s111_s0 + $0x8] sm:$0xff]  }
   0x2   :  { %v65_v2 = vld [vmem:[%s112_s1] ss:$0 sm:$0xff]  ;;  %v69_v3 = vunpack.c.l.bf16 %v68_v0  ;;  %v70_v4 = vunpack.c.h.bf16 %v68_v0  ;;  %v73_v5 = vunpack.c.l.bf16 %v75_v1  ;;  %v74_v6 = vunpack.c.h.bf16 %v75_v1 }
   0x3   :  { %v66_v7 = vld [vmem:[%s113_s2] ss:$0 sm:$0xff] }
   0x4   :  { %v29_v8 = vmul.f32 %v69_v3, %v65_v2  ;;  %v30_v9 = vmul.f32 %v70_v4, %v65_v2  ;;  %v31_v10 = vmul.f32 %v73_v5, %v65_v2  ;;  %v32_v11 = vmul.f32 %v74_v6, %v65_v2 }
   0x6   :  { %v40_v12 = vadd.f32 %v66_v7, %v29_v8  ;;  %v41_v13 = vadd.f32 %v66_v7, %v30_v9  ;;  %v42_v14 = vadd.f32 %v66_v7, %v31_v10  ;;  %v43_v15 = vadd.f32 %v66_v7, %v32_v11 }
   0x8   :  { %v44_v16 = vmax.f32 %v40_v12, 0.0  ;;  %v45_v17 = vmax.f32 %v41_v13, 0.0  ;;  %v46_v18 = vmax.f32 %v42_v14, 0.0  ;;  %v47_v19 = vmax.f32 %v43_v15, 0.0 }
   0xa   :  { %v49_v20 = vsel %vm48_vm0, %v44_v16, 0.0  ;;  %v50_v21 = vsel %vm48_vm0, %v45_v17, 0.0  ;;  %v52_v22 = vsel %vm48_vm0, %v46_v18, 0.0  ;;  %v54_v24 = vsel %vm48_vm0, %v47_v19, 0.0 }
   0xb   :  { %v51_v23 = vadd.f32 %v50_v21, %v49_v20 }
   0xd   :  { %v53_v25 = vadd.f32 %v52_v22, %v51_v23 }
   0xf   :  { %v55_v26 = vadd.f32 %v54_v24, %v53_v25 }
  0x11   :  { %v57_v27 = vmul.f32 0.25, %v55_v26 }
  0x13   :  { %v58_v28 = vpack.c.bf16 %v57_v27, %v57_v27 }
  0x15   :  { %60 = vst.msk [vmem:[%s114_s3] sm:$0xf] %vm59_vm1, %v58_v28 }

// kernel: densenet_forward.25
= control target key start
LH: loop header
LB: loop body
LE: loop exit
PB: predicated region body
PF: predicated region fallthrough
CT: control target
= control target key end

     0   :  { %s811_s1 = inlined_call_operand.vmem [shape: bf16[512,128], index: 1, kind: input, shape index: {}]   ;;  %s812_s0 = inlined_call_operand.vmem [shape: bf16[32,512], index: 0, kind: input, shape index: {}]   ;;  %s813_s2 = inlined_call_operand.vmem [shape: f32[1,128], index: 2, kind: input, shape index: {}]   ;;  %s814_s3 = inlined_call_operand.vmem [shape: f32[1,128], index: 3, kind: input, shape index: {}]   ;;  %s815_s4 = inlined_call_operand.vmem [shape: bf16[32,128], index: 4, kind: output, shape index: {}]  }
   0x1   :  { %v610_v0 = vld [vmem:[%s811_s1 + $0x40] sm:$0xff]   ;;  %v614_v4 = vld [vmem:[%s811_s1 + $0x48] sm:$0xff]   ;;  %v618_v8 = vld [vmem:[%s811_s1 + $0x50] sm:$0xff]  }
   0x2   :  { %v611_v1 = vld [vmem:[%s811_s1 + $0xc0] sm:$0xff]   ;;  %554 = vmatprep.subr.bf16.mxu0 %v610_v0  ;;  %v615_v5 = vld [vmem:[%s811_s1 + $0xc8] sm:$0xff]   ;;  %v619_v9 = vld [vmem:[%s811_s1 + $0xd0] sm:$0xff]  }
   0x3   :  { %v612_v2 = vld [vmem:[%s811_s1] sm:$0xff]   ;;  %582 = vmatprep.subr.bf16.mxu1 %v611_v1  ;;  %v616_v6 = vld [vmem:[%s811_s1 + $0x8] sm:$0xff]   ;;  %v620_v10 = vld [vmem:[%s811_s1 + $0x10] sm:$0xff]  }
   0x4   :  { %v613_v3 = vld [vmem:[%s811_s1 + $0x80] sm:$0xff]   ;;  %555 = vmatpush3.bf16.msra.mxu0 %v612_v2  ;;  %v617_v7 = vld [vmem:[%s811_s1 + $0x88] sm:$0xff]   ;;  %v621_v11 = vld [vmem:[%s811_s1 + $0x90] sm:$0xff]  }
   0x5   :  { %583 = vmatpush3.bf16.msra.mxu1 %v613_v3  ;;  %556 = vmatprep.subr.bf16.mxu0 %v614_v4  ;;  %v622_v12 = vld [vmem:[%s811_s1 + $0x58] sm:$0xff]   ;;  %v626_v16 = vld [vmem:[%s811_s1 + $0x60] sm:$0xff]   ;;  %v630_v20 = vld [vmem:[%s811_s1 + $0x68] sm:$0xff]  }
   0x6   :  { %584 = vmatprep.subr.bf16.mxu1 %v615_v5  ;;  %v623_v13 = vld [vmem:[%s811_s1 + $0xd8] sm:$0xff]   ;;  %v627_v17 = vld [vmem:[%s811_s1 + $0xe0] sm:$0xff]   ;;  %v631_v21 = vld [vmem:[%s811_s1 + $0xe8] sm:$0xff]  }
   0x7   :  { %v624_v14 = vld [vmem:[%s811_s1 + $0x18] sm:$0xff]   ;;  %v628_v18 = vld [vmem:[%s811_s1 + $0x20] sm:$0xff]   ;;  %v632_v22 = vld [vmem:[%s811_s1 + $0x28] sm:$0xff]  }
   0x8   :  { %557 = vmatpush3.bf16.msra.mxu0 %v616_v6  ;;  %v625_v15 = vld [vmem:[%s811_s1 + $0x98] sm:$0xff]   ;;  %v629_v19 = vld [vmem:[%s811_s1 + $0xa0] sm:$0xff]   ;;  %v633_v23 = vld [vmem:[%s811_s1 + $0xa8] sm:$0xff]  }
   0x9   :  { %585 = vmatpush3.bf16.msra.mxu1 %v617_v7  ;;  %558 = vmatprep.subr.bf16.mxu0 %v618_v8  ;;  %v634_v24 = vld [vmem:[%s811_s1 + $0x70] sm:$0xff]   ;;  %v638_v28 = vld [vmem:[%s811_s1 + $0x78] sm:$0xff]   ;;  %v533_v49 = vld [vmem:[%s813_s2] ss:$0 sm:$0xff] }
   0xa   :  { %586 = vmatprep.subr.bf16.mxu1 %v619_v9  ;;  %v635_v25 = vld [vmem:[%s811_s1 + $0xf0] sm:$0xff]   ;;  %v639_v29 = vld [vmem:[%s811_s1 + $0xf8] sm:$0xff]   ;;  %v534_v56 = vld [vmem:[%s814_s3] ss:$0 sm:$0xff] }
   0xb   :  { %v636_v26 = vld [vmem:[%s811_s1 + $0x30] sm:$0xff]   ;;  %v640_v30 = vld [vmem:[%s811_s1 + $0x38] sm:$0xff]  }
   0xc   :  { %559 = vmatpush3.bf16.msra.mxu0 %v620_v10  ;;  %v637_v27 = vld [vmem:[%s811_s1 + $0xb0] sm:$0xff]   ;;  %v641_v31 = vld [vmem:[%s811_s1 + $0xb8] sm:$0xff]  }
   0xd   :  { %587 = vmatpush3.bf16.msra.mxu1 %v621_v11  ;;  %560 = vmatprep.subr.bf16.mxu0 %v622_v12  ;;  %v642_v32 = vld [vmem:[%s812_s0] ss:$16 sps:$4 sm:$0xff]   ;;  %v644_v33 = vld [vmem:[%s812_s0 + $0x4] ss:$16 sps:$4 sm:$0xff]   ;;  %v645_v34 = vld [vmem:[%s812_s0 + $0x8] ss:$16 sps:$4 sm:$0xff]  }
   0xe   :  { %588 = vmatprep.subr.bf16.mxu1 %v623_v13  ;;  %v647_v35 = vld [vmem:[%s812_s0 + $0xc] ss:$16 sps:$4 sm:$0xff]   ;;  %366 = vmatprep.mubr.bf16.mxu0 %v644_v33  ;;  %v648_v36 = vld [vmem:[%s812_s0 + $0x24] ss:$16 sps:$4 sm:$0xff]   ;;  %v652_v38 = vld [vmem:[%s812_s0 + $0x20] ss:$16 sps:$4 sm:$0xff]  }
   0xf   :  { %415 = vmatprep.mubr.bf16.mxu1 %v647_v35  ;;  %v650_v37 = vld [vmem:[%s812_s0 + $0x2c] ss:$16 sps:$4 sm:$0xff]   ;;  %v653_v39 = vld [vmem:[%s812_s0 + $0x28] ss:$16 sps:$4 sm:$0xff]  }
  0x10   :  { %561 = vmatpush3.bf16.msra.mxu0 %v624_v14 }
  0x11   :  { %589 = vmatpush3.bf16.msra.mxu1 %v625_v15  ;;  %562 = vmatprep.subr.bf16.mxu0 %v626_v16 }
  0x12   :  { %590 = vmatprep.subr.bf16.mxu1 %v627_v17 }
  0x14   :  { %563 = vmatpush3.bf16.msra.mxu0 %v628_v18 }
  0x15   :  { %591 = vmatpush3.bf16.msra.mxu1 %v629_v19  ;;  %564 = vmatprep.subr.bf16.mxu0 %v630_v20 }
  0x16   :  { %592 = vmatprep.subr.bf16.mxu1 %v631_v21 }
  0x18   :  { %565 = vmatpush3.bf16.msra.mxu0 %v632_v22 }
  0x19   :  { %593 = vmatpush3.bf16.msra.mxu1 %v633_v23  ;;  %566 = vmatprep.subr.bf16.mxu0 %v634_v24 }
  0x1a   :  { %594 = vmatprep.subr.bf16.mxu1 %v635_v25 }
  0x1c   :  { %567 = vmatpush3.bf16.msra.mxu0 %v636_v26 }
  0x1d   :  { %595 = vmatpush3.bf16.msra.mxu1 %v637_v27  ;;  %568 = vmatprep.subr.bf16.mxu0 %v638_v28 }
  0x1e   :  { %596 = vmatprep.subr.bf16.mxu1 %v639_v29 }
  0x20   :  { %569 = vmatpush3.bf16.msra.mxu0 %v640_v30 }
  0x21   :  { %597 = vmatpush3.bf16.msra.mxu1 %v641_v31 }
  0x23   :  { %367 = vmatmul.mubr.bf16.vlgmr.msra.gmra.mrb[0].mxu0 %v642_v32 }
  0x24   :  { %416 = vmatmul.mubr.bf16.vlgmr.msra.gmra.mrb[0].mxu1 %v645_v34  ;;  %374 = vmatprep.mubr.bf16.mxu0 %v648_v36 }
  0x25   :  { %423 = vmatprep.mubr.bf16.mxu1 %v650_v37 }
  0x2b   :  { %375 = vmatmul.mubr.bf16.gmra.mrb[4].mxu0 %v652_v38 }
  0x2c   :  { %424 = vmatmul.mubr.bf16.gmra.mrb[4].mxu1 %v653_v39 }
  0xf6   :  { %v570_v40 = vpop.f32.mrb[0].mxu0 }
  0xf7   :  { %v598_v41 = vpop.f32.mrb[0].mxu1  ;;  %v571_v42 = vpop.f32.mrb[1].mxu0 }
  0xf8   :  { %v572_v43 = vadd.f32 %v571_v42, %v570_v40  ;;  %v599_v44 = vpop.f32.mrb[1].mxu1  ;;  %v573_v45 = vpop.f32.mrb[2].mxu0 }
  0xf9   :  { %v600_v46 = vadd.f32 %v599_v44, %v598_v41  ;;  %v601_v47 = vpop.f32.mrb[2].mxu1  ;;  %v574_v48 = vpop.f32.mrb[3].mxu0 }
  0xfa   :  { %v575_v50 = vadd.f32 %v574_v48, %v573_v45  ;;  %v602_v51 = vpop.f32.mrb[3].mxu1 }
  0xfb   :  { %v418_v52 = vadd.f32 %v600_v46, %v572_v43  ;;  %v603_v53 = vadd.f32 %v602_v51, %v601_v47 }
  0xfd   :  { %v454_v54 = vmul.f32 %v533_v49, %v418_v52  ;;  %v421_v55 = vadd.f32 %v603_v53, %v575_v50 }
  0xfe   :  { %v576_v57 = vpop.f32.mrb[4].mxu0 }
  0xff   :  { %v455_v58 = vmul.f32 %v533_v49, %v421_v55  ;;  %v604_v59 = vpop.f32.mrb[4].mxu1  ;;  %v577_v60 = vpop.f32.mrb[5].mxu0  ;;  %v465_v0 = vadd.f32 %v534_v56, %v454_v54 }
 0x100   :  { %v578_v61 = vadd.f32 %v577_v60, %v576_v57  ;;  %v605_v62 = vpop.f32.mrb[5].mxu1  ;;  %v579_v63 = vpop.f32.mrb[6].mxu0 }
 0x101   :  { %v466_v1 = vadd.f32 %v534_v56, %v455_v58  ;;  %v606_v2 = vadd.f32 %v605_v62, %v604_v59  ;;  %v607_v3 = vpop.f32.mrb[6].mxu1  ;;  %v580_v4 = vpop.f32.mrb[7].mxu0 }
 0x102   :  { %v581_v5 = vadd.f32 %v580_v4, %v579_v63  ;;  %v608_v6 = vpop.f32.mrb[7].mxu1 }
 0x103   :  { %v546_v7 = vpack.c.bf16 %v466_v1, %v465_v0  ;;  %v426_v8 = vadd.f32 %v606_v2, %v578_v61  ;;  %v609_v9 = vadd.f32 %v608_v6, %v607_v3 }
 0x105   :  { %547 = vst [vmem:[%s815_s4] sm:$0xff] %v546_v7   ;;  %v456_v10 = vmul.f32 %v533_v49, %v426_v8  ;;  %v429_v11 = vadd.f32 %v609_v9, %v581_v5 }
 0x107   :  { %v457_v12 = vmul.f32 %v533_v49, %v429_v11  ;;  %v467_v13 = vadd.f32 %v534_v56, %v456_v10 }
 0x109   :  { %v468_v14 = vadd.f32 %v534_v56, %v457_v12 }
 0x10b   :  { %v551_v15 = vpack.c.bf16 %v468_v14, %v467_v13 }
 0x10d   :  { %553 = vst [vmem:[%s815_s4 + $0x8] sm:$0xff] %v551_v15  }

// kernel: densenet_forward.28
= control target key start
LH: loop header
LB: loop body
LE: loop exit
PB: predicated region body
PF: predicated region fallthrough
CT: control target
= control target key end

     0   :  { %vm34_vm0 = vcmask 322560   ;;  %s74_s0 = inlined_call_operand.vmem [shape: bf16[8,40], index: 0, kind: input, shape index: {}]   ;;  %s75_s1 = inlined_call_operand.vmem [shape: f32[1,40], index: 1, kind: input, shape index: {}]   ;;  %s76_s2 = inlined_call_operand.vmem [shape: f32[1,40], index: 2, kind: input, shape index: {}]   ;;  %s77_s3 = inlined_call_operand.vmem [shape: bf16[8,40], index: 3, kind: output, shape index: {}]  }
   0x1   :  { %v14_v0 = vld [vmem:[%s74_s0] sm:$0xf] }
   0x2   :  { %v40_v1 = vld [vmem:[%s75_s1] ss:$0 sm:$0xff]  ;;  %v15_v2 = vunpack.c.l.bf16 %v14_v0 }
   0x3   :  { %v41_v3 = vld [vmem:[%s76_s2] ss:$0 sm:$0xff] }
   0x4   :  { %v23_v4 = vmul.f32 %v40_v1, %v15_v2 }
   0x6   :  { %v31_v5 = vadd.f32 %v41_v3, %v23_v4 }
   0x8   :  { %v32_v6 = vmax.f32 %v31_v5, 0.0 }
   0xa   :  { %v33_v7 = vpack.c.bf16 %v32_v6, %v32_v6 }
   0xc   :  { %35 = vst.msk [vmem:[%s77_s3] sm:$0xf] %vm34_vm0, %v33_v7 }

// kernel: densenet_forward.27
= control target key start
LH: loop header
LB: loop body
LE: loop exit
PB: predicated region body
PF: predicated region fallthrough
CT: control target
= control target key end

     0   :  { %v206_v0 = vmov 0.0   ;;  %vm207_vm0 = vmmov 0   ;;  %s269_s1 = inlined_call_operand.vmem [shape: bf16[128,128], index: 1, kind: input, shape index: {}]   ;;  %s270_s0 = inlined_call_operand.vmem [shape: bf16[8,128], index: 0, kind: input, shape index: {}]   ;;  %s271_s2 = inlined_call_operand.vmem [shape: f32[1,128], index: 2, kind: input, shape index: {}]   ;;  %s272_s3 = inlined_call_operand.vmem [shape: f32[1,128], index: 3, kind: input, shape index: {}]   ;;  %s273_s4 = inlined_call_operand.vmem [shape: bf16[8,128], index: 4, kind: output, shape index: {}]  }
   0x1   :  { %176 = vmatprep.subr.bf16.mxu0 %v206_v0  ;;  %v198_v1 = vld [vmem:[%s269_s1] sm:$0xff]   ;;  %192 = vmatprep.mubr.msk.bf16.mxu0 %vm207_vm0, %v206_v0  ;;  %v199_v2 = vld [vmem:[%s269_s1 + $0x8] sm:$0xff]   ;;  %v200_v3 = vld [vmem:[%s269_s1 + $0x10] sm:$0xff]  }
   0x2   :  { %177 = vmatpush3.bf16.msra.mxu0 %v198_v1  ;;  %v201_v4 = vld [vmem:[%s269_s1 + $0x18] sm:$0xff]   ;;  %v202_v5 = vld [vmem:[%s269_s1 + $0x20] sm:$0xff]   ;;  %v203_v6 = vld [vmem:[%s269_s1 + $0x28] sm:$0xff]  }
   0x3   :  { %178 = vmatprep.subr.bf16.mxu0 %v206_v0  ;;  %v204_v7 = vld [vmem:[%s269_s1 + $0x30] sm:$0xff]   ;;  %v205_v8 = vld [vmem:[%s269_s1 + $0x38] sm:$0xff]   ;;  %v24_v9 = vld [vmem:[%s270_s0] sm:$0xf] }
   0x4   :  { %v165_v10 = vld [vmem:[%s271_s2] ss:$0 sm:$0xff] }
   0x5   :  { %v166_v12 = vld [vmem:[%s272_s3] ss:$0 sm:$0xff] }
   0x6   :  { %179 = vmatpush3.bf16.msra.mxu0 %v199_v2 }
   0x7   :  { %180 = vmatprep.subr.bf16.mxu0 %v206_v0 }
   0xa   :  { %181 = vmatpush3.bf16.msra.mxu0 %v200_v3 }
   0xb   :  { %182 = vmatprep.subr.bf16.mxu0 %v206_v0 }
   0xe   :  { %183 = vmatpush3.bf16.msra.mxu0 %v201_v4 }
   0xf   :  { %184 = vmatprep.subr.bf16.mxu0 %v206_v0 }
  0x12   :  { %185 = vmatpush3.bf16.msra.mxu0 %v202_v5 }
  0x13   :  { %186 = vmatprep.subr.bf16.mxu0 %v206_v0 }
  0x16   :  { %187 = vmatpush3.bf16.msra.mxu0 %v203_v6 }
  0x17   :  { %188 = vmatprep.subr.bf16.mxu0 %v206_v0 }
  0x1a   :  { %189 = vmatpush3.bf16.msra.mxu0 %v204_v7 }
  0x1b   :  { %190 = vmatprep.subr.bf16.mxu0 %v206_v0 }
  0x1e   :  { %191 = vmatpush3.bf16.msra.mxu0 %v205_v8 }
  0x21   :  { %193 = vmatmul.mubr.bf16.vlgmr.msra.gmra.mrb[0].mxu0 %v24_v9 }
  0xf4   :  { %v123_v11 = vpop.f32.mrb[0].mxu0 }
  0xf5   :  { %v142_v13 = vmul.f32 %v165_v10, %v123_v11  ;;  %v194_v14 = vpop.f32.mrb[1].mxu0 }
  0xf6   :  { %v126_v15 = vpop.f32.mrb[2].mxu0 }
  0xf7   :  { %v150_v16 = vadd.f32 %v166_v12, %v142_v13  ;;  %v195_v17 = vpop.f32.mrb[3].mxu0 }
  0xf9   :  { %v151_v18 = vpack.c.bf16 %v150_v16, %v150_v16 }
  0xfb   :  { %152 = vst [vmem:[%s273_s4] sm:$0xf] %v151_v18 }

// kernel: densenet_forward.29
= control target key start
LH: loop header
LB: loop body
LE: loop exit
PB: predicated region body
PF: predicated region fallthrough
CT: control target
= control target key end

     0   :  { %s689_s15 = smov 0   ;;  %s691_s16 = smov 0   ;;  %s741_s0 = inlined_call_operand.vmem [shape: bf16[8,384], index: 0, kind: input, shape index: {}]   ;;  %s742_s1 = inlined_call_operand.vmem [shape: bf16[384,128], index: 1, kind: input, shape index: {}]   ;;  %s743_s2 = inlined_call_operand.vmem [shape: f32[1,128], index: 2, kind: input, shape index: {}]   ;;  %s744_s3 = inlined_call_operand.vmem [shape: f32[1,128], index: 3, kind: input, shape index: {}]   ;;  %s745_s4 = inlined_call_operand.vmem [shape: bf16[8,128], index: 4, kind: output, shape index: {}]  }
   0x1   :  { %s693_s17 = smov 0  }
   0x2 LB: > { %s26_s18 = sadd.s32 1, %s655_s16  ;;  %p554_p0 = scmp.ge.s32.totalorder %s659_s17, 1  ;;  %s659_s17 = sphi %s693_s17, %s14_s17   ;;  %s655_s16 = sphi %s691_s16, %s747_s16   ;;  %s651_s15 = sphi %s689_s15, %s746_s15  }
   0x3   : > { %p27_p1 = scmp.ge.s32.totalorder %s26_s18, 3  ;;  %p220_p2 = scmp.lt.s32.totalorder %s659_s17, 4 }
   0x5   : > { %s749_s18 = smov (%p27_p1, %s26_s18), 0  ;;  %p221_p3 = pnand %p554_p0, %p220_p2 }
   0x6   : > { %p267_p4 = scmp.lt.s32.totalorder (!%p221_p3), %s651_s15, 2  ;;  %s556_s19 = sshll.u32 (!%p221_p3), %s651_s15, 4 }
   0x7   : > { %224 = sbr.rel (%p221_p3) target bundleno = 284 (0x11c), region = 36  ;;  %p274_p5 = scmp.lt.s32.totalorder (!%p221_p3), %s556_s19, 47 }
   0x8   : > { %p558_p6 = scmp.ne.s32.totalorder (!%p221_p3), %s651_s15, 0 }
   0xe   : > { %s268_s20 = scalar_select %p267_p4, %s651_s15, 2 }
   0xf   : > { %s751_s19 = smov (!%p274_p5, %s556_s19), 47  ;;  %299 = sbr.rel (%p558_p6) target bundleno = 22 (0x16), region = 40 }
  0x10   : > { %s555_s21 = sshll.u32 %s268_s20, 2  ;;  %s557_s25 = sshll.u32 %s751_s19, 2  ;;  %v661_v0 = vmov (!%p558_p6), 0.0  }
  0x11   : > { %s715_s24 = scalar_lea.vmem %s741_s0, %s555_s21  ;;  %s280_s28 = scalar_lea.vmem %s742_s1, %s557_s25  ;;  %300 = vst [vmem:[#allocation2] sm:$0xff] (!%p558_p6), %v661_v0 }
  0x16 PF: > { %v629_v1 = vld [vmem:[%s280_s28] sm:$0xff]   ;;  %v662_v2 = vmov 0.0   ;;  %v630_v3 = vld [vmem:[%s280_s28 + $0x8] sm:$0xff]   ;;  %vm663_vm0 = vmmov 0   ;;  %v631_v4 = vld [vmem:[%s280_s28 + $0x10] sm:$0xff]   ;;  %p567_p7 = scmp.ne.s32.totalorder %s651_s15, 2 }
  0x17   : > { %582 = vmatprep.subr.bf16.mxu0 %v662_v2  ;;  %598 = vmatprep.mubr.msk.bf16.mxu0 %vm663_vm0, %v662_v2  ;;  %v632_v5 = vld [vmem:[%s280_s28 + $0x18] sm:$0xff]   ;;  %v633_v6 = vld [vmem:[%s280_s28 + $0x20] sm:$0xff]   ;;  %v634_v7 = vld [vmem:[%s280_s28 + $0x28] sm:$0xff]  }
  0x18   : > { %583 = vmatpush3.bf16.msra.mxu0 %v629_v1  ;;  %v635_v8 = vld [vmem:[%s280_s28 + $0x30] sm:$0xff]   ;;  %v636_v9 = vld [vmem:[%s280_s28 + $0x38] sm:$0xff]   ;;  %v302_v10 = vld [vmem:[%s715_s24] sm:$0xf] }
  0x19   : > { %584 = vmatprep.subr.bf16.mxu0 %v662_v2  ;;  %v301_v11 = vld [vmem:[#allocation2] sm:$0xff] }
  0x1a   : > { %v568_v18 = vld [vmem:[%s743_s2] ss:$0 sm:$0xff] (!%p567_p7) }
  0x1b   : > { %v569_v19 = vld [vmem:[%s744_s3] ss:$0 sm:$0xff] (!%p567_p7) }
  0x1c   : > { %585 = vmatpush3.bf16.msra.mxu0 %v630_v3 }
  0x1d   : > { %586 = vmatprep.subr.bf16.mxu0 %v662_v2 }
  0x20   : > { %587 = vmatpush3.bf16.msra.mxu0 %v631_v4 }
  0x21   : > { %588 = vmatprep.subr.bf16.mxu0 %v662_v2 }
  0x24   : > { %589 = vmatpush3.bf16.msra.mxu0 %v632_v5 }
  0x25   : > { %590 = vmatprep.subr.bf16.mxu0 %v662_v2 }
  0x28   : > { %591 = vmatpush3.bf16.msra.mxu0 %v633_v6 }
  0x29   : > { %592 = vmatprep.subr.bf16.mxu0 %v662_v2 }
  0x2c   : > { %593 = vmatpush3.bf16.msra.mxu0 %v634_v7 }
  0x2d   : > { %594 = vmatprep.subr.bf16.mxu0 %v662_v2 }
  0x30   : > { %595 = vmatpush3.bf16.msra.mxu0 %v635_v8 }
  0x31   : > { %596 = vmatprep.subr.bf16.mxu0 %v662_v2 }
  0x34   : > { %597 = vmatpush3.bf16.msra.mxu0 %v636_v9 }
  0x37   : > { %599 = vmatmul.mubr.bf16.vlgmr.msra.gmra.mrb[0].mxu0 %v302_v10 }
 0x107   : > { %412 = sbr.rel (%p567_p7) target bundleno = 284 (0x11c), region = 44 }
 0x10a   : > { %v401_v12 = vpop.f32.mrb[0].mxu0 }
 0x10b   : > { %v407_v13 = vadd.f32 %v401_v12, %v301_v11  ;;  %v600_v14 = vpop.f32.mrb[1].mxu0 }
 0x10c   : > { %v404_v15 = vpop.f32.mrb[2].mxu0 }
 0x10d   : > { %408 = vst [vmem:[#allocation2] sm:$0xff] %v407_v13  ;;  %v601_v16 = vpop.f32.mrb[3].mxu0 }
 0x114   : > { %v413_v17 = vld [vmem:[#allocation2] sm:$0xff] }
 0x115   : > { %v421_v20 = vmul.f32 %v568_v18, %v413_v17 }
 0x117   : > { %v429_v21 = vadd.f32 %v569_v19, %v421_v20 }
 0x119   : > { %v430_v22 = vpack.c.bf16 %v429_v21, %v429_v21 }
 0x11b   : > { %431 = vst [vmem:[%s745_s4] sm:$0xf] %v430_v22 }
 0x11c PF: > { %s14_s17 = sadd.s32 1, %s659_s17   ;;  %s746_s15 = smov %s655_s16 }
 0x11d   : > { %p11_p8 = scmp.ge.s32.totalorder %s14_s17, 5   ;;  %s747_s16 = smov %s749_s18 }
 0x11f   :  { %13 = sbr.rel (!%p11_p8) target bundleno = 2 (0x2), region = 83 }

// kernel: densenet_forward.30
= control target key start
LH: loop header
LB: loop body
LE: loop exit
PB: predicated region body
PF: predicated region fallthrough
CT: control target
= control target key end

     0   :  { %vm48_vm0 = vcmask 588800   ;;  %vm59_vm1 = vcmask 584704   ;;  %s111_s0 = inlined_call_operand.vmem [shape: bf16[4,8,72], index: 0, kind: input, shape index: {}]   ;;  %s112_s1 = inlined_call_operand.vmem [shape: f32[1,72], index: 1, kind: input, shape index: {}]   ;;  %s113_s2 = inlined_call_operand.vmem [shape: f32[1,72], index: 2, kind: input, shape index: {}]   ;;  %s114_s3 = inlined_call_operand.vmem [shape: bf16[8,72], index: 3, kind: output, shape index: {}]  }
   0x1   :  { %v68_v0 = vld [vmem:[%s111_s0] sm:$0xff]   ;;  %v75_v1 = vld [vmem:[%s111_s0 + $0x8] sm:$0xff]  }
   0x2   :  { %v65_v2 = vld [vmem:[%s112_s1] ss:$0 sm:$0xff]  ;;  %v69_v3 = vunpack.c.l.bf16 %v68_v0  ;;  %v70_v4 = vunpack.c.h.bf16 %v68_v0  ;;  %v73_v5 = vunpack.c.l.bf16 %v75_v1  ;;  %v74_v6 = vunpack.c.h.bf16 %v75_v1 }
   0x3   :  { %v66_v7 = vld [vmem:[%s113_s2] ss:$0 sm:$0xff] }
   0x4   :  { %v29_v8 = vmul.f32 %v69_v3, %v65_v2  ;;  %v30_v9 = vmul.f32 %v70_v4, %v65_v2  ;;  %v31_v10 = vmul.f32 %v73_v5, %v65_v2  ;;  %v32_v11 = vmul.f32 %v74_v6, %v65_v2 }
   0x6   :  { %v40_v12 = vadd.f32 %v66_v7, %v29_v8  ;;  %v41_v13 = vadd.f32 %v66_v7, %v30_v9  ;;  %v42_v14 = vadd.f32 %v66_v7, %v31_v10  ;;  %v43_v15 = vadd.f32 %v66_v7, %v32_v11 }
   0x8   :  { %v44_v16 = vmax.f32 %v40_v12, 0.0  ;;  %v45_v17 = vmax.f32 %v41_v13, 0.0  ;;  %v46_v18 = vmax.f32 %v42_v14, 0.0  ;;  %v47_v19 = vmax.f32 %v43_v15, 0.0 }
   0xa   :  { %v49_v20 = vsel %vm48_vm0, %v44_v16, 0.0  ;;  %v50_v21 = vsel %vm48_vm0, %v45_v17, 0.0  ;;  %v52_v22 = vsel %vm48_vm0, %v46_v18, 0.0  ;;  %v54_v24 = vsel %vm48_vm0, %v47_v19, 0.0 }
   0xb   :  { %v51_v23 = vadd.f32 %v50_v21, %v49_v20 }
   0xd   :  { %v53_v25 = vadd.f32 %v52_v22, %v51_v23 }
   0xf   :  { %v55_v26 = vadd.f32 %v54_v24, %v53_v25 }
  0x11   :  { %v57_v27 = vmul.f32 0.25, %v55_v26 }
  0x13   :  { %v58_v28 = vpack.c.bf16 %v57_v27, %v57_v27 }
  0x15   :  { %60 = vst.msk [vmem:[%s114_s3] sm:$0xf] %vm59_vm1, %v58_v28 }

// kernel: densenet_forward.32
= control target key start
LH: loop header
LB: loop body
LE: loop exit
PB: predicated region body
PF: predicated region fallthrough
CT: control target
= control target key end

     0   :  { %vm34_vm0 = vcmask 289792   ;;  %s74_s0 = inlined_call_operand.vmem [shape: bf16[8,36], index: 0, kind: input, shape index: {}]   ;;  %s75_s1 = inlined_call_operand.vmem [shape: f32[1,36], index: 1, kind: input, shape index: {}]   ;;  %s76_s2 = inlined_call_operand.vmem [shape: f32[1,36], index: 2, kind: input, shape index: {}]   ;;  %s77_s3 = inlined_call_operand.vmem [shape: bf16[8,36], index: 3, kind: output, shape index: {}]  }
   0x1   :  { %v14_v0 = vld [vmem:[%s74_s0] sm:$0xf] }
   0x2   :  { %v40_v1 = vld [vmem:[%s75_s1] ss:$0 sm:$0xff]  ;;  %v15_v2 = vunpack.c.l.bf16 %v14_v0 }
   0x3   :  { %v41_v3 = vld [vmem:[%s76_s2] ss:$0 sm:$0xff] }
   0x4   :  { %v23_v4 = vmul.f32 %v40_v1, %v15_v2 }
   0x6   :  { %v31_v5 = vadd.f32 %v41_v3, %v23_v4 }
   0x8   :  { %v32_v6 = vmax.f32 %v31_v5, 0.0 }
   0xa   :  { %v33_v7 = vpack.c.bf16 %v32_v6, %v32_v6 }
   0xc   :  { %35 = vst.msk [vmem:[%s77_s3] sm:$0xf] %vm34_vm0, %v33_v7 }

// kernel: densenet_forward.34
= control target key start
LH: loop header
LB: loop body
LE: loop exit
PB: predicated region body
PF: predicated region fallthrough
CT: control target
= control target key end

     0   :  { %vm35_vm0 = vcmask 551936   ;;  %s75_s0 = inlined_call_operand.vmem [shape: bf16[1,8,68], index: 0, kind: input, shape index: {}]   ;;  %s76_s1 = inlined_call_operand.vmem [shape: f32[1,68], index: 1, kind: input, shape index: {}]   ;;  %s77_s2 = inlined_call_operand.vmem [shape: f32[1,68], index: 2, kind: input, shape index: {}]   ;;  %s78_s3 = inlined_call_operand.vmem [shape: bf16[8,68], index: 3, kind: output, shape index: {}]  }
   0x1   :  { %v14_v0 = vld [vmem:[%s75_s0] sm:$0xf] }
   0x2   :  { %v41_v1 = vld [vmem:[%s76_s1] ss:$0 sm:$0xff]  ;;  %v15_v2 = vunpack.c.l.bf16 %v14_v0 }
   0x3   :  { %v42_v3 = vld [vmem:[%s77_s2] ss:$0 sm:$0xff] }
   0x4   :  { %v23_v4 = vmul.f32 %v41_v1, %v15_v2 }
   0x6   :  { %v31_v5 = vadd.f32 %v42_v3, %v23_v4 }
   0x8   :  { %v32_v6 = vmax.f32 %v31_v5, 0.0 }
   0xa   :  { %v34_v7 = vpack.c.bf16 %v32_v6, %v32_v6 }
   0xc   :  { %36 = vst.msk [vmem:[%s78_s3] sm:$0xf] %vm35_vm0, %v34_v7 }

// kernel: densenet_forward.35
= control target key start
LH: loop header
LB: loop body
LE: loop exit
PB: predicated region body
PF: predicated region fallthrough
CT: control target
= control target key end

     0   :  { %v205_v0 = vmov 0.0   ;;  %vm206_vm0 = vmmov 0   ;;  %s268_s1 = inlined_call_operand.vmem [shape: bf16[128,128], index: 1, kind: input, shape index: {}]   ;;  %s269_s0 = inlined_call_operand.vmem [shape: bf16[8,128], index: 0, kind: input, shape index: {}]   ;;  %s270_s2 = inlined_call_operand.vmem [shape: f32[1,128], index: 2, kind: input, shape index: {}]   ;;  %s271_s3 = inlined_call_operand.vmem [shape: f32[1,128], index: 3, kind: input, shape index: {}]   ;;  %s272_s4 = inlined_call_operand.vmem [shape: f32[8,128], index: 4, kind: output, shape index: {}]  }
   0x1   :  { %175 = vmatprep.subr.bf16.mxu0 %v205_v0  ;;  %v197_v1 = vld [vmem:[%s268_s1] sm:$0xff]   ;;  %191 = vmatprep.mubr.msk.bf16.mxu0 %vm206_vm0, %v205_v0  ;;  %v198_v2 = vld [vmem:[%s268_s1 + $0x8] sm:$0xff]   ;;  %v199_v3 = vld [vmem:[%s268_s1 + $0x10] sm:$0xff]  }
   0x2   :  { %176 = vmatpush3.bf16.msra.mxu0 %v197_v1  ;;  %v200_v4 = vld [vmem:[%s268_s1 + $0x18] sm:$0xff]   ;;  %v201_v5 = vld [vmem:[%s268_s1 + $0x20] sm:$0xff]   ;;  %v202_v6 = vld [vmem:[%s268_s1 + $0x28] sm:$0xff]  }
   0x3   :  { %177 = vmatprep.subr.bf16.mxu0 %v205_v0  ;;  %v203_v7 = vld [vmem:[%s268_s1 + $0x30] sm:$0xff]   ;;  %v204_v8 = vld [vmem:[%s268_s1 + $0x38] sm:$0xff]   ;;  %v24_v9 = vld [vmem:[%s269_s0] sm:$0xf] }
   0x4   :  { %v164_v10 = vld [vmem:[%s270_s2] ss:$0 sm:$0xff] }
   0x5   :  { %v165_v12 = vld [vmem:[%s271_s3] ss:$0 sm:$0xff] }
   0x6   :  { %178 = vmatpush3.bf16.msra.mxu0 %v198_v2 }
   0x7   :  { %179 = vmatprep.subr.bf16.mxu0 %v205_v0 }
   0xa   :  { %180 = vmatpush3.bf16.msra.mxu0 %v199_v3 }
   0xb   :  { %181 = vmatprep.subr.bf16.mxu0 %v205_v0 }
   0xe   :  { %182 = vmatpush3.bf16.msra.mxu0 %v200_v4 }
   0xf   :  { %183 = vmatprep.subr.bf16.mxu0 %v205_v0 }
  0x12   :  { %184 = vmatpush3.bf16.msra.mxu0 %v201_v5 }
  0x13   :  { %185 = vmatprep.subr.bf16.mxu0 %v205_v0 }
  0x16   :  { %186 = vmatpush3.bf16.msra.mxu0 %v202_v6 }
  0x17   :  { %187 = vmatprep.subr.bf16.mxu0 %v205_v0 }
  0x1a   :  { %188 = vmatpush3.bf16.msra.mxu0 %v203_v7 }
  0x1b   :  { %189 = vmatprep.subr.bf16.mxu0 %v205_v0 }
  0x1e   :  { %190 = vmatpush3.bf16.msra.mxu0 %v204_v8 }
  0x21   :  { %192 = vmatmul.mubr.bf16.vlgmr.msra.gmra.mrb[0].mxu0 %v24_v9 }
  0xf4   :  { %v123_v11 = vpop.f32.mrb[0].mxu0 }
  0xf5   :  { %v142_v13 = vmul.f32 %v164_v10, %v123_v11  ;;  %v193_v14 = vpop.f32.mrb[1].mxu0 }
  0xf6   :  { %v126_v15 = vpop.f32.mrb[2].mxu0 }
  0xf7   :  { %v150_v16 = vadd.f32 %v165_v12, %v142_v13  ;;  %v194_v17 = vpop.f32.mrb[3].mxu0 }
  0xf9   :  { %151 = vst [vmem:[%s272_s4] sm:$0xff] %v150_v16 }

</bundles_post_ra>
